<compile_context>
chip_gen: v7x
topology: tpu7x:2x2x1
jax: 0.10.0
libtpu: 0.0.40
codegen_flags: <defaults>
</compile_context>

<pallas_src>
import functools

import jax
import jax.numpy as jnp
import numpy as np
from jax.experimental import pallas as pl
from jax.experimental.pallas import tpu as pltpu


_NEG = -1.0e12  # same constant the PyTorch module uses for masked_fill_


def _round_up(v, m):
    return ((v + m - 1) // m) * m


def _cma_kernel(x_ref, w_ref, cmask_ref, ctx_ref, wq_ref, o_ref, *,
                num_probs, dim_context):
    """One grid step == one block of batch rows.

    x_ref     : (B, D)        decoder features
    w_ref     : (B, T)        previous attention weights       (T on lanes)
    cmask_ref : (B, T)        1.0 = valid context position     (T on lanes)
    ctx_ref   : (B, C, T)     encoder memory, pre-transposed   (T on lanes)
    wq_ref    : (D, P*C)      fused fc_query weight, column = n*C + c
    o_ref     : (B, T)        new attention weights            (T on lanes)
    """
    P = num_probs
    C = dim_context
    B, T = o_ref.shape

    # ---- fused query projection: ONE MXU matmul per grid step ---------------
    # q_all[b, n*C + c] = sum_d x[b, d] * Wq[n, d, c]
    q_all = jnp.dot(x_ref[...], wq_ref[...],
                    preferred_element_type=jnp.float32)            # (B, P*C)

    # ---- transition scores as (B, T) register values (VPU C-reduction) ------
    # e_n[b, t] = sum_c q_all[b, n*C + c] * ctx[b, c, t]
    # Each ctx slice is a lane-dense (B, T) load; q columns are per-row
    # lane-broadcast scalars.  No scratch stores, no reloads.
    e = [None] * P
    for c in range(C):                        # static unroll, C is small
        ctx_c = ctx_ref[:, c, :].astype(jnp.float32)               # (B, T)
        for n in range(P):
            col = n * C + c
            term = q_all[:, col:col + 1] * ctx_c                   # (B,1)*(B,T)
            e[n] = term if e[n] is None else e[n] + term

    # ---- masking + softmax over the P transition scores (vectorized) --------
    lane = jax.lax.broadcasted_iota(jnp.int32, (B, T), 1)
    cmask = cmask_ref[...]                                          # 1.0 = valid
    neg = jnp.float32(_NEG)

    e_masked = []
    for n in range(P):
        if n == 0:
            valid = cmask > 0.5
        else:
            # valid at source t iff target t+n is a valid position and the
            # transition does not step past the end (t < T - n).  Wrapped
            # lanes from the circular roll are killed by the iota mask.
            rolled = pltpu.roll(cmask, T - n, 1)      # rolled[t] = cmask[(t+n) % T]
            valid = jnp.logical_and(rolled > 0.5, lane < (T - n))
        e_masked.append(jnp.where(valid, e[n], neg))

    m = e_masked[0]
    for n in range(1, P):
        m = jnp.maximum(m, e_masked[n])
    exps = [jnp.exp(v - m) for v in e_masked]                       # EUP
    denom = exps[0]
    for n in range(1, P):
        denom = denom + exps[n]                                     # denom in [1, P]
    inv = pl.reciprocal(denom, approx=True)                         # EUP vrcp slot
    # One NR step (2 VPU ops on a 4-vreg plane) kept so the f32 path validates
    # at tight tolerance; drop if the VPU ever becomes the binding slot (v7x).
    inv = inv * (2.0 - denom * inv)

    # ---- Markov step:  w_new[t] = sum_n w[t - n] * p_n[t - n] ----------------
    w_scaled = w_ref[...] * inv
    w_new = w_scaled * exps[0]                                      # n = 0 term
    for n in range(1, P):
        wp_n = w_scaled * exps[n]                                   # = w * p_n
        shifted = pltpu.roll(wp_n, n, 1)                            # wp_n[(t-n) % T]
        w_new = w_new + jnp.where(lane >= n, shifted, jnp.float32(0.0))

    o_ref[...] = w_new                                              # single lane-dense store


def prepare_context(context, cmask=None, *, ctx_dtype=jnp.float32,
                    batch_block=32):
    """One-time (per utterance / encoder pass) layout prep.

    Transposes context to (N, C, T), pads N to the batch block and T to a
    lane multiple, and builds the padded validity mask.  Hoist this out of
    the decoder loop and reuse the result for every attention step.
    """
    N, T, C = context.shape
    b_blk = min(batch_block, _round_up(N, 8))
    n_pad = _round_up(N, b_blk)
    t_pad = _round_up(T, 128)

    cm = jnp.ones((N, T), jnp.float32) if cmask is None else cmask.astype(jnp.float32)
    cm_p = jnp.pad(cm, ((0, n_pad - N), (0, t_pad - T)))            # pad -> invalid
    ctx_p = jnp.pad(
        jnp.transpose(context, (0, 2, 1)).astype(ctx_dtype),
        ((0, n_pad - N), (0, 0), (0, t_pad - T)))                   # (N_pad, C, T_pad)

    return {"ctx": ctx_p, "cmask": cm_p, "N": N, "T": T, "block": b_blk}


def prepare_query_weight(wq, dim_context, num_probs):
    """torch fc_query.weight (P*C, D) -> fused (D, P*C), column index = n*C + c.

    Matches q.view(N, -1, P):  q_n[b, c] = sum_d x[b, d] * W[c*P + n, d].
    Do this once per model load / checkpoint.
    """
    P, C = num_probs, dim_context
    D = wq.shape[1]
    assert wq.shape == (P * C, D)
    w3 = jnp.reshape(wq.astype(jnp.float32), (C, P, D))             # w3[c, n, d]
    return jnp.reshape(jnp.transpose(w3, (2, 1, 0)), (D, P * C))    # [d, n*C + c]


def content_markov_attention_step(x, w, prepared, wq2d, *, num_probs=3):
    """One decoder-step forward pass of ContentMarkovAttention.

    x:        (N, dim_input)   decoder features
    w:        (N, T)           previous attention weights
    prepared: dict from prepare_context(context, cmask)
    wq2d:     (dim_input, num_probs*dim_context) from prepare_query_weight
    returns   (N, T) new attention weights (float32)
    """
    ctx_p = prepared["ctx"]
    cm_p = prepared["cmask"]
    N, T = prepared["N"], prepared["T"]
    b_blk = prepared["block"]
    n_pad, C, t_pad = ctx_p.shape
    P = num_probs
    D = x.shape[1]
    assert wq2d.shape == (D, P * C)

    x_p = jnp.pad(x.astype(jnp.float32), ((0, n_pad - N), (0, 0)))
    w_p = jnp.pad(w.astype(jnp.float32), ((0, n_pad - N), (0, t_pad - T)))

    kernel = functools.partial(_cma_kernel, num_probs=P, dim_context=C)
    grid = (n_pad // b_blk,)

    cost = pl.CostEstimate(
        flops=int(n_pad * (2 * D * P * C + 2 * P * C * t_pad + 12 * P * t_pad)),
        transcendentals=int(n_pad * t_pad * (P + 1)),
        bytes_accessed=int(4 * (x_p.size + w_p.size + cm_p.size + wq2d.size
                                + n_pad * t_pad)
                           + ctx_p.size * ctx_p.dtype.itemsize),
    )

    out = pl.pallas_call(
        kernel,
        out_shape=jax.ShapeDtypeStruct((n_pad, t_pad), jnp.float32),
        grid_spec=pltpu.PrefetchScalarGridSpec(
            num_scalar_prefetch=0,
            grid=grid,
            in_specs=[
                pl.BlockSpec((b_blk, D), lambda i: (i, 0)),             # x
                pl.BlockSpec((b_blk, t_pad), lambda i: (i, 0)),         # w_prev
                pl.BlockSpec((b_blk, t_pad), lambda i: (i, 0)),         # cmask
                pl.BlockSpec((b_blk, C, t_pad), lambda i: (i, 0, 0)),   # context^T
                pl.BlockSpec((D, P * C), lambda i: (0, 0)),             # fused fc_query weight
            ],
            out_specs=pl.BlockSpec((b_blk, t_pad), lambda i: (i, 0)),
        ),
        compiler_params=pltpu.CompilerParams(
            dimension_semantics=("parallel",)),
        cost_estimate=cost,
    )(x_p, w_p, cm_p, ctx_p, wq2d)

    return out[:N, :T]


def content_markov_attention(x, w, context, wq, cmask=None, *, num_probs=3,
                             ctx_dtype=jnp.float32, batch_block=32):
    """Convenience one-shot wrapper (prep + step).

    NOTE: in a real decode loop, call prepare_context / prepare_query_weight
    once and reuse them across decoder steps — the per-call transpose/pad of
    context costs more HBM traffic than the kernel itself.
    """
    N, T, C = context.shape
    prepared = prepare_context(context, cmask, ctx_dtype=ctx_dtype,
                               batch_block=batch_block)
    wq2d = prepare_query_weight(wq, C, num_probs)
    return content_markov_attention_step(x, w, prepared, wq2d,
                                         num_probs=num_probs)


def _reference(x, w, context, wq, cmask, num_probs):
    """Pure-JAX replica of the PyTorch forward (HIGHEST precision dots)."""
    P = num_probs
    N, T, _ = context.shape
    hi = jax.lax.Precision.HIGHEST
    q = jnp.dot(x, wq.T, precision=hi)                        # (N, P*C)
    q = q.reshape(N, -1, P)                                   # q.view(N, -1, P)
    e = jnp.einsum('ntc,ncp->ntp', context, q, precision=hi)  # (N, T, P)
    if cmask is not None:
        cmask_inv = jnp.logical_not(cmask)
        cm_ext = jnp.stack(
            [jnp.roll(cmask_inv, -n, axis=1) for n in range(P)], axis=2)
        e = jnp.where(cm_ext, _NEG, e)
    for n in range(1, P):
        e = e.at[:, T - n:, n].set(_NEG)
    p = jax.nn.softmax(e, axis=2)
    wp = w[:, :, None] * p
    w_new = wp[:, :, 0]
    for n in range(1, P):
        w_new = w_new.at[:, n:].add(wp[:, :T - n, n])
    return w_new


if __name__ == "__main__":
    # Small shapes consistent with the module's forward.
    N, T = 12, 100                       # T deliberately not a lane multiple
    dim_context, dim_input, num_probs = 32, 32, 3

    root = jax.random.PRNGKey(0)
    kx, kc, kw, kq, kl = jax.random.split(root, 5)

    x = jax.random.normal(kx, (N, dim_input), dtype=jnp.float32)
    context = jax.random.normal(kc, (N, T, dim_context), dtype=jnp.float32)

    # torch-layout fc_query weight: (num_probs*dim_context, dim_input), no bias.
    bound = 1.0 / (dim_input ** 0.5)
    wq = jax.random.uniform(kq, (num_probs * dim_context, dim_input),
                            minval=-bound, maxval=bound, dtype=jnp.float32)

    # Per-batch valid lengths -> boolean context mask (True = valid).
    lengths = jax.random.randint(kl, (N,), 60, T + 1)
    cmask = jnp.arange(T)[None, :] < lengths[:, None]         # (N, T) bool

    # Previous attention weights: a normalized distribution over valid positions.
    w_prev = cmask.astype(jnp.float32) * (
        1.0 + 0.5 * jax.random.uniform(kw, (N, T), dtype=jnp.float32))
    w_prev = jnp.where(cmask, w_prev, 0.0)
    w_prev = w_prev / jnp.sum(w_prev, axis=1, keepdims=True)

    ref = _reference(x, w_prev, context, wq, cmask, num_probs)

    # ---- hoisted prep (once per utterance) + f32 context path ---------------
    prepared = prepare_context(context, cmask)
    wq2d = prepare_query_weight(wq, dim_context, num_probs)
    out = content_markov_attention_step(x, w_prev, prepared, wq2d,
                                        num_probs=num_probs)
    out = jax.block_until_ready(out)
    np.testing.assert_allclose(np.asarray(out), np.asarray(ref),
                               rtol=2e-3, atol=1e-6)

    # ---- bf16 context streaming path (HBM-bandwidth optimization, esp. v5e) --
    prepared_bf16 = prepare_context(context, cmask, ctx_dtype=jnp.bfloat16)
    out_bf16 = content_markov_attention_step(x, w_prev, prepared_bf16, wq2d,
                                             num_probs=num_probs)
    out_bf16 = jax.block_until_ready(out_bf16)
    np.testing.assert_allclose(np.asarray(out_bf16), np.asarray(ref),
                               rtol=5e-2, atol=1e-5)

    print("KERNEL_OK")
</pallas_src>

<mosaic_0001>
module attributes {stable_mosaic.version = 11 : i64} {
  func.func @_cma_kernel(%arg0: i32, %arg1: memref<16x32xf32, #tpu.memory_space<vmem>>, %arg2: memref<16x128xf32, #tpu.memory_space<vmem>>, %arg3: memref<16x128xf32, #tpu.memory_space<vmem>>, %arg4: memref<16x32x128xf32, #tpu.memory_space<vmem>>, %arg5: memref<32x96xf32, #tpu.memory_space<vmem>>, %arg6: memref<16x128xf32, #tpu.memory_space<vmem>>) attributes {dimension_semantics = [#tpu.dimension_semantics<parallel>], iteration_bounds = array<i64: 1>, scalar_prefetch = 0 : i64, scratch_operands = 0 : i64, tpu.core_type = #tpu.core_type<tc>, window_params = [{transform_indices = @transform_0, window_bounds = array<i64: 16, 32>}, {transform_indices = @transform_1, window_bounds = array<i64: 16, 128>}, {transform_indices = @transform_2, window_bounds = array<i64: 16, 128>}, {transform_indices = @transform_3, window_bounds = array<i64: 16, 32, 128>}, {pipeline_mode = #tpu.pipeline_mode<synchronous>, transform_indices = @transform_4, window_bounds = array<i64: 32, 96>}, {transform_indices = @transform_5, window_bounds = array<i64: 16, 128>}]} {
    %c0 = arith.constant 0 : index
    %c0_0 = arith.constant 0 : index
    %0 = vector.load %arg1[%c0, %c0_0] : memref<16x32xf32, #tpu.memory_space<vmem>>, vector<16x32xf32>
    %c0_1 = arith.constant 0 : index
    %c0_2 = arith.constant 0 : index
    %1 = vector.load %arg5[%c0_1, %c0_2] : memref<32x96xf32, #tpu.memory_space<vmem>>, vector<32x96xf32>
    %cst = arith.constant dense<0.000000e+00> : vector<16x96xf32>
    %2 = tpu.matmul %0, %1, %cst {dimension_numbers = #tpu.dot_dimension_numbers<[1], [0], [0], [1], [0, 0, 1, 1], [], []>} : vector<16x32xf32>, vector<32x96xf32>, vector<16x96xf32> -> vector<16x96xf32>
    %c0_3 = arith.constant 0 : index
    %c0_4 = arith.constant 0 : index
    %c0_5 = arith.constant 0 : index
    %3 = vector.load %arg4[%c0_3, %c0_4, %c0_5] : memref<16x32x128xf32, #tpu.memory_space<vmem>>, vector<16x1x128xf32>
    %4 = vector.shape_cast %3 : vector<16x1x128xf32> to vector<16x128xf32>
    %5 = vector.extract_strided_slice %2 {offsets = [0, 0], sizes = [16, 1], strides = [1, 1]} : vector<16x96xf32> to vector<16x1xf32>
    %6 = vector.broadcast %5 : vector<16x1xf32> to vector<16x128xf32>
    %7 = arith.mulf %6, %4 : vector<16x128xf32>
    %8 = vector.extract_strided_slice %2 {offsets = [0, 32], sizes = [16, 1], strides = [1, 1]} : vector<16x96xf32> to vector<16x1xf32>
    %9 = vector.broadcast %8 : vector<16x1xf32> to vector<16x128xf32>
    %10 = arith.mulf %9, %4 : vector<16x128xf32>
    %11 = vector.extract_strided_slice %2 {offsets = [0, 64], sizes = [16, 1], strides = [1, 1]} : vector<16x96xf32> to vector<16x1xf32>
    %12 = vector.broadcast %11 : vector<16x1xf32> to vector<16x128xf32>
    %13 = arith.mulf %12, %4 : vector<16x128xf32>
    %c0_6 = arith.constant 0 : index
    %c1 = arith.constant 1 : index
    %c0_7 = arith.constant 0 : index
    %14 = vector.load %arg4[%c0_6, %c1, %c0_7] : memref<16x32x128xf32, #tpu.memory_space<vmem>>, vector<16x1x128xf32>
    %15 = vector.shape_cast %14 : vector<16x1x128xf32> to vector<16x128xf32>
    %16 = vector.extract_strided_slice %2 {offsets = [0, 1], sizes = [16, 1], strides = [1, 1]} : vector<16x96xf32> to vector<16x1xf32>
    %17 = vector.broadcast %16 : vector<16x1xf32> to vector<16x128xf32>
    %18 = arith.mulf %17, %15 : vector<16x128xf32>
    %19 = arith.addf %7, %18 : vector<16x128xf32>
    %20 = vector.extract_strided_slice %2 {offsets = [0, 33], sizes = [16, 1], strides = [1, 1]} : vector<16x96xf32> to vector<16x1xf32>
    %21 = vector.broadcast %20 : vector<16x1xf32> to vector<16x128xf32>
    %22 = arith.mulf %21, %15 : vector<16x128xf32>
    %23 = arith.addf %10, %22 : vector<16x128xf32>
    %24 = vector.extract_strided_slice %2 {offsets = [0, 65], sizes = [16, 1], strides = [1, 1]} : vector<16x96xf32> to vector<16x1xf32>
    %25 = vector.broadcast %24 : vector<16x1xf32> to vector<16x128xf32>
    %26 = arith.mulf %25, %15 : vector<16x128xf32>
    %27 = arith.addf %13, %26 : vector<16x128xf32>
    %c0_8 = arith.constant 0 : index
    %c2 = arith.constant 2 : index
    %c0_9 = arith.constant 0 : index
    %28 = vector.load %arg4[%c0_8, %c2, %c0_9] : memref<16x32x128xf32, #tpu.memory_space<vmem>>, vector<16x1x128xf32>
    %29 = vector.shape_cast %28 : vector<16x1x128xf32> to vector<16x128xf32>
    %30 = vector.extract_strided_slice %2 {offsets = [0, 2], sizes = [16, 1], strides = [1, 1]} : vector<16x96xf32> to vector<16x1xf32>
    %31 = vector.broadcast %30 : vector<16x1xf32> to vector<16x128xf32>
    %32 = arith.mulf %31, %29 : vector<16x128xf32>
    %33 = arith.addf %19, %32 : vector<16x128xf32>
    %34 = vector.extract_strided_slice %2 {offsets = [0, 34], sizes = [16, 1], strides = [1, 1]} : vector<16x96xf32> to vector<16x1xf32>
    %35 = vector.broadcast %34 : vector<16x1xf32> to vector<16x128xf32>
    %36 = arith.mulf %35, %29 : vector<16x128xf32>
    %37 = arith.addf %23, %36 : vector<16x128xf32>
    %38 = vector.extract_strided_slice %2 {offsets = [0, 66], sizes = [16, 1], strides = [1, 1]} : vector<16x96xf32> to vector<16x1xf32>
    %39 = vector.broadcast %38 : vector<16x1xf32> to vector<16x128xf32>
    %40 = arith.mulf %39, %29 : vector<16x128xf32>
    %41 = arith.addf %27, %40 : vector<16x128xf32>
    %c0_10 = arith.constant 0 : index
    %c3 = arith.constant 3 : index
    %c0_11 = arith.constant 0 : index
    %42 = vector.load %arg4[%c0_10, %c3, %c0_11] : memref<16x32x128xf32, #tpu.memory_space<vmem>>, vector<16x1x128xf32>
    %43 = vector.shape_cast %42 : vector<16x1x128xf32> to vector<16x128xf32>
    %44 = vector.extract_strided_slice %2 {offsets = [0, 3], sizes = [16, 1], strides = [1, 1]} : vector<16x96xf32> to vector<16x1xf32>
    %45 = vector.broadcast %44 : vector<16x1xf32> to vector<16x128xf32>
    %46 = arith.mulf %45, %43 : vector<16x128xf32>
    %47 = arith.addf %33, %46 : vector<16x128xf32>
    %48 = vector.extract_strided_slice %2 {offsets = [0, 35], sizes = [16, 1], strides = [1, 1]} : vector<16x96xf32> to vector<16x1xf32>
    %49 = vector.broadcast %48 : vector<16x1xf32> to vector<16x128xf32>
    %50 = arith.mulf %49, %43 : vector<16x128xf32>
    %51 = arith.addf %37, %50 : vector<16x128xf32>
    %52 = vector.extract_strided_slice %2 {offsets = [0, 67], sizes = [16, 1], strides = [1, 1]} : vector<16x96xf32> to vector<16x1xf32>
    %53 = vector.broadcast %52 : vector<16x1xf32> to vector<16x128xf32>
    %54 = arith.mulf %53, %43 : vector<16x128xf32>
    %55 = arith.addf %41, %54 : vector<16x128xf32>
    %c0_12 = arith.constant 0 : index
    %c4 = arith.constant 4 : index
    %c0_13 = arith.constant 0 : index
    %56 = vector.load %arg4[%c0_12, %c4, %c0_13] : memref<16x32x128xf32, #tpu.memory_space<vmem>>, vector<16x1x128xf32>
    %57 = vector.shape_cast %56 : vector<16x1x128xf32> to vector<16x128xf32>
    %58 = vector.extract_strided_slice %2 {offsets = [0, 4], sizes = [16, 1], strides = [1, 1]} : vector<16x96xf32> to vector<16x1xf32>
    %59 = vector.broadcast %58 : vector<16x1xf32> to vector<16x128xf32>
    %60 = arith.mulf %59, %57 : vector<16x128xf32>
    %61 = arith.addf %47, %60 : vector<16x128xf32>
    %62 = vector.extract_strided_slice %2 {offsets = [0, 36], sizes = [16, 1], strides = [1, 1]} : vector<16x96xf32> to vector<16x1xf32>
    %63 = vector.broadcast %62 : vector<16x1xf32> to vector<16x128xf32>
    %64 = arith.mulf %63, %57 : vector<16x128xf32>
    %65 = arith.addf %51, %64 : vector<16x128xf32>
    %66 = vector.extract_strided_slice %2 {offsets = [0, 68], sizes = [16, 1], strides = [1, 1]} : vector<16x96xf32> to vector<16x1xf32>
    %67 = vector.broadcast %66 : vector<16x1xf32> to vector<16x128xf32>
    %68 = arith.mulf %67, %57 : vector<16x128xf32>
    %69 = arith.addf %55, %68 : vector<16x128xf32>
    %c0_14 = arith.constant 0 : index
    %c5 = arith.constant 5 : index
    %c0_15 = arith.constant 0 : index
    %70 = vector.load %arg4[%c0_14, %c5, %c0_15] : memref<16x32x128xf32, #tpu.memory_space<vmem>>, vector<16x1x128xf32>
    %71 = vector.shape_cast %70 : vector<16x1x128xf32> to vector<16x128xf32>
    %72 = vector.extract_strided_slice %2 {offsets = [0, 5], sizes = [16, 1], strides = [1, 1]} : vector<16x96xf32> to vector<16x1xf32>
    %73 = vector.broadcast %72 : vector<16x1xf32> to vector<16x128xf32>
    %74 = arith.mulf %73, %71 : vector<16x128xf32>
    %75 = arith.addf %61, %74 : vector<16x128xf32>
    %76 = vector.extract_strided_slice %2 {offsets = [0, 37], sizes = [16, 1], strides = [1, 1]} : vector<16x96xf32> to vector<16x1xf32>
    %77 = vector.broadcast %76 : vector<16x1xf32> to vector<16x128xf32>
    %78 = arith.mulf %77, %71 : vector<16x128xf32>
    %79 = arith.addf %65, %78 : vector<16x128xf32>
    %80 = vector.extract_strided_slice %2 {offsets = [0, 69], sizes = [16, 1], strides = [1, 1]} : vector<16x96xf32> to vector<16x1xf32>
    %81 = vector.broadcast %80 : vector<16x1xf32> to vector<16x128xf32>
    %82 = arith.mulf %81, %71 : vector<16x128xf32>
    %83 = arith.addf %69, %82 : vector<16x128xf32>
    %c0_16 = arith.constant 0 : index
    %c6 = arith.constant 6 : index
    %c0_17 = arith.constant 0 : index
    %84 = vector.load %arg4[%c0_16, %c6, %c0_17] : memref<16x32x128xf32, #tpu.memory_space<vmem>>, vector<16x1x128xf32>
    %85 = vector.shape_cast %84 : vector<16x1x128xf32> to vector<16x128xf32>
    %86 = vector.extract_strided_slice %2 {offsets = [0, 6], sizes = [16, 1], strides = [1, 1]} : vector<16x96xf32> to vector<16x1xf32>
    %87 = vector.broadcast %86 : vector<16x1xf32> to vector<16x128xf32>
    %88 = arith.mulf %87, %85 : vector<16x128xf32>
    %89 = arith.addf %75, %88 : vector<16x128xf32>
    %90 = vector.extract_strided_slice %2 {offsets = [0, 38], sizes = [16, 1], strides = [1, 1]} : vector<16x96xf32> to vector<16x1xf32>
    %91 = vector.broadcast %90 : vector<16x1xf32> to vector<16x128xf32>
    %92 = arith.mulf %91, %85 : vector<16x128xf32>
    %93 = arith.addf %79, %92 : vector<16x128xf32>
    %94 = vector.extract_strided_slice %2 {offsets = [0, 70], sizes = [16, 1], strides = [1, 1]} : vector<16x96xf32> to vector<16x1xf32>
    %95 = vector.broadcast %94 : vector<16x1xf32> to vector<16x128xf32>
    %96 = arith.mulf %95, %85 : vector<16x128xf32>
    %97 = arith.addf %83, %96 : vector<16x128xf32>
    %c0_18 = arith.constant 0 : index
    %c7 = arith.constant 7 : index
    %c0_19 = arith.constant 0 : index
    %98 = vector.load %arg4[%c0_18, %c7, %c0_19] : memref<16x32x128xf32, #tpu.memory_space<vmem>>, vector<16x1x128xf32>
    %99 = vector.shape_cast %98 : vector<16x1x128xf32> to vector<16x128xf32>
    %100 = vector.extract_strided_slice %2 {offsets = [0, 7], sizes = [16, 1], strides = [1, 1]} : vector<16x96xf32> to vector<16x1xf32>
    %101 = vector.broadcast %100 : vector<16x1xf32> to vector<16x128xf32>
    %102 = arith.mulf %101, %99 : vector<16x128xf32>
    %103 = arith.addf %89, %102 : vector<16x128xf32>
    %104 = vector.extract_strided_slice %2 {offsets = [0, 39], sizes = [16, 1], strides = [1, 1]} : vector<16x96xf32> to vector<16x1xf32>
    %105 = vector.broadcast %104 : vector<16x1xf32> to vector<16x128xf32>
    %106 = arith.mulf %105, %99 : vector<16x128xf32>
    %107 = arith.addf %93, %106 : vector<16x128xf32>
    %108 = vector.extract_strided_slice %2 {offsets = [0, 71], sizes = [16, 1], strides = [1, 1]} : vector<16x96xf32> to vector<16x1xf32>
    %109 = vector.broadcast %108 : vector<16x1xf32> to vector<16x128xf32>
    %110 = arith.mulf %109, %99 : vector<16x128xf32>
    %111 = arith.addf %97, %110 : vector<16x128xf32>
    %c0_20 = arith.constant 0 : index
    %c8 = arith.constant 8 : index
    %c0_21 = arith.constant 0 : index
    %112 = vector.load %arg4[%c0_20, %c8, %c0_21] : memref<16x32x128xf32, #tpu.memory_space<vmem>>, vector<16x1x128xf32>
    %113 = vector.shape_cast %112 : vector<16x1x128xf32> to vector<16x128xf32>
    %114 = vector.extract_strided_slice %2 {offsets = [0, 8], sizes = [16, 1], strides = [1, 1]} : vector<16x96xf32> to vector<16x1xf32>
    %115 = vector.broadcast %114 : vector<16x1xf32> to vector<16x128xf32>
    %116 = arith.mulf %115, %113 : vector<16x128xf32>
    %117 = arith.addf %103, %116 : vector<16x128xf32>
    %118 = vector.extract_strided_slice %2 {offsets = [0, 40], sizes = [16, 1], strides = [1, 1]} : vector<16x96xf32> to vector<16x1xf32>
    %119 = vector.broadcast %118 : vector<16x1xf32> to vector<16x128xf32>
    %120 = arith.mulf %119, %113 : vector<16x128xf32>
    %121 = arith.addf %107, %120 : vector<16x128xf32>
    %122 = vector.extract_strided_slice %2 {offsets = [0, 72], sizes = [16, 1], strides = [1, 1]} : vector<16x96xf32> to vector<16x1xf32>
    %123 = vector.broadcast %122 : vector<16x1xf32> to vector<16x128xf32>
    %124 = arith.mulf %123, %113 : vector<16x128xf32>
    %125 = arith.addf %111, %124 : vector<16x128xf32>
    %c0_22 = arith.constant 0 : index
    %c9 = arith.constant 9 : index
    %c0_23 = arith.constant 0 : index
    %126 = vector.load %arg4[%c0_22, %c9, %c0_23] : memref<16x32x128xf32, #tpu.memory_space<vmem>>, vector<16x1x128xf32>
    %127 = vector.shape_cast %126 : vector<16x1x128xf32> to vector<16x128xf32>
    %128 = vector.extract_strided_slice %2 {offsets = [0, 9], sizes = [16, 1], strides = [1, 1]} : vector<16x96xf32> to vector<16x1xf32>
    %129 = vector.broadcast %128 : vector<16x1xf32> to vector<16x128xf32>
    %130 = arith.mulf %129, %127 : vector<16x128xf32>
    %131 = arith.addf %117, %130 : vector<16x128xf32>
    %132 = vector.extract_strided_slice %2 {offsets = [0, 41], sizes = [16, 1], strides = [1, 1]} : vector<16x96xf32> to vector<16x1xf32>
    %133 = vector.broadcast %132 : vector<16x1xf32> to vector<16x128xf32>
    %134 = arith.mulf %133, %127 : vector<16x128xf32>
    %135 = arith.addf %121, %134 : vector<16x128xf32>
    %136 = vector.extract_strided_slice %2 {offsets = [0, 73], sizes = [16, 1], strides = [1, 1]} : vector<16x96xf32> to vector<16x1xf32>
    %137 = vector.broadcast %136 : vector<16x1xf32> to vector<16x128xf32>
    %138 = arith.mulf %137, %127 : vector<16x128xf32>
    %139 = arith.addf %125, %138 : vector<16x128xf32>
    %c0_24 = arith.constant 0 : index
    %c10 = arith.constant 10 : index
    %c0_25 = arith.constant 0 : index
    %140 = vector.load %arg4[%c0_24, %c10, %c0_25] : memref<16x32x128xf32, #tpu.memory_space<vmem>>, vector<16x1x128xf32>
    %141 = vector.shape_cast %140 : vector<16x1x128xf32> to vector<16x128xf32>
    %142 = vector.extract_strided_slice %2 {offsets = [0, 10], sizes = [16, 1], strides = [1, 1]} : vector<16x96xf32> to vector<16x1xf32>
    %143 = vector.broadcast %142 : vector<16x1xf32> to vector<16x128xf32>
    %144 = arith.mulf %143, %141 : vector<16x128xf32>
    %145 = arith.addf %131, %144 : vector<16x128xf32>
    %146 = vector.extract_strided_slice %2 {offsets = [0, 42], sizes = [16, 1], strides = [1, 1]} : vector<16x96xf32> to vector<16x1xf32>
    %147 = vector.broadcast %146 : vector<16x1xf32> to vector<16x128xf32>
    %148 = arith.mulf %147, %141 : vector<16x128xf32>
    %149 = arith.addf %135, %148 : vector<16x128xf32>
    %150 = vector.extract_strided_slice %2 {offsets = [0, 74], sizes = [16, 1], strides = [1, 1]} : vector<16x96xf32> to vector<16x1xf32>
    %151 = vector.broadcast %150 : vector<16x1xf32> to vector<16x128xf32>
    %152 = arith.mulf %151, %141 : vector<16x128xf32>
    %153 = arith.addf %139, %152 : vector<16x128xf32>
    %c0_26 = arith.constant 0 : index
    %c11 = arith.constant 11 : index
    %c0_27 = arith.constant 0 : index
    %154 = vector.load %arg4[%c0_26, %c11, %c0_27] : memref<16x32x128xf32, #tpu.memory_space<vmem>>, vector<16x1x128xf32>
    %155 = vector.shape_cast %154 : vector<16x1x128xf32> to vector<16x128xf32>
    %156 = vector.extract_strided_slice %2 {offsets = [0, 11], sizes = [16, 1], strides = [1, 1]} : vector<16x96xf32> to vector<16x1xf32>
    %157 = vector.broadcast %156 : vector<16x1xf32> to vector<16x128xf32>
    %158 = arith.mulf %157, %155 : vector<16x128xf32>
    %159 = arith.addf %145, %158 : vector<16x128xf32>
    %160 = vector.extract_strided_slice %2 {offsets = [0, 43], sizes = [16, 1], strides = [1, 1]} : vector<16x96xf32> to vector<16x1xf32>
    %161 = vector.broadcast %160 : vector<16x1xf32> to vector<16x128xf32>
    %162 = arith.mulf %161, %155 : vector<16x128xf32>
    %163 = arith.addf %149, %162 : vector<16x128xf32>
    %164 = vector.extract_strided_slice %2 {offsets = [0, 75], sizes = [16, 1], strides = [1, 1]} : vector<16x96xf32> to vector<16x1xf32>
    %165 = vector.broadcast %164 : vector<16x1xf32> to vector<16x128xf32>
    %166 = arith.mulf %165, %155 : vector<16x128xf32>
    %167 = arith.addf %153, %166 : vector<16x128xf32>
    %c0_28 = arith.constant 0 : index
    %c12 = arith.constant 12 : index
    %c0_29 = arith.constant 0 : index
    %168 = vector.load %arg4[%c0_28, %c12, %c0_29] : memref<16x32x128xf32, #tpu.memory_space<vmem>>, vector<16x1x128xf32>
    %169 = vector.shape_cast %168 : vector<16x1x128xf32> to vector<16x128xf32>
    %170 = vector.extract_strided_slice %2 {offsets = [0, 12], sizes = [16, 1], strides = [1, 1]} : vector<16x96xf32> to vector<16x1xf32>
    %171 = vector.broadcast %170 : vector<16x1xf32> to vector<16x128xf32>
    %172 = arith.mulf %171, %169 : vector<16x128xf32>
    %173 = arith.addf %159, %172 : vector<16x128xf32>
    %174 = vector.extract_strided_slice %2 {offsets = [0, 44], sizes = [16, 1], strides = [1, 1]} : vector<16x96xf32> to vector<16x1xf32>
    %175 = vector.broadcast %174 : vector<16x1xf32> to vector<16x128xf32>
    %176 = arith.mulf %175, %169 : vector<16x128xf32>
    %177 = arith.addf %163, %176 : vector<16x128xf32>
    %178 = vector.extract_strided_slice %2 {offsets = [0, 76], sizes = [16, 1], strides = [1, 1]} : vector<16x96xf32> to vector<16x1xf32>
    %179 = vector.broadcast %178 : vector<16x1xf32> to vector<16x128xf32>
    %180 = arith.mulf %179, %169 : vector<16x128xf32>
    %181 = arith.addf %167, %180 : vector<16x128xf32>
    %c0_30 = arith.constant 0 : index
    %c13 = arith.constant 13 : index
    %c0_31 = arith.constant 0 : index
    %182 = vector.load %arg4[%c0_30, %c13, %c0_31] : memref<16x32x128xf32, #tpu.memory_space<vmem>>, vector<16x1x128xf32>
    %183 = vector.shape_cast %182 : vector<16x1x128xf32> to vector<16x128xf32>
    %184 = vector.extract_strided_slice %2 {offsets = [0, 13], sizes = [16, 1], strides = [1, 1]} : vector<16x96xf32> to vector<16x1xf32>
    %185 = vector.broadcast %184 : vector<16x1xf32> to vector<16x128xf32>
    %186 = arith.mulf %185, %183 : vector<16x128xf32>
    %187 = arith.addf %173, %186 : vector<16x128xf32>
    %188 = vector.extract_strided_slice %2 {offsets = [0, 45], sizes = [16, 1], strides = [1, 1]} : vector<16x96xf32> to vector<16x1xf32>
    %189 = vector.broadcast %188 : vector<16x1xf32> to vector<16x128xf32>
    %190 = arith.mulf %189, %183 : vector<16x128xf32>
    %191 = arith.addf %177, %190 : vector<16x128xf32>
    %192 = vector.extract_strided_slice %2 {offsets = [0, 77], sizes = [16, 1], strides = [1, 1]} : vector<16x96xf32> to vector<16x1xf32>
    %193 = vector.broadcast %192 : vector<16x1xf32> to vector<16x128xf32>
    %194 = arith.mulf %193, %183 : vector<16x128xf32>
    %195 = arith.addf %181, %194 : vector<16x128xf32>
    %c0_32 = arith.constant 0 : index
    %c14 = arith.constant 14 : index
    %c0_33 = arith.constant 0 : index
    %196 = vector.load %arg4[%c0_32, %c14, %c0_33] : memref<16x32x128xf32, #tpu.memory_space<vmem>>, vector<16x1x128xf32>
    %197 = vector.shape_cast %196 : vector<16x1x128xf32> to vector<16x128xf32>
    %198 = vector.extract_strided_slice %2 {offsets = [0, 14], sizes = [16, 1], strides = [1, 1]} : vector<16x96xf32> to vector<16x1xf32>
    %199 = vector.broadcast %198 : vector<16x1xf32> to vector<16x128xf32>
    %200 = arith.mulf %199, %197 : vector<16x128xf32>
    %201 = arith.addf %187, %200 : vector<16x128xf32>
    %202 = vector.extract_strided_slice %2 {offsets = [0, 46], sizes = [16, 1], strides = [1, 1]} : vector<16x96xf32> to vector<16x1xf32>
    %203 = vector.broadcast %202 : vector<16x1xf32> to vector<16x128xf32>
    %204 = arith.mulf %203, %197 : vector<16x128xf32>
    %205 = arith.addf %191, %204 : vector<16x128xf32>
    %206 = vector.extract_strided_slice %2 {offsets = [0, 78], sizes = [16, 1], strides = [1, 1]} : vector<16x96xf32> to vector<16x1xf32>
    %207 = vector.broadcast %206 : vector<16x1xf32> to vector<16x128xf32>
    %208 = arith.mulf %207, %197 : vector<16x128xf32>
    %209 = arith.addf %195, %208 : vector<16x128xf32>
    %c0_34 = arith.constant 0 : index
    %c15 = arith.constant 15 : index
    %c0_35 = arith.constant 0 : index
    %210 = vector.load %arg4[%c0_34, %c15, %c0_35] : memref<16x32x128xf32, #tpu.memory_space<vmem>>, vector<16x1x128xf32>
    %211 = vector.shape_cast %210 : vector<16x1x128xf32> to vector<16x128xf32>
    %212 = vector.extract_strided_slice %2 {offsets = [0, 15], sizes = [16, 1], strides = [1, 1]} : vector<16x96xf32> to vector<16x1xf32>
    %213 = vector.broadcast %212 : vector<16x1xf32> to vector<16x128xf32>
    %214 = arith.mulf %213, %211 : vector<16x128xf32>
    %215 = arith.addf %201, %214 : vector<16x128xf32>
    %216 = vector.extract_strided_slice %2 {offsets = [0, 47], sizes = [16, 1], strides = [1, 1]} : vector<16x96xf32> to vector<16x1xf32>
    %217 = vector.broadcast %216 : vector<16x1xf32> to vector<16x128xf32>
    %218 = arith.mulf %217, %211 : vector<16x128xf32>
    %219 = arith.addf %205, %218 : vector<16x128xf32>
    %220 = vector.extract_strided_slice %2 {offsets = [0, 79], sizes = [16, 1], strides = [1, 1]} : vector<16x96xf32> to vector<16x1xf32>
    %221 = vector.broadcast %220 : vector<16x1xf32> to vector<16x128xf32>
    %222 = arith.mulf %221, %211 : vector<16x128xf32>
    %223 = arith.addf %209, %222 : vector<16x128xf32>
    %c0_36 = arith.constant 0 : index
    %c16 = arith.constant 16 : index
    %c0_37 = arith.constant 0 : index
    %224 = vector.load %arg4[%c0_36, %c16, %c0_37] : memref<16x32x128xf32, #tpu.memory_space<vmem>>, vector<16x1x128xf32>
    %225 = vector.shape_cast %224 : vector<16x1x128xf32> to vector<16x128xf32>
    %226 = vector.extract_strided_slice %2 {offsets = [0, 16], sizes = [16, 1], strides = [1, 1]} : vector<16x96xf32> to vector<16x1xf32>
    %227 = vector.broadcast %226 : vector<16x1xf32> to vector<16x128xf32>
    %228 = arith.mulf %227, %225 : vector<16x128xf32>
    %229 = arith.addf %215, %228 : vector<16x128xf32>
    %230 = vector.extract_strided_slice %2 {offsets = [0, 48], sizes = [16, 1], strides = [1, 1]} : vector<16x96xf32> to vector<16x1xf32>
    %231 = vector.broadcast %230 : vector<16x1xf32> to vector<16x128xf32>
    %232 = arith.mulf %231, %225 : vector<16x128xf32>
    %233 = arith.addf %219, %232 : vector<16x128xf32>
    %234 = vector.extract_strided_slice %2 {offsets = [0, 80], sizes = [16, 1], strides = [1, 1]} : vector<16x96xf32> to vector<16x1xf32>
    %235 = vector.broadcast %234 : vector<16x1xf32> to vector<16x128xf32>
    %236 = arith.mulf %235, %225 : vector<16x128xf32>
    %237 = arith.addf %223, %236 : vector<16x128xf32>
    %c0_38 = arith.constant 0 : index
    %c17 = arith.constant 17 : index
    %c0_39 = arith.constant 0 : index
    %238 = vector.load %arg4[%c0_38, %c17, %c0_39] : memref<16x32x128xf32, #tpu.memory_space<vmem>>, vector<16x1x128xf32>
    %239 = vector.shape_cast %238 : vector<16x1x128xf32> to vector<16x128xf32>
    %240 = vector.extract_strided_slice %2 {offsets = [0, 17], sizes = [16, 1], strides = [1, 1]} : vector<16x96xf32> to vector<16x1xf32>
    %241 = vector.broadcast %240 : vector<16x1xf32> to vector<16x128xf32>
    %242 = arith.mulf %241, %239 : vector<16x128xf32>
    %243 = arith.addf %229, %242 : vector<16x128xf32>
    %244 = vector.extract_strided_slice %2 {offsets = [0, 49], sizes = [16, 1], strides = [1, 1]} : vector<16x96xf32> to vector<16x1xf32>
    %245 = vector.broadcast %244 : vector<16x1xf32> to vector<16x128xf32>
    %246 = arith.mulf %245, %239 : vector<16x128xf32>
    %247 = arith.addf %233, %246 : vector<16x128xf32>
    %248 = vector.extract_strided_slice %2 {offsets = [0, 81], sizes = [16, 1], strides = [1, 1]} : vector<16x96xf32> to vector<16x1xf32>
    %249 = vector.broadcast %248 : vector<16x1xf32> to vector<16x128xf32>
    %250 = arith.mulf %249, %239 : vector<16x128xf32>
    %251 = arith.addf %237, %250 : vector<16x128xf32>
    %c0_40 = arith.constant 0 : index
    %c18 = arith.constant 18 : index
    %c0_41 = arith.constant 0 : index
    %252 = vector.load %arg4[%c0_40, %c18, %c0_41] : memref<16x32x128xf32, #tpu.memory_space<vmem>>, vector<16x1x128xf32>
    %253 = vector.shape_cast %252 : vector<16x1x128xf32> to vector<16x128xf32>
    %254 = vector.extract_strided_slice %2 {offsets = [0, 18], sizes = [16, 1], strides = [1, 1]} : vector<16x96xf32> to vector<16x1xf32>
    %255 = vector.broadcast %254 : vector<16x1xf32> to vector<16x128xf32>
    %256 = arith.mulf %255, %253 : vector<16x128xf32>
    %257 = arith.addf %243, %256 : vector<16x128xf32>
    %258 = vector.extract_strided_slice %2 {offsets = [0, 50], sizes = [16, 1], strides = [1, 1]} : vector<16x96xf32> to vector<16x1xf32>
    %259 = vector.broadcast %258 : vector<16x1xf32> to vector<16x128xf32>
    %260 = arith.mulf %259, %253 : vector<16x128xf32>
    %261 = arith.addf %247, %260 : vector<16x128xf32>
    %262 = vector.extract_strided_slice %2 {offsets = [0, 82], sizes = [16, 1], strides = [1, 1]} : vector<16x96xf32> to vector<16x1xf32>
    %263 = vector.broadcast %262 : vector<16x1xf32> to vector<16x128xf32>
    %264 = arith.mulf %263, %253 : vector<16x128xf32>
    %265 = arith.addf %251, %264 : vector<16x128xf32>
    %c0_42 = arith.constant 0 : index
    %c19 = arith.constant 19 : index
    %c0_43 = arith.constant 0 : index
    %266 = vector.load %arg4[%c0_42, %c19, %c0_43] : memref<16x32x128xf32, #tpu.memory_space<vmem>>, vector<16x1x128xf32>
    %267 = vector.shape_cast %266 : vector<16x1x128xf32> to vector<16x128xf32>
    %268 = vector.extract_strided_slice %2 {offsets = [0, 19], sizes = [16, 1], strides = [1, 1]} : vector<16x96xf32> to vector<16x1xf32>
    %269 = vector.broadcast %268 : vector<16x1xf32> to vector<16x128xf32>
    %270 = arith.mulf %269, %267 : vector<16x128xf32>
    %271 = arith.addf %257, %270 : vector<16x128xf32>
    %272 = vector.extract_strided_slice %2 {offsets = [0, 51], sizes = [16, 1], strides = [1, 1]} : vector<16x96xf32> to vector<16x1xf32>
    %273 = vector.broadcast %272 : vector<16x1xf32> to vector<16x128xf32>
    %274 = arith.mulf %273, %267 : vector<16x128xf32>
    %275 = arith.addf %261, %274 : vector<16x128xf32>
    %276 = vector.extract_strided_slice %2 {offsets = [0, 83], sizes = [16, 1], strides = [1, 1]} : vector<16x96xf32> to vector<16x1xf32>
    %277 = vector.broadcast %276 : vector<16x1xf32> to vector<16x128xf32>
    %278 = arith.mulf %277, %267 : vector<16x128xf32>
    %279 = arith.addf %265, %278 : vector<16x128xf32>
    %c0_44 = arith.constant 0 : index
    %c20 = arith.constant 20 : index
    %c0_45 = arith.constant 0 : index
    %280 = vector.load %arg4[%c0_44, %c20, %c0_45] : memref<16x32x128xf32, #tpu.memory_space<vmem>>, vector<16x1x128xf32>
    %281 = vector.shape_cast %280 : vector<16x1x128xf32> to vector<16x128xf32>
    %282 = vector.extract_strided_slice %2 {offsets = [0, 20], sizes = [16, 1], strides = [1, 1]} : vector<16x96xf32> to vector<16x1xf32>
    %283 = vector.broadcast %282 : vector<16x1xf32> to vector<16x128xf32>
    %284 = arith.mulf %283, %281 : vector<16x128xf32>
    %285 = arith.addf %271, %284 : vector<16x128xf32>
    %286 = vector.extract_strided_slice %2 {offsets = [0, 52], sizes = [16, 1], strides = [1, 1]} : vector<16x96xf32> to vector<16x1xf32>
    %287 = vector.broadcast %286 : vector<16x1xf32> to vector<16x128xf32>
    %288 = arith.mulf %287, %281 : vector<16x128xf32>
    %289 = arith.addf %275, %288 : vector<16x128xf32>
    %290 = vector.extract_strided_slice %2 {offsets = [0, 84], sizes = [16, 1], strides = [1, 1]} : vector<16x96xf32> to vector<16x1xf32>
    %291 = vector.broadcast %290 : vector<16x1xf32> to vector<16x128xf32>
    %292 = arith.mulf %291, %281 : vector<16x128xf32>
    %293 = arith.addf %279, %292 : vector<16x128xf32>
    %c0_46 = arith.constant 0 : index
    %c21 = arith.constant 21 : index
    %c0_47 = arith.constant 0 : index
    %294 = vector.load %arg4[%c0_46, %c21, %c0_47] : memref<16x32x128xf32, #tpu.memory_space<vmem>>, vector<16x1x128xf32>
    %295 = vector.shape_cast %294 : vector<16x1x128xf32> to vector<16x128xf32>
    %296 = vector.extract_strided_slice %2 {offsets = [0, 21], sizes = [16, 1], strides = [1, 1]} : vector<16x96xf32> to vector<16x1xf32>
    %297 = vector.broadcast %296 : vector<16x1xf32> to vector<16x128xf32>
    %298 = arith.mulf %297, %295 : vector<16x128xf32>
    %299 = arith.addf %285, %298 : vector<16x128xf32>
    %300 = vector.extract_strided_slice %2 {offsets = [0, 53], sizes = [16, 1], strides = [1, 1]} : vector<16x96xf32> to vector<16x1xf32>
    %301 = vector.broadcast %300 : vector<16x1xf32> to vector<16x128xf32>
    %302 = arith.mulf %301, %295 : vector<16x128xf32>
    %303 = arith.addf %289, %302 : vector<16x128xf32>
    %304 = vector.extract_strided_slice %2 {offsets = [0, 85], sizes = [16, 1], strides = [1, 1]} : vector<16x96xf32> to vector<16x1xf32>
    %305 = vector.broadcast %304 : vector<16x1xf32> to vector<16x128xf32>
    %306 = arith.mulf %305, %295 : vector<16x128xf32>
    %307 = arith.addf %293, %306 : vector<16x128xf32>
    %c0_48 = arith.constant 0 : index
    %c22 = arith.constant 22 : index
    %c0_49 = arith.constant 0 : index
    %308 = vector.load %arg4[%c0_48, %c22, %c0_49] : memref<16x32x128xf32, #tpu.memory_space<vmem>>, vector<16x1x128xf32>
    %309 = vector.shape_cast %308 : vector<16x1x128xf32> to vector<16x128xf32>
    %310 = vector.extract_strided_slice %2 {offsets = [0, 22], sizes = [16, 1], strides = [1, 1]} : vector<16x96xf32> to vector<16x1xf32>
    %311 = vector.broadcast %310 : vector<16x1xf32> to vector<16x128xf32>
    %312 = arith.mulf %311, %309 : vector<16x128xf32>
    %313 = arith.addf %299, %312 : vector<16x128xf32>
    %314 = vector.extract_strided_slice %2 {offsets = [0, 54], sizes = [16, 1], strides = [1, 1]} : vector<16x96xf32> to vector<16x1xf32>
    %315 = vector.broadcast %314 : vector<16x1xf32> to vector<16x128xf32>
    %316 = arith.mulf %315, %309 : vector<16x128xf32>
    %317 = arith.addf %303, %316 : vector<16x128xf32>
    %318 = vector.extract_strided_slice %2 {offsets = [0, 86], sizes = [16, 1], strides = [1, 1]} : vector<16x96xf32> to vector<16x1xf32>
    %319 = vector.broadcast %318 : vector<16x1xf32> to vector<16x128xf32>
    %320 = arith.mulf %319, %309 : vector<16x128xf32>
    %321 = arith.addf %307, %320 : vector<16x128xf32>
    %c0_50 = arith.constant 0 : index
    %c23 = arith.constant 23 : index
    %c0_51 = arith.constant 0 : index
    %322 = vector.load %arg4[%c0_50, %c23, %c0_51] : memref<16x32x128xf32, #tpu.memory_space<vmem>>, vector<16x1x128xf32>
    %323 = vector.shape_cast %322 : vector<16x1x128xf32> to vector<16x128xf32>
    %324 = vector.extract_strided_slice %2 {offsets = [0, 23], sizes = [16, 1], strides = [1, 1]} : vector<16x96xf32> to vector<16x1xf32>
    %325 = vector.broadcast %324 : vector<16x1xf32> to vector<16x128xf32>
    %326 = arith.mulf %325, %323 : vector<16x128xf32>
    %327 = arith.addf %313, %326 : vector<16x128xf32>
    %328 = vector.extract_strided_slice %2 {offsets = [0, 55], sizes = [16, 1], strides = [1, 1]} : vector<16x96xf32> to vector<16x1xf32>
    %329 = vector.broadcast %328 : vector<16x1xf32> to vector<16x128xf32>
    %330 = arith.mulf %329, %323 : vector<16x128xf32>
    %331 = arith.addf %317, %330 : vector<16x128xf32>
    %332 = vector.extract_strided_slice %2 {offsets = [0, 87], sizes = [16, 1], strides = [1, 1]} : vector<16x96xf32> to vector<16x1xf32>
    %333 = vector.broadcast %332 : vector<16x1xf32> to vector<16x128xf32>
    %334 = arith.mulf %333, %323 : vector<16x128xf32>
    %335 = arith.addf %321, %334 : vector<16x128xf32>
    %c0_52 = arith.constant 0 : index
    %c24 = arith.constant 24 : index
    %c0_53 = arith.constant 0 : index
    %336 = vector.load %arg4[%c0_52, %c24, %c0_53] : memref<16x32x128xf32, #tpu.memory_space<vmem>>, vector<16x1x128xf32>
    %337 = vector.shape_cast %336 : vector<16x1x128xf32> to vector<16x128xf32>
    %338 = vector.extract_strided_slice %2 {offsets = [0, 24], sizes = [16, 1], strides = [1, 1]} : vector<16x96xf32> to vector<16x1xf32>
    %339 = vector.broadcast %338 : vector<16x1xf32> to vector<16x128xf32>
    %340 = arith.mulf %339, %337 : vector<16x128xf32>
    %341 = arith.addf %327, %340 : vector<16x128xf32>
    %342 = vector.extract_strided_slice %2 {offsets = [0, 56], sizes = [16, 1], strides = [1, 1]} : vector<16x96xf32> to vector<16x1xf32>
    %343 = vector.broadcast %342 : vector<16x1xf32> to vector<16x128xf32>
    %344 = arith.mulf %343, %337 : vector<16x128xf32>
    %345 = arith.addf %331, %344 : vector<16x128xf32>
    %346 = vector.extract_strided_slice %2 {offsets = [0, 88], sizes = [16, 1], strides = [1, 1]} : vector<16x96xf32> to vector<16x1xf32>
    %347 = vector.broadcast %346 : vector<16x1xf32> to vector<16x128xf32>
    %348 = arith.mulf %347, %337 : vector<16x128xf32>
    %349 = arith.addf %335, %348 : vector<16x128xf32>
    %c0_54 = arith.constant 0 : index
    %c25 = arith.constant 25 : index
    %c0_55 = arith.constant 0 : index
    %350 = vector.load %arg4[%c0_54, %c25, %c0_55] : memref<16x32x128xf32, #tpu.memory_space<vmem>>, vector<16x1x128xf32>
    %351 = vector.shape_cast %350 : vector<16x1x128xf32> to vector<16x128xf32>
    %352 = vector.extract_strided_slice %2 {offsets = [0, 25], sizes = [16, 1], strides = [1, 1]} : vector<16x96xf32> to vector<16x1xf32>
    %353 = vector.broadcast %352 : vector<16x1xf32> to vector<16x128xf32>
    %354 = arith.mulf %353, %351 : vector<16x128xf32>
    %355 = arith.addf %341, %354 : vector<16x128xf32>
    %356 = vector.extract_strided_slice %2 {offsets = [0, 57], sizes = [16, 1], strides = [1, 1]} : vector<16x96xf32> to vector<16x1xf32>
    %357 = vector.broadcast %356 : vector<16x1xf32> to vector<16x128xf32>
    %358 = arith.mulf %357, %351 : vector<16x128xf32>
    %359 = arith.addf %345, %358 : vector<16x128xf32>
    %360 = vector.extract_strided_slice %2 {offsets = [0, 89], sizes = [16, 1], strides = [1, 1]} : vector<16x96xf32> to vector<16x1xf32>
    %361 = vector.broadcast %360 : vector<16x1xf32> to vector<16x128xf32>
    %362 = arith.mulf %361, %351 : vector<16x128xf32>
    %363 = arith.addf %349, %362 : vector<16x128xf32>
    %c0_56 = arith.constant 0 : index
    %c26 = arith.constant 26 : index
    %c0_57 = arith.constant 0 : index
    %364 = vector.load %arg4[%c0_56, %c26, %c0_57] : memref<16x32x128xf32, #tpu.memory_space<vmem>>, vector<16x1x128xf32>
    %365 = vector.shape_cast %364 : vector<16x1x128xf32> to vector<16x128xf32>
    %366 = vector.extract_strided_slice %2 {offsets = [0, 26], sizes = [16, 1], strides = [1, 1]} : vector<16x96xf32> to vector<16x1xf32>
    %367 = vector.broadcast %366 : vector<16x1xf32> to vector<16x128xf32>
    %368 = arith.mulf %367, %365 : vector<16x128xf32>
    %369 = arith.addf %355, %368 : vector<16x128xf32>
    %370 = vector.extract_strided_slice %2 {offsets = [0, 58], sizes = [16, 1], strides = [1, 1]} : vector<16x96xf32> to vector<16x1xf32>
    %371 = vector.broadcast %370 : vector<16x1xf32> to vector<16x128xf32>
    %372 = arith.mulf %371, %365 : vector<16x128xf32>
    %373 = arith.addf %359, %372 : vector<16x128xf32>
    %374 = vector.extract_strided_slice %2 {offsets = [0, 90], sizes = [16, 1], strides = [1, 1]} : vector<16x96xf32> to vector<16x1xf32>
    %375 = vector.broadcast %374 : vector<16x1xf32> to vector<16x128xf32>
    %376 = arith.mulf %375, %365 : vector<16x128xf32>
    %377 = arith.addf %363, %376 : vector<16x128xf32>
    %c0_58 = arith.constant 0 : index
    %c27 = arith.constant 27 : index
    %c0_59 = arith.constant 0 : index
    %378 = vector.load %arg4[%c0_58, %c27, %c0_59] : memref<16x32x128xf32, #tpu.memory_space<vmem>>, vector<16x1x128xf32>
    %379 = vector.shape_cast %378 : vector<16x1x128xf32> to vector<16x128xf32>
    %380 = vector.extract_strided_slice %2 {offsets = [0, 27], sizes = [16, 1], strides = [1, 1]} : vector<16x96xf32> to vector<16x1xf32>
    %381 = vector.broadcast %380 : vector<16x1xf32> to vector<16x128xf32>
    %382 = arith.mulf %381, %379 : vector<16x128xf32>
    %383 = arith.addf %369, %382 : vector<16x128xf32>
    %384 = vector.extract_strided_slice %2 {offsets = [0, 59], sizes = [16, 1], strides = [1, 1]} : vector<16x96xf32> to vector<16x1xf32>
    %385 = vector.broadcast %384 : vector<16x1xf32> to vector<16x128xf32>
    %386 = arith.mulf %385, %379 : vector<16x128xf32>
    %387 = arith.addf %373, %386 : vector<16x128xf32>
    %388 = vector.extract_strided_slice %2 {offsets = [0, 91], sizes = [16, 1], strides = [1, 1]} : vector<16x96xf32> to vector<16x1xf32>
    %389 = vector.broadcast %388 : vector<16x1xf32> to vector<16x128xf32>
    %390 = arith.mulf %389, %379 : vector<16x128xf32>
    %391 = arith.addf %377, %390 : vector<16x128xf32>
    %c0_60 = arith.constant 0 : index
    %c28 = arith.constant 28 : index
    %c0_61 = arith.constant 0 : index
    %392 = vector.load %arg4[%c0_60, %c28, %c0_61] : memref<16x32x128xf32, #tpu.memory_space<vmem>>, vector<16x1x128xf32>
    %393 = vector.shape_cast %392 : vector<16x1x128xf32> to vector<16x128xf32>
    %394 = vector.extract_strided_slice %2 {offsets = [0, 28], sizes = [16, 1], strides = [1, 1]} : vector<16x96xf32> to vector<16x1xf32>
    %395 = vector.broadcast %394 : vector<16x1xf32> to vector<16x128xf32>
    %396 = arith.mulf %395, %393 : vector<16x128xf32>
    %397 = arith.addf %383, %396 : vector<16x128xf32>
    %398 = vector.extract_strided_slice %2 {offsets = [0, 60], sizes = [16, 1], strides = [1, 1]} : vector<16x96xf32> to vector<16x1xf32>
    %399 = vector.broadcast %398 : vector<16x1xf32> to vector<16x128xf32>
    %400 = arith.mulf %399, %393 : vector<16x128xf32>
    %401 = arith.addf %387, %400 : vector<16x128xf32>
    %402 = vector.extract_strided_slice %2 {offsets = [0, 92], sizes = [16, 1], strides = [1, 1]} : vector<16x96xf32> to vector<16x1xf32>
    %403 = vector.broadcast %402 : vector<16x1xf32> to vector<16x128xf32>
    %404 = arith.mulf %403, %393 : vector<16x128xf32>
    %405 = arith.addf %391, %404 : vector<16x128xf32>
    %c0_62 = arith.constant 0 : index
    %c29 = arith.constant 29 : index
    %c0_63 = arith.constant 0 : index
    %406 = vector.load %arg4[%c0_62, %c29, %c0_63] : memref<16x32x128xf32, #tpu.memory_space<vmem>>, vector<16x1x128xf32>
    %407 = vector.shape_cast %406 : vector<16x1x128xf32> to vector<16x128xf32>
    %408 = vector.extract_strided_slice %2 {offsets = [0, 29], sizes = [16, 1], strides = [1, 1]} : vector<16x96xf32> to vector<16x1xf32>
    %409 = vector.broadcast %408 : vector<16x1xf32> to vector<16x128xf32>
    %410 = arith.mulf %409, %407 : vector<16x128xf32>
    %411 = arith.addf %397, %410 : vector<16x128xf32>
    %412 = vector.extract_strided_slice %2 {offsets = [0, 61], sizes = [16, 1], strides = [1, 1]} : vector<16x96xf32> to vector<16x1xf32>
    %413 = vector.broadcast %412 : vector<16x1xf32> to vector<16x128xf32>
    %414 = arith.mulf %413, %407 : vector<16x128xf32>
    %415 = arith.addf %401, %414 : vector<16x128xf32>
    %416 = vector.extract_strided_slice %2 {offsets = [0, 93], sizes = [16, 1], strides = [1, 1]} : vector<16x96xf32> to vector<16x1xf32>
    %417 = vector.broadcast %416 : vector<16x1xf32> to vector<16x128xf32>
    %418 = arith.mulf %417, %407 : vector<16x128xf32>
    %419 = arith.addf %405, %418 : vector<16x128xf32>
    %c0_64 = arith.constant 0 : index
    %c30 = arith.constant 30 : index
    %c0_65 = arith.constant 0 : index
    %420 = vector.load %arg4[%c0_64, %c30, %c0_65] : memref<16x32x128xf32, #tpu.memory_space<vmem>>, vector<16x1x128xf32>
    %421 = vector.shape_cast %420 : vector<16x1x128xf32> to vector<16x128xf32>
    %422 = vector.extract_strided_slice %2 {offsets = [0, 30], sizes = [16, 1], strides = [1, 1]} : vector<16x96xf32> to vector<16x1xf32>
    %423 = vector.broadcast %422 : vector<16x1xf32> to vector<16x128xf32>
    %424 = arith.mulf %423, %421 : vector<16x128xf32>
    %425 = arith.addf %411, %424 : vector<16x128xf32>
    %426 = vector.extract_strided_slice %2 {offsets = [0, 62], sizes = [16, 1], strides = [1, 1]} : vector<16x96xf32> to vector<16x1xf32>
    %427 = vector.broadcast %426 : vector<16x1xf32> to vector<16x128xf32>
    %428 = arith.mulf %427, %421 : vector<16x128xf32>
    %429 = arith.addf %415, %428 : vector<16x128xf32>
    %430 = vector.extract_strided_slice %2 {offsets = [0, 94], sizes = [16, 1], strides = [1, 1]} : vector<16x96xf32> to vector<16x1xf32>
    %431 = vector.broadcast %430 : vector<16x1xf32> to vector<16x128xf32>
    %432 = arith.mulf %431, %421 : vector<16x128xf32>
    %433 = arith.addf %419, %432 : vector<16x128xf32>
    %c0_66 = arith.constant 0 : index
    %c31 = arith.constant 31 : index
    %c0_67 = arith.constant 0 : index
    %434 = vector.load %arg4[%c0_66, %c31, %c0_67] : memref<16x32x128xf32, #tpu.memory_space<vmem>>, vector<16x1x128xf32>
    %435 = vector.shape_cast %434 : vector<16x1x128xf32> to vector<16x128xf32>
    %436 = vector.extract_strided_slice %2 {offsets = [0, 31], sizes = [16, 1], strides = [1, 1]} : vector<16x96xf32> to vector<16x1xf32>
    %437 = vector.broadcast %436 : vector<16x1xf32> to vector<16x128xf32>
    %438 = arith.mulf %437, %435 : vector<16x128xf32>
    %439 = arith.addf %425, %438 : vector<16x128xf32>
    %440 = vector.extract_strided_slice %2 {offsets = [0, 63], sizes = [16, 1], strides = [1, 1]} : vector<16x96xf32> to vector<16x1xf32>
    %441 = vector.broadcast %440 : vector<16x1xf32> to vector<16x128xf32>
    %442 = arith.mulf %441, %435 : vector<16x128xf32>
    %443 = arith.addf %429, %442 : vector<16x128xf32>
    %444 = vector.extract_strided_slice %2 {offsets = [0, 95], sizes = [16, 1], strides = [1, 1]} : vector<16x96xf32> to vector<16x1xf32>
    %445 = vector.broadcast %444 : vector<16x1xf32> to vector<16x128xf32>
    %446 = arith.mulf %445, %435 : vector<16x128xf32>
    %447 = arith.addf %433, %446 : vector<16x128xf32>
    %448 = tpu.iota {dimensions = array<i32: 1>} : vector<16x128xi32>
    %c0_68 = arith.constant 0 : index
    %c0_69 = arith.constant 0 : index
    %449 = vector.load %arg3[%c0_68, %c0_69] : memref<16x128xf32, #tpu.memory_space<vmem>>, vector<16x128xf32>
    %cst_70 = arith.constant 5.000000e-01 : f32
    %450 = vector.broadcast %cst_70 : f32 to vector<16x128xf32>
    %451 = arith.cmpf ogt, %449, %450 : vector<16x128xf32>
    %cst_71 = arith.constant -9.99999995E+11 : f32
    %452 = vector.broadcast %cst_71 : f32 to vector<16x128xf32>
    %453 = arith.select %451, %439, %452 : vector<16x128xi1>, vector<16x128xf32>
    %c127_i32 = arith.constant 127 : i32
    %454 = tpu.dynamic_rotate %449 by %c127_i32 dim 1 : vector<16x128xf32>, i32 -> vector<16x128xf32>
    %cst_72 = arith.constant 5.000000e-01 : f32
    %455 = vector.broadcast %cst_72 : f32 to vector<16x128xf32>
    %456 = arith.cmpf ogt, %454, %455 : vector<16x128xf32>
    %c127_i32_73 = arith.constant 127 : i32
    %457 = vector.broadcast %c127_i32_73 : i32 to vector<16x128xi32>
    %458 = arith.cmpi slt, %448, %457 : vector<16x128xi32>
    %459 = arith.andi %456, %458 : vector<16x128xi1>
    %cst_74 = arith.constant -9.99999995E+11 : f32
    %460 = vector.broadcast %cst_74 : f32 to vector<16x128xf32>
    %461 = arith.select %459, %443, %460 : vector<16x128xi1>, vector<16x128xf32>
    %c126_i32 = arith.constant 126 : i32
    %462 = tpu.dynamic_rotate %449 by %c126_i32 dim 1 : vector<16x128xf32>, i32 -> vector<16x128xf32>
    %cst_75 = arith.constant 5.000000e-01 : f32
    %463 = vector.broadcast %cst_75 : f32 to vector<16x128xf32>
    %464 = arith.cmpf ogt, %462, %463 : vector<16x128xf32>
    %c126_i32_76 = arith.constant 126 : i32
    %465 = vector.broadcast %c126_i32_76 : i32 to vector<16x128xi32>
    %466 = arith.cmpi slt, %448, %465 : vector<16x128xi32>
    %467 = arith.andi %464, %466 : vector<16x128xi1>
    %cst_77 = arith.constant -9.99999995E+11 : f32
    %468 = vector.broadcast %cst_77 : f32 to vector<16x128xf32>
    %469 = arith.select %467, %447, %468 : vector<16x128xi1>, vector<16x128xf32>
    %470 = arith.maximumf %453, %461 : vector<16x128xf32>
    %471 = arith.maximumf %470, %469 : vector<16x128xf32>
    %472 = arith.subf %453, %471 : vector<16x128xf32>
    %473 = math.exp %472 : vector<16x128xf32>
    %474 = arith.subf %461, %471 : vector<16x128xf32>
    %475 = math.exp %474 : vector<16x128xf32>
    %476 = arith.subf %469, %471 : vector<16x128xf32>
    %477 = math.exp %476 : vector<16x128xf32>
    %478 = arith.addf %473, %475 : vector<16x128xf32>
    %479 = arith.addf %478, %477 : vector<16x128xf32>
    %480 = tpu.reciprocal %479 {approx = true} : vector<16x128xf32> -> vector<16x128xf32>
    %481 = arith.mulf %479, %480 : vector<16x128xf32>
    %cst_78 = arith.constant 2.000000e+00 : f32
    %482 = vector.broadcast %cst_78 : f32 to vector<16x128xf32>
    %483 = arith.subf %482, %481 : vector<16x128xf32>
    %484 = arith.mulf %480, %483 : vector<16x128xf32>
    %c0_79 = arith.constant 0 : index
    %c0_80 = arith.constant 0 : index
    %485 = vector.load %arg2[%c0_79, %c0_80] : memref<16x128xf32, #tpu.memory_space<vmem>>, vector<16x128xf32>
    %486 = arith.mulf %485, %484 : vector<16x128xf32>
    %487 = arith.mulf %486, %473 : vector<16x128xf32>
    %488 = arith.mulf %486, %475 : vector<16x128xf32>
    %c1_i32 = arith.constant 1 : i32
    %489 = tpu.dynamic_rotate %488 by %c1_i32 dim 1 : vector<16x128xf32>, i32 -> vector<16x128xf32>
    %c1_i32_81 = arith.constant 1 : i32
    %490 = vector.broadcast %c1_i32_81 : i32 to vector<16x128xi32>
    %491 = arith.cmpi sge, %448, %490 : vector<16x128xi32>
    %cst_82 = arith.constant 0.000000e+00 : f32
    %492 = vector.broadcast %cst_82 : f32 to vector<16x128xf32>
    %493 = arith.select %491, %489, %492 : vector<16x128xi1>, vector<16x128xf32>
    %494 = arith.addf %487, %493 : vector<16x128xf32>
    %495 = arith.mulf %486, %477 : vector<16x128xf32>
    %c2_i32 = arith.constant 2 : i32
    %496 = tpu.dynamic_rotate %495 by %c2_i32 dim 1 : vector<16x128xf32>, i32 -> vector<16x128xf32>
    %c2_i32_83 = arith.constant 2 : i32
    %497 = vector.broadcast %c2_i32_83 : i32 to vector<16x128xi32>
    %498 = arith.cmpi sge, %448, %497 : vector<16x128xi32>
    %cst_84 = arith.constant 0.000000e+00 : f32
    %499 = vector.broadcast %cst_84 : f32 to vector<16x128xf32>
    %500 = arith.select %498, %496, %499 : vector<16x128xi1>, vector<16x128xf32>
    %501 = arith.addf %494, %500 : vector<16x128xf32>
    %c0_85 = arith.constant 0 : index
    %c0_86 = arith.constant 0 : index
    %502 = vector.load %arg6[%c0_85, %c0_86] : memref<16x128xf32, #tpu.memory_space<vmem>>, vector<16x128xf32>
    tpu.vector_store %arg6[%c0_85, %c0_86], %501 {strides = array<i32>} : memref<16x128xf32, #tpu.memory_space<vmem>>, vector<16x128xf32>,
    return
  }
  func.func @transform_0(%arg0: i32) -> (i32, i32) {
    %c0_i32 = arith.constant 0 : i32
    %c0_i32_0 = arith.constant 0 : i32
    return %arg0, %c0_i32 : i32, i32
  }
  func.func @transform_1(%arg0: i32) -> (i32, i32) {
    %c0_i32 = arith.constant 0 : i32
    %c0_i32_0 = arith.constant 0 : i32
    return %arg0, %c0_i32 : i32, i32
  }
  func.func @transform_2(%arg0: i32) -> (i32, i32) {
    %c0_i32 = arith.constant 0 : i32
    %c0_i32_0 = arith.constant 0 : i32
    return %arg0, %c0_i32 : i32, i32
  }
  func.func @transform_3(%arg0: i32) -> (i32, i32, i32) {
    %c0_i32 = arith.constant 0 : i32
    %c0_i32_0 = arith.constant 0 : i32
    %c0_i32_1 = arith.constant 0 : i32
    return %arg0, %c0_i32, %c0_i32_0 : i32, i32, i32
  }
  func.func @transform_4(%arg0: i32) -> (i32, i32) {
    %c0_i32 = arith.constant 0 : i32
    %c0_i32_0 = arith.constant 0 : i32
    %c0_i32_1 = arith.constant 0 : i32
    return %c0_i32, %c0_i32_0 : i32, i32
  }
  func.func @transform_5(%arg0: i32) -> (i32, i32) {
    %c0_i32 = arith.constant 0 : i32
    %c0_i32_0 = arith.constant 0 : i32
    return %arg0, %c0_i32 : i32, i32
  }
}

</mosaic_0001>

<bundles_post_ra>
// kernel: tpu_custom_call.1
= control target key start
LH: loop header
LB: loop body
LE: loop exit
PB: predicated region body
PF: predicated region fallthrough
CT: control target
= control target key end

     0   :  { %10 = vsyncpa [#allocation3], 0  ;;  %s6170_s0 = inlined_call_operand.hbm [shape: f32[16,32], index: 0, kind: input, shape index: {}]   ;;  %s6171_s1 = inlined_call_operand.hbm [shape: f32[16,128], index: 1, kind: input, shape index: {}]   ;;  %s6172_s2 = inlined_call_operand.hbm [shape: f32[16,128], index: 2, kind: input, shape index: {}]   ;;  %s6173_s3 = inlined_call_operand.hbm [shape: f32[16,32,128], index: 3, kind: input, shape index: {}]   ;;  %s6174_s4 = inlined_call_operand.hbm [shape: f32[32,96], index: 4, kind: input, shape index: {}]   ;;  %s6175_s5 = inlined_call_operand.hbm [shape: f32[16,128], index: 5, kind: output, shape index: {}]  }
   0x1   :  { %11 = vsyncpa [#allocation6], 0 }
   0x2   :  { %12 = vsyncpa [#allocation9], 0 }
   0x3   :  { %13 = vsyncpa [#allocation4], 0  ;;  %s3896_s18 = smov [#allocation5]   ;;  %s3897_s20 = smov [#allocation8]  }
   0x4   :  { %s31_s19 = sshll.u32 %s3896_s18, 4  ;;  %s55_s21 = sshll.u32 %s3897_s20, 4  ;;  %s32_s19 = int_to_ptr.vmem [resolvable:$true] %s31_s19  ;;  %s4034_s21 = int_to_ptr.vmem [resolvable:$true] %s55_s21 }
   0x5   :  { %s3756_s24 = scalar_lea.hbm %s6171_s1, 256 }
   0x6   :  { %p3757_p0 = scmp.ne.s32.totalorder %s6171_s1, %s3756_s24  ;;  %p3760_p1 = scmp.lt.u32.totalorder %s3756_s24, %s6171_s1 }
   0x8   :  { %p3762_p2 = pnand %p3760_p1, %p3757_p0 }
   0xa   :  { %3765 = shalt.err (!%p3762_p2)
}
   0xb   :  { %s3766_s29 = scalar_lea.vmem %s32_s19, 256  ;;  %p3771_p4 = scmp.lt.s32.totalorder %s32_s19, %s32_s19 }
   0xc   :  { %p3767_p3 = scmp.ne.s32.totalorder %s32_s19, %s3766_s29  ;;  %p3772_p5 = scmp.lt.s32.totalorder %s3766_s29, %s3766_s29 }
   0xe   :  { %p3773_p6 = por %p3772_p5, %p3771_p4 }
  0x10   :  { %p3774_p7 = pnand %p3773_p6, %p3767_p3 }
  0x12   :  { %3777 = shalt.err (!%p3774_p7)
}
  0x13   :  { %s3898_s30 = smov 128   ;;  %s3899_s6 = smov 8  }
  0x14   :  { %37 = dma.hbm_to_vmem [thread:$0]  %s6171_s1, 256, %s32_s19, [#allocation6], %s3898_s30, %s3898_s30, %s3899_s6  }
  0x15   :  { %s3778_s11 = scalar_lea.hbm %s6173_s3, 8192 }
  0x16   :  { %p3779_p8 = scmp.ne.s32.totalorder %s6173_s3, %s3778_s11  ;;  %p3782_p9 = scmp.lt.u32.totalorder %s3778_s11, %s6173_s3 }
  0x18   :  { %p3784_p10 = pnand %p3782_p9, %p3779_p8 }
  0x1a   :  { %3787 = shalt.err (!%p3784_p10)
}
  0x1b   :  { %s3788_s16 = scalar_lea.vmem %s4034_s21, 8192  ;;  %p3793_p12 = scmp.lt.s32.totalorder %s4034_s21, %s4034_s21 }
  0x1c   :  { %p3789_p11 = scmp.ne.s32.totalorder %s4034_s21, %s3788_s16  ;;  %p3794_p13 = scmp.lt.s32.totalorder %s3788_s16, %s3788_s16 }
  0x1e   :  { %p3795_p0 = por %p3794_p13, %p3793_p12 }
  0x20   :  { %p3796_p1 = pnand %p3795_p0, %p3789_p11 }
  0x22   :  { %3799 = shalt.err (!%p3796_p1)
}
  0x23   :  { %61 = dma.hbm_to_vmem [thread:$0]  %s6173_s3, 8192, %s4034_s21, [#allocation9], %s3898_s30, %s3898_s30, %s3899_s6  }
  0x24   :  { %s3900_s18 = smov [#allocation2]   ;;  %s3901_s20 = smov [#allocation7]  }
  0x25   :  { %s19_s19 = sshll.u32 %s3900_s18, 4  ;;  %s43_s22 = sshll.u32 %s3901_s20, 4  ;;  %s20_s19 = int_to_ptr.vmem [resolvable:$true] %s19_s19  ;;  %s4071_s22 = int_to_ptr.vmem [resolvable:$true] %s43_s22 }
  0x26   :  { %s3800_s25 = scalar_lea.hbm %s6170_s0, 256 }
  0x27   :  { %p3801_p2 = scmp.ne.s32.totalorder %s6170_s0, %s3800_s25  ;;  %p3804_p3 = scmp.lt.u32.totalorder %s3800_s25, %s6170_s0 }
  0x29   :  { %p3806_p4 = pnand %p3804_p3, %p3801_p2 }
  0x2b   :  { %3809 = shalt.err (!%p3806_p4)
}
  0x2c   :  { %s3810_s3 = scalar_lea.vmem %s20_s19, 256  ;;  %p3815_p6 = scmp.lt.s32.totalorder %s20_s19, %s20_s19 }
  0x2d   :  { %p3811_p5 = scmp.ne.s32.totalorder %s20_s19, %s3810_s3  ;;  %p3816_p7 = scmp.lt.s32.totalorder %s3810_s3, %s3810_s3 }
  0x2f   :  { %p3817_p8 = por %p3816_p7, %p3815_p6 }
  0x31   :  { %p3818_p9 = pnand %p3817_p8, %p3811_p5 }
  0x33   :  { %3821 = shalt.err (!%p3818_p9)
}
  0x34   :  { %25 = dma.hbm_to_vmem [thread:$0]  %s6170_s0, 256, %s20_s19, [#allocation3], %s3898_s30, %s3898_s30, %s3899_s6  }
  0x35   :  { %s3822_s10 = scalar_lea.hbm %s6172_s2, 256 }
  0x36   :  { %p3823_p10 = scmp.ne.s32.totalorder %s6172_s2, %s3822_s10  ;;  %p3826_p11 = scmp.lt.u32.totalorder %s3822_s10, %s6172_s2 }
  0x38   :  { %p3828_p12 = pnand %p3826_p11, %p3823_p10 }
  0x3a   :  { %3831 = shalt.err (!%p3828_p12)
}
  0x3b   :  { %s3832_s15 = scalar_lea.vmem %s4071_s22, 256  ;;  %p3837_p0 = scmp.lt.s32.totalorder %s4071_s22, %s4071_s22 }
  0x3c   :  { %p3833_p13 = scmp.ne.s32.totalorder %s4071_s22, %s3832_s15  ;;  %p3838_p1 = scmp.lt.s32.totalorder %s3832_s15, %s3832_s15 }
  0x3e   :  { %p3839_p2 = por %p3838_p1, %p3837_p0 }
  0x40   :  { %p3840_p3 = pnand %p3839_p2, %p3833_p13 }
  0x42   :  { %3843 = shalt.err (!%p3840_p3)
}
  0x43   :  { %49 = dma.hbm_to_vmem [thread:$0]  %s6172_s2, 256, %s4071_s22, [#allocation6], %s3898_s30, %s3898_s30, %s3899_s6  }
  0x44   :  { %s3902_s1 = smov [#allocation10]   ;;  %s3844_s20 = scalar_lea.hbm %s6174_s4, 512 }
  0x45   :  { %s67_s17 = sshll.u32 %s3902_s1, 4  ;;  %p3845_p4 = scmp.ne.s32.totalorder %s6174_s4, %s3844_s20  ;;  %s68_s17 = int_to_ptr.vmem [resolvable:$true] %s67_s17 }
  0x46   :  { %p3848_p5 = scmp.lt.u32.totalorder %s3844_s20, %s6174_s4 }
  0x48   :  { %p3850_p6 = pnand %p3848_p5, %p3845_p4 }
  0x4a   :  { %3853 = shalt.err (!%p3850_p6)
}
  0x4b   :  { %s3854_s27 = scalar_lea.vmem %s68_s17, 512  ;;  %p3859_p8 = scmp.lt.s32.totalorder %s68_s17, %s68_s17 }
  0x4c   :  { %p3855_p7 = scmp.ne.s32.totalorder %s68_s17, %s3854_s27  ;;  %p3860_p9 = scmp.lt.s32.totalorder %s3854_s27, %s3854_s27 }
  0x4e   :  { %p3861_p10 = por %p3860_p9, %p3859_p8 }
  0x50   :  { %p3862_p11 = pnand %p3861_p10, %p3855_p7 }
  0x52   :  { %3865 = shalt.err (!%p3862_p11)
}
  0x53   :  { %73 = dma.hbm_to_vmem [thread:$0]  %s6174_s4, 512, %s68_s17, [#allocation9], %s3898_s30, %s3898_s30, %s3899_s6  }
  0x54   :  { %3888 = dma.done.wait [#allocation3], 256  }
  0x55   :  { %3889 = vsyncadd [#allocation3], 4294967040 }
  0x56   :  { %3890 = dma.done.wait [#allocation6], 512  }
  0x57   :  { %3891 = vsyncadd [#allocation6], 4294966784 }
  0x58   :  { %3892 = dma.done.wait [#allocation9], 8704  }
  0x59   :  { %3893 = vsyncadd [#allocation9], 4294958592  ;;  %v3903_v0 = vmov 32   ;;  %v3904_v1 = vmov 0   ;;  %vm95_vm0 = vcmask 261120   ;;  %v91_v2 = vld [vmem:[#allocation10] sm:$0xff] }
  0x5a   :  { %3565 = vset.pattern.permute.xlu1 %v3903_v0  ;;  %3564 = vset.pattern.permute.xlu0 %v3904_v1  ;;  %v92_v3 = vld [vmem:[#allocation10 + $0x8] sm:$0xff]  ;;  %v93_v4 = vld [vmem:[#allocation10 + $0x10] sm:$0xff]  ;;  %v94_v6 = vld [vmem:[#allocation10 + $0x18] sm:$0xff]  ;;  %v3905_v12 = vmov 64   ;;  %v3906_v13 = vmov 1   ;;  %v3907_v14 = vmov 33  }
  0x5b   :  { %v3448_v5 = vpack.c.bf16 %v92_v3, %v91_v2  ;;  %v89_v7 = vld [vmem:[#allocation2] sm:$0xff]  ;;  %v3452_v8 = vpack.c.bf16 %v94_v6, %v93_v4  ;;  %v90_v9 = vld [vmem:[#allocation2 + $0x8] sm:$0xff]  ;;  %v3908_v15 = vmov 2   ;;  %v3909_v16 = vmov 65   ;;  %v186_v56 = vld [vmem:[#allocation8 + $0x120] sm:$0x1] }
  0x5c   :  { %3445 = vmatprep.mubr.msk.f32.mxu0 %vm95_vm0, %v89_v7  ;;  %v6200_v17 = vmov 3   ;;  %v6202_v18 = vmov 34   ;;  %v6197_v19 = vmov 4   ;;  %v3913_v20 = vmov 66   ;;  %v187_v58 = vld [vmem:[#allocation8 + $0x140] sm:$0x1] }
  0x5d   :  { %3449 = vmatprep.subr.bf16.mxu0 %v3448_v5  ;;  %v6195_v21 = vmov 5   ;;  %v6198_v22 = vmov 35   ;;  %v6193_v23 = vmov 6   ;;  %v3917_v24 = vmov 67   ;;  %v4227_v59 = vld [vmem:[#allocation8 + $0x160] sm:$0x1] }
  0x5e   :  { %3451 = vmatpush3.bf16.msra.mxu0 %v3448_v5  ;;  %v6191_v25 = vmov 7   ;;  %v6196_v26 = vmov 36   ;;  %v6189_v27 = vmov 8   ;;  %v3921_v28 = vmov 68   ;;  %v4231_v60 = vld [vmem:[#allocation8 + $0x180] sm:$0x1] }
  0x5f   :  { %3453 = vmatprep.subr.bf16.mxu0 %v3452_v8  ;;  %v6187_v29 = vmov 9   ;;  %v6194_v30 = vmov 37   ;;  %v6185_v31 = vmov 10   ;;  %v3925_v32 = vmov 69   ;;  %v4233_v61 = vld [vmem:[#allocation8 + $0x1a0] sm:$0x1] }
  0x60   :  { %v6183_v33 = vmov 11   ;;  %v6192_v34 = vmov 38   ;;  %v6181_v35 = vmov 12   ;;  %v3929_v36 = vmov 70   ;;  %v4235_v62 = vld [vmem:[#allocation8 + $0x1c0] sm:$0x1] }
  0x61   :  { %v6179_v37 = vmov 13   ;;  %v6190_v38 = vmov 39   ;;  %v6177_v39 = vmov 14   ;;  %v3933_v40 = vmov 71   ;;  %v185_v3 = vld [vmem:[#allocation8 + $0x100] sm:$0x1] }
  0x62   :  { %3455 = vmatpush3.bf16.msra.mxu0 %v3452_v8  ;;  %v6188_v41 = vmov 40   ;;  %v3935_v42 = vmov 72   ;;  %v6186_v43 = vmov 41   ;;  %v3937_v44 = vmov 73   ;;  %v4242_v6 = vld [vmem:[#allocation8 + $0x1e0] sm:$0x1] }
  0x63   :  { %v6184_v45 = vmov 42   ;;  %v3939_v46 = vmov 74   ;;  %v6182_v47 = vmov 43   ;;  %v3941_v48 = vmov 75   ;;  %v4245_v8 = vld [vmem:[#allocation8 + $0x121] sm:$0x1] }
  0x64   :  { %v6180_v49 = vmov 44   ;;  %v3943_v50 = vmov 76   ;;  %v6178_v53 = vmov 45   ;;  %v3945_v57 = vmov 77   ;;  %s3993_s4 = smov 127   ;;  %s3994_s28 = smov 126  }
  0x65   :  { %3446 = vmatmul.mubr.msk.f32.vlgmr.msra.gmra.mrb[0].mxu0 %vm95_vm0, %v90_v9  ;;  %v240_v63 = vrot.slane %v186_v56, 7  ;;  %vm220_vm1 = vcmask 1041409   ;;  %vm223_vm2 = vcmask 1042434   ;;  %v242_v4 = vrot.slane %v187_v58, 6  ;;  %s4001_s29 = smov 1   ;;  %s4002_s3 = smov 2  }
  0x66   :  { %v244_v5 = vrot.slane %v4227_v59, 5  ;;  %vm226_vm3 = vcmask 1043459   ;;  %v246_v7 = vrot.slane %v4231_v60, 4  ;;  %v6176_v9 = vmov 46   ;;  %v4340_v60 = vld [vmem:[#allocation8 + $0x1a4] sm:$0x1] }
  0x67   :  { %vm229_vm4 = vcmask 1044484   ;;  %v332_v58 = vrot.slane %v4245_v8, 7  ;;  %vm232_vm5 = vcmask 1045509   ;;  %vm235_vm6 = vcmask 1046534   ;;  %s4003_s21 = smov [#allocation11]  }
  0x68   :  { %vm238_vm7 = vcmask 1047559   ;;  %s3415_s7 = sshll.u32 %s4003_s21, 4  ;;  %s3416_s7 = int_to_ptr.vmem [resolvable:$true] %s3415_s7 }
  0x69   :  { %s3866_s8 = scalar_lea.vmem %s3416_s7, 256  ;;  %p3871_p13 = scmp.lt.s32.totalorder %s3416_s7, %s3416_s7 }
  0x6a   :  { %p3867_p12 = scmp.ne.s32.totalorder %s3416_s7, %s3866_s8  ;;  %p3872_p0 = scmp.lt.s32.totalorder %s3866_s8, %s3866_s8 }
  0x6c   :  { %p3873_p1 = por %p3872_p0, %p3871_p13 }
  0x6e   :  { %p3874_p2 = pnand %p3873_p1, %p3867_p12 }
 0x138   :  { %v4125_v10 = vpop.f32.mrb[0].mxu0 }
 0x139   :  { %263 = vperm.xlu1 %3565, %v4125_v10   ;;  %200 = vperm.xlu0 %3564, %v4125_v10   ;;  %v4129_v11 = vpop.f32.mrb[1].mxu0 }
 0x13d   :  { %3566 = vset.pattern.permute.xlu1 %v3905_v12  ;;  %3567 = vset.pattern.permute.xlu0 %v3906_v13 }
 0x13e   :  { %273 = vperm.xlu1 %3566, %v4125_v10   ;;  %299 = vperm.xlu0 %3567, %v4125_v10  }
 0x142   :  { %3568 = vset.pattern.permute.xlu1 %v3907_v14  ;;  %3570 = vset.pattern.permute.xlu0 %v3908_v15 }
 0x143   :  { %357 = vperm.xlu1 %3568, %v4125_v10   ;;  %397 = vperm.xlu0 %3570, %v4125_v10  }
 0x147   :  { %3569 = vset.pattern.permute.xlu1 %v3909_v16  ;;  %3573 = vset.pattern.permute.xlu0 %v6200_v17 }
 0x148   :  { %369 = vperm.xlu1 %3569, %v4125_v10   ;;  %495 = vperm.xlu0 %3573, %v4125_v10  }
 0x14c   :  { %3571 = vset.pattern.permute.xlu1 %v6202_v18  ;;  %3576 = vset.pattern.permute.xlu0 %v6197_v19  ;;  %v4376_v18 = vld [vmem:[#allocation8 + $0x1e5] sm:$0x1] }
 0x14d   :  { %455 = vperm.xlu1 %3571, %v4125_v10   ;;  %593 = vperm.xlu0 %3576, %v4125_v10  }
 0x151   :  { %3572 = vset.pattern.permute.xlu1 %v3913_v20  ;;  %3579 = vset.pattern.permute.xlu0 %v6195_v21  ;;  %v6199_v21 = vmov 78  }
 0x152   :  { %467 = vperm.xlu1 %3572, %v4125_v10   ;;  %691 = vperm.xlu0 %3579, %v4125_v10  }
 0x156   :  { %3574 = vset.pattern.permute.xlu1 %v6198_v22  ;;  %3582 = vset.pattern.permute.xlu0 %v6193_v23  ;;  %v4316_v22 = vld [vmem:[#allocation8 + $0x1e3] sm:$0x1] }
 0x157   :  { %553 = vperm.xlu1 %3574, %v4125_v10   ;;  %789 = vperm.xlu0 %3582, %v4125_v10  }
 0x15b   :  { %3575 = vset.pattern.permute.xlu1 %v3917_v24  ;;  %3585 = vset.pattern.permute.xlu0 %v6191_v25  ;;  %v4303_v25 = vld [vmem:[#allocation8 + $0x183] sm:$0x1] }
 0x15c   :  { %565 = vperm.xlu1 %3575, %v4125_v10   ;;  %887 = vperm.xlu0 %3585, %v4125_v10  }
 0x160   :  { %3577 = vset.pattern.permute.xlu1 %v6196_v26  ;;  %3588 = vset.pattern.permute.xlu0 %v6189_v27 }
 0x161   :  { %651 = vperm.xlu1 %3577, %v4125_v10   ;;  %985 = vperm.xlu0 %3588, %v4125_v10  }
 0x165   :  { %3578 = vset.pattern.permute.xlu1 %v3921_v28  ;;  %3591 = vset.pattern.permute.xlu0 %v6187_v29  ;;  %v778_v29 = vld [vmem:[#allocation8 + $0x146] sm:$0x1] }
 0x166   :  { %663 = vperm.xlu1 %3578, %v4125_v10   ;;  %1083 = vperm.xlu0 %3591, %v4125_v10  }
 0x16a   :  { %3580 = vset.pattern.permute.xlu1 %v6194_v30  ;;  %3594 = vset.pattern.permute.xlu0 %v6185_v31  ;;  %v4290_v31 = vld [vmem:[#allocation8 + $0x1c2] sm:$0x1]  ;;  %v581_v30 = vld [vmem:[#allocation8 + $0x124] sm:$0x1] }
 0x16b   :  { %749 = vperm.xlu1 %3580, %v4125_v10   ;;  %1181 = vperm.xlu0 %3594, %v4125_v10  }
 0x16f   :  { %3581 = vset.pattern.permute.xlu1 %v3925_v32  ;;  %3597 = vset.pattern.permute.xlu0 %v6183_v33 }
 0x170   :  { %761 = vperm.xlu1 %3581, %v4125_v10   ;;  %1279 = vperm.xlu0 %3597, %v4125_v10  }
 0x174   :  { %3583 = vset.pattern.permute.xlu1 %v6192_v34  ;;  %3600 = vset.pattern.permute.xlu0 %v6181_v35  ;;  %v384_v35 = vld [vmem:[#allocation8 + $0x102] sm:$0x1]  ;;  %v4309_v34 = vld [vmem:[#allocation8 + $0x1c3] sm:$0x1] }
 0x175   :  { %847 = vperm.xlu1 %3583, %v4125_v10   ;;  %1377 = vperm.xlu0 %3600, %v4125_v10  }
 0x179   :  { %3584 = vset.pattern.permute.xlu1 %v3929_v36  ;;  %3603 = vset.pattern.permute.xlu0 %v6179_v37  ;;  %v4281_v37 = vld [vmem:[#allocation8 + $0x1a2] sm:$0x1] }
 0x17a   :  { %859 = vperm.xlu1 %3584, %v4125_v10   ;;  %1475 = vperm.xlu0 %3603, %v4125_v10  }
 0x17e   :  { %3586 = vset.pattern.permute.xlu1 %v6190_v38  ;;  %3606 = vset.pattern.permute.xlu0 %v6177_v39  ;;  %v4275_v39 = vld [vmem:[#allocation8 + $0x162] sm:$0x1]  ;;  %v4301_v38 = vld [vmem:[#allocation8 + $0x163] sm:$0x1] }
 0x17f   :  { %945 = vperm.xlu1 %3586, %v4125_v10   ;;  %1573 = vperm.xlu0 %3606, %v4125_v10  }
 0x183   :  { %3587 = vset.pattern.permute.xlu1 %v3933_v40  ;;  %3608 = vset.pattern.permute.xlu0 %v3904_v1 }
 0x184   :  { %957 = vperm.xlu1 %3587, %v4125_v10   ;;  %195 = vperm.xlu0 %3608, %v4129_v11  }
 0x188   :  { %3589 = vset.pattern.permute.xlu1 %v6188_v41  ;;  %3610 = vset.pattern.permute.xlu0 %v3905_v12  ;;  %v248_v12 = vrot.slane %v4233_v61, 3  ;;  %v4338_v41 = vld [vmem:[#allocation8 + $0x184] sm:$0x1] }
 0x189   :  { %1043 = vperm.xlu1 %3589, %v4125_v10   ;;  %269 = vperm.xlu0 %3610, %v4129_v11  }
 0x18d   :  { %3590 = vset.pattern.permute.xlu1 %v3935_v42  ;;  %3613 = vset.pattern.permute.xlu0 %v3909_v16  ;;  %v250_v16 = vrot.slane %v4235_v62, 2  ;;  %v6300_v62 = vrot.slane %v4303_v25, 4 }
 0x18e   :  { %1055 = vperm.xlu1 %3590, %v4125_v10   ;;  %365 = vperm.xlu0 %3613, %v4129_v11  }
 0x192   :  { %3592 = vset.pattern.permute.xlu1 %v6186_v43  ;;  %3616 = vset.pattern.permute.xlu0 %v3913_v20  ;;  %v4250_v20 = vld [vmem:[#allocation8 + $0x141] sm:$0x1]  ;;  %v4293_v43 = vld [vmem:[#allocation8 + $0x1e2] sm:$0x1] }
 0x193   :  { %1141 = vperm.xlu1 %3592, %v4125_v10   ;;  %463 = vperm.xlu0 %3616, %v4129_v11   ;;  %v334_v59 = vrot.slane %v4250_v20, 6  ;;  %v626_v20 = vrot.slane %v581_v30, 7  ;;  %v4344_v30 = vld [vmem:[#allocation8 + $0x1c4] sm:$0x1] }
 0x197   :  { %3593 = vset.pattern.permute.xlu1 %v3937_v44  ;;  %3619 = vset.pattern.permute.xlu0 %v3917_v24  ;;  %v4252_v24 = vld [vmem:[#allocation8 + $0x161] sm:$0x1] }
 0x198   :  { %1153 = vperm.xlu1 %3593, %v4125_v10   ;;  %561 = vperm.xlu0 %3619, %v4129_v11  }
 0x19c   :  { %3595 = vset.pattern.permute.xlu1 %v6184_v45  ;;  %3622 = vset.pattern.permute.xlu0 %v3921_v28  ;;  %v4256_v28 = vld [vmem:[#allocation8 + $0x181] sm:$0x1] }
 0x19d   :  { %1239 = vperm.xlu1 %3595, %v4125_v10   ;;  %659 = vperm.xlu0 %3622, %v4129_v11  }
 0x1a1   :  { %3596 = vset.pattern.permute.xlu1 %v3939_v46  ;;  %3625 = vset.pattern.permute.xlu0 %v3925_v32  ;;  %v4258_v32 = vld [vmem:[#allocation8 + $0x1a1] sm:$0x1] }
 0x1a2   :  { %1251 = vperm.xlu1 %3596, %v4125_v10   ;;  %757 = vperm.xlu0 %3625, %v4129_v11  }
 0x1a6   :  { %3598 = vset.pattern.permute.xlu1 %v6182_v47  ;;  %3628 = vset.pattern.permute.xlu0 %v3929_v36  ;;  %v4260_v36 = vld [vmem:[#allocation8 + $0x1c1] sm:$0x1] }
 0x1a7   :  { %1337 = vperm.xlu1 %3598, %v4125_v10   ;;  %855 = vperm.xlu0 %3628, %v4129_v11  }
 0x1ab   :  { %3599 = vset.pattern.permute.xlu1 %v3941_v48  ;;  %3631 = vset.pattern.permute.xlu0 %v3933_v40  ;;  %v241_v40 = vsel %vm220_vm1, %v240_v63, %v185_v3  ;;  %v4348_v3 = vld [vmem:[#allocation8 + $0x125] sm:$0x1]  ;;  %v776_v63 = vld [vmem:[#allocation8 + $0x106] sm:$0x1] }
 0x1ac   :  { %1349 = vperm.xlu1 %3599, %v4125_v10   ;;  %953 = vperm.xlu0 %3631, %v4129_v11   ;;  %v243_v45 = vsel %vm223_vm2, %v242_v4, %v241_v40  ;;  %v4305_v4 = vld [vmem:[#allocation8 + $0x1a3] sm:$0x1] }
 0x1b0   :  { %3601 = vset.pattern.permute.xlu1 %v6180_v49  ;;  %3634 = vset.pattern.permute.xlu0 %v3935_v42  ;;  %v4263_v42 = vld [vmem:[#allocation8 + $0x1e1] sm:$0x1] }
 0x1b1   :  { %1435 = vperm.xlu1 %3601, %v4125_v10   ;;  %1051 = vperm.xlu0 %3634, %v4129_v11   ;;  %v286_v49 = vld [vmem:[#allocation8 + $0x101] sm:$0x1] }
 0x1b2   :  { %v333_v26 = vsel %vm220_vm1, %v332_v58, %v286_v49  ;;  %v580_v58 = vld [vmem:[#allocation8 + $0x104] sm:$0x1] }
 0x1b5   :  { %3602 = vset.pattern.permute.xlu1 %v3943_v50  ;;  %3637 = vset.pattern.permute.xlu0 %v3937_v44  ;;  %v385_v44 = vld [vmem:[#allocation8 + $0x122] sm:$0x1] }
 0x1b6   :  { %1447 = vperm.xlu1 %3602, %v4125_v10   ;;  %1149 = vperm.xlu0 %3637, %v4129_v11   ;;  %v430_v47 = vrot.slane %v385_v44, 7  ;;  %v484_v44 = vld [vmem:[#allocation8 + $0x143] sm:$0x1] }
 0x1b8   :  { %v4216_v51 = vpop.permute.xlu1 %263  ;;  %v4218_v52 = vpop.permute.xlu0 %200  ;;  %v431_v19 = vsel %vm220_vm1, %v430_v47, %v384_v35  ;;  %v4346_v47 = vld [vmem:[#allocation8 + $0x1e4] sm:$0x1] }
 0x1b9   :  { %6290 = vst [vmem:[#allocation16_spill] sm:$0xff] %v4216_v51 }
 0x1ba   :  { %3604 = vset.pattern.permute.xlu1 %v6178_v53  ;;  %3640 = vset.pattern.permute.xlu0 %v3939_v46  ;;  %v4265_v46 = vld [vmem:[#allocation8 + $0x142] sm:$0x1] }
 0x1bb   :  { %1533 = vperm.xlu1 %3604, %v4125_v10   ;;  %1247 = vperm.xlu0 %3640, %v4129_v11   ;;  %v4279_v53 = vld [vmem:[#allocation8 + $0x182] sm:$0x1]  ;;  %v432_v33 = vrot.slane %v4265_v46, 6 }
 0x1bd   :  { %v4223_v54 = vpop.permute.xlu1 %273  ;;  %v4225_v55 = vpop.permute.xlu0 %299  ;;  %v433_v17 = vsel %vm223_vm2, %v432_v33, %v431_v19  ;;  %v6201_v19 = vmov 15   ;;  %v4355_v33 = vld [vmem:[#allocation8 + $0x145] sm:$0x1] }
 0x1be   :  { %6291 = vst [vmem:[#allocation17_spill] sm:$0xff] %v4223_v54  ;;  %v4529_v54 = vld [vmem:[#allocation8 + $0x1e9] sm:$0x1] }
 0x1bf   :  { %3605 = vset.pattern.permute.xlu1 %v3945_v57  ;;  %3643 = vset.pattern.permute.xlu0 %v3941_v48 }
 0x1c0   :  { %1545 = vperm.xlu1 %3605, %v4125_v10   ;;  %1345 = vperm.xlu0 %3643, %v4129_v11  }
 0x1c2   :  { %v4237_v1 = vpop.permute.xlu1 %357  ;;  %v4239_v2 = vpop.permute.xlu0 %397 }
 0x1c3   :  { %6292 = vst [vmem:[#allocation18_spill] sm:$0xff] %v4237_v1  ;;  %v1365_v1 = vld [vmem:[#allocation8 + $0x12c] sm:$0x1] }
 0x1c4   :  { %3607 = vset.pattern.permute.xlu1 %v6176_v9  ;;  %3646 = vset.pattern.permute.xlu0 %v3943_v50  ;;  %v336_v9 = vrot.slane %v4252_v24, 5 }
 0x1c5   :  { %1631 = vperm.xlu1 %3607, %v4125_v10   ;;  %1443 = vperm.xlu0 %3646, %v4129_v11  }
 0x1c7   :  { %v4267_v48 = vpop.permute.xlu1 %369  ;;  %v4269_v50 = vpop.permute.xlu0 %495 }
 0x1c8   :  { %6293 = vst [vmem:[#allocation19_spill] sm:$0xff] %v4267_v48 }
 0x1c9   :  { %3609 = vset.pattern.permute.xlu1 %v3903_v0  ;;  %3649 = vset.pattern.permute.xlu0 %v3945_v57  ;;  %v434_v0 = vrot.slane %v4275_v39, 5  ;;  %v483_v57 = vld [vmem:[#allocation8 + $0x123] sm:$0x1]  ;;  %v245_v39 = vsel %vm226_vm3, %v244_v5, %v243_v45  ;;  %v530_v45 = vrot.slane %v484_v44, 6  ;;  %v4318_v5 = vld [vmem:[#allocation8 + $0x144] sm:$0x1] }
 0x1ca   :  { %259 = vperm.xlu1 %3609, %v4129_v11   ;;  %1541 = vperm.xlu0 %3649, %v4129_v11   ;;  %v528_v23 = vrot.slane %v483_v57, 7  ;;  %v532_v57 = vrot.slane %v4301_v38, 5  ;;  %v247_v35 = vsel %vm229_vm4, %v246_v7, %v245_v39  ;;  %v4329_v44 = vld [vmem:[#allocation8 + $0x164] sm:$0x1]  ;;  %v335_v38 = vsel %vm223_vm2, %v334_v59, %v333_v26  ;;  %v4357_v59 = vld [vmem:[#allocation8 + $0x165] sm:$0x1] }
 0x1cb   :  { %v628_v7 = vrot.slane %v4318_v5, 6  ;;  %v249_v26 = vsel %vm232_vm5, %v248_v12, %v247_v35  ;;  %v435_v5 = vsel %vm226_vm3, %v434_v0, %v433_v17  ;;  %v630_v61 = vrot.slane %v4329_v44, 5  ;;  %v4370_v12 = vld [vmem:[#allocation8 + $0x1c5] sm:$0x1] }
 0x1cc   :  { %v4297_v27 = vpop.permute.xlu1 %455  ;;  %v4299_v46 = vpop.permute.xlu0 %593  ;;  %v6203_v0 = vmov 79  }
 0x1cd   :  { %6294 = vst [vmem:[#allocation20_spill] sm:$0xff] %v4297_v27  ;;  %v4414_v27 = vld [vmem:[#allocation8 + $0x167] sm:$0x1] }
 0x1ce   :  { %3611 = vset.pattern.permute.xlu1 %v3906_v13  ;;  %3652 = vset.pattern.permute.xlu0 %v6199_v21  ;;  %v482_v13 = vld [vmem:[#allocation8 + $0x103] sm:$0x1]  ;;  %v4399_v21 = vld [vmem:[#allocation8 + $0x186] sm:$0x1] }
 0x1cf   :  { %295 = vperm.xlu1 %3611, %v4129_v11   ;;  %1639 = vperm.xlu0 %3652, %v4129_v11   ;;  %v529_v39 = vsel %vm220_vm1, %v528_v23, %v482_v13  ;;  %v4359_v23 = vld [vmem:[#allocation8 + $0x185] sm:$0x1] }
 0x1d0   :  { %v4368_v13 = vld [vmem:[#allocation8 + $0x1a5] sm:$0x1]  ;;  %v531_v35 = vsel %vm223_vm2, %v530_v45, %v529_v39  ;;  %v726_v45 = vrot.slane %v4355_v33, 6  ;;  %v4395_v39 = vld [vmem:[#allocation8 + $0x166] sm:$0x1] }
 0x1d1   :  { %v4331_v40 = vpop.permute.xlu1 %467  ;;  %v4333_v8 = vpop.permute.xlu0 %691 }
 0x1d2   :  { %6295 = vst [vmem:[#allocation21_spill] sm:$0xff] %v4331_v40  ;;  %v4430_v40 = vld [vmem:[#allocation8 + $0x187] sm:$0x1] }
 0x1d3   :  { %3612 = vset.pattern.permute.xlu1 %v3907_v14  ;;  %3655 = vset.pattern.permute.xlu0 %v6201_v19  ;;  %v337_v14 = vsel %vm226_vm3, %v336_v9, %v335_v38  ;;  %v627_v19 = vsel %vm220_vm1, %v626_v20, %v580_v58  ;;  %v777_v9 = vld [vmem:[#allocation8 + $0x126] sm:$0x1]  ;;  %v724_v38 = vrot.slane %v4348_v3, 7  ;;  %v875_v20 = vld [vmem:[#allocation8 + $0x127] sm:$0x1]  ;;  %v533_v3 = vsel %vm226_vm3, %v532_v57, %v531_v35 }
 0x1d4   :  { %353 = vperm.xlu1 %3612, %v4129_v11   ;;  %1671 = vperm.xlu0 %3655, %v4125_v10   ;;  %v678_v58 = vld [vmem:[#allocation8 + $0x105] sm:$0x1]  ;;  %v629_v33 = vsel %vm223_vm2, %v628_v7, %v627_v19  ;;  %v822_v56 = vrot.slane %v777_v9, 7  ;;  %v920_v49 = vrot.slane %v875_v20, 7  ;;  %v251_v57 = vsel %vm235_vm6, %v250_v16, %v249_v26  ;;  %v4422_v26 = vld [vmem:[#allocation8 + $0x1c6] sm:$0x1] }
 0x1d5   :  { %v6297_v7 = vrot.slane %v4256_v28, 4  ;;  %v6298_v35 = vrot.slane %v4279_v53, 4  ;;  %v535_v16 = vsel %vm229_vm4, %v6300_v62, %v533_v3  ;;  %v631_v28 = vsel %vm226_vm3, %v630_v61, %v629_v33 }
 0x1d6   :  { %v4378_v24 = vpop.permute.xlu1 %553  ;;  %v4380_v17 = vpop.permute.xlu0 %789  ;;  %v824_v53 = vrot.slane %v778_v29, 6  ;;  %v6301_v3 = vmov 34   ;;  %v6204_v61 = vmov 16   ;;  %v6302_v29 = vrot.slane %v4242_v6, 1 }
 0x1d7   :  { %6296 = vst [vmem:[#allocation22_spill] sm:$0xff] %v4378_v24  ;;  %v339_v19 = vsel %vm229_vm4, %v6297_v7, %v337_v14  ;;  %v437_v9 = vsel %vm229_vm4, %v6298_v35, %v435_v5  ;;  %v874_v24 = vld [vmem:[#allocation8 + $0x107] sm:$0x1]  ;;  %v826_v14 = vrot.slane %v4395_v39, 5  ;;  %v973_v5 = vld [vmem:[#allocation8 + $0x128] sm:$0x1]  ;;  %v725_v7 = vsel %vm220_vm1, %v724_v38, %v678_v58 }
 0x1d8   :  { %3614 = vset.pattern.permute.xlu1 %v3908_v15  ;;  %3657 = vset.pattern.permute.xlu0 %v6203_v0  ;;  %v876_v15 = vld [vmem:[#allocation8 + $0x147] sm:$0x1]  ;;  %v4410_v0 = vld [vmem:[#allocation8 + $0x1a6] sm:$0x1]  ;;  %v4437_v39 = vsel %vm238_vm7, %v6302_v29, %v251_v57  ;;  %v924_v33 = vrot.slane %v4414_v27, 5  ;;  %v6304_v57 = vrot.slane %v4281_v37, 3 }
 0x1d9   :  { %393 = vperm.xlu1 %3614, %v4129_v11   ;;  %1737 = vperm.xlu0 %3657, %v4129_v11   ;;  %v4426_v35 = vld [vmem:[#allocation8 + $0x1e6] sm:$0x1]  ;;  %v922_v25 = vrot.slane %v876_v15, 6  ;;  %v4440_v58 = vld [vmem:[#allocation8 + $0x1a7] sm:$0x1]  ;;  %v6303_v15 = vrot.slane %v4258_v32, 3  ;;  %v727_v32 = vsel %vm223_vm2, %v726_v45, %v725_v7 }
 0x1da   :  { %v439_v62 = vsel %vm232_vm5, %v6304_v57, %v437_v9  ;;  %v974_v29 = vld [vmem:[#allocation8 + $0x148] sm:$0x1] }
 0x1db   :  { %v4412_v44 = vpop.permute.xlu1 %565  ;;  %v4416_v20 = vpop.permute.xlu0 %887  ;;  %v341_v6 = vsel %vm232_vm5, %v6303_v15, %v339_v19  ;;  %v972_v37 = vld [vmem:[#allocation8 + $0x108] sm:$0x1] }
 0x1dc   :  { %6299 = vst [vmem:[#allocation23_spill] sm:$0xff] %v4412_v44  ;;  %v823_v44 = vsel %vm220_vm1, %v822_v56, %v776_v63  ;;  %v4442_v56 = vld [vmem:[#allocation8 + $0x1c7] sm:$0x1]  ;;  %v921_v63 = vsel %vm220_vm1, %v920_v49, %v874_v24  ;;  %v6305_v49 = vrot.slane %v4305_v4, 3  ;;  %v6306_v24 = vrot.slane %v4338_v41, 4 }
 0x1dd   :  { %3615 = vset.pattern.permute.xlu1 %v6301_v3  ;;  %3660 = vset.pattern.permute.xlu0 %v6204_v61  ;;  %v4454_v3 = vld [vmem:[#allocation8 + $0x1e7] sm:$0x1]  ;;  %v1018_v61 = vrot.slane %v973_v5, 7  ;;  %v825_v19 = vsel %vm223_vm2, %v824_v53, %v823_v44  ;;  %v975_v9 = vld [vmem:[#allocation8 + $0x168] sm:$0x1]  ;;  %v923_v41 = vsel %vm223_vm2, %v922_v25, %v921_v63 }
 0x1de   :  { %451 = vperm.xlu1 %3615, %v4129_v11   ;;  %1769 = vperm.xlu0 %3660, %v4125_v10   ;;  %v537_v27 = vsel %vm232_vm5, %v6305_v49, %v535_v16  ;;  %v633_v38 = vsel %vm229_vm4, %v6306_v24, %v631_v28  ;;  %v4466_v57 = vld [vmem:[#allocation8 + $0x188] sm:$0x1]  ;;  %v926_v28 = vrot.slane %v4430_v40, 4  ;;  %v1071_v5 = vld [vmem:[#allocation8 + $0x129] sm:$0x1]  ;;  %v1020_v49 = vrot.slane %v974_v29, 6 }
 0x1df   :  { %v4477_v7 = vld [vmem:[#allocation8 + $0x1a8] sm:$0x1]  ;;  %v6308_v24 = vmov 3   ;;  %v6309_v16 = vrot.slane %v4357_v59, 5  ;;  %v1019_v44 = vsel %vm220_vm1, %v1018_v61, %v972_v37  ;;  %v1022_v4 = vrot.slane %v975_v9, 5 }
 0x1e0   :  { %v4464_v15 = vpop.permute.xlu1 %651  ;;  %v4468_v51 = vpop.permute.xlu0 %985  ;;  %v4484_v40 = vld [vmem:[#allocation8 + $0x1c8] sm:$0x1]  ;;  %v1024_v53 = vrot.slane %v4466_v57, 4  ;;  %v827_v29 = vsel %vm226_vm3, %v826_v14, %v825_v19  ;;  %v1072_v59 = vld [vmem:[#allocation8 + $0x149] sm:$0x1]  ;;  %v6311_v61 = vrot.slane %v4290_v31, 2 }
 0x1e1   :  { %6307 = vst [vmem:[#allocation24_spill] sm:$0xff] %v4464_v15  ;;  %v6205_v15 = vmov 80   ;;  %v729_v25 = vsel %vm226_vm3, %v6309_v16, %v727_v32  ;;  %v4486_v63 = vld [vmem:[#allocation8 + $0x1e8] sm:$0x1]  ;;  %v1116_v32 = vrot.slane %v1071_v5, 7  ;;  %v6310_v16 = vrot.slane %v4260_v36, 2 }
 0x1e2   :  { %3617 = vset.pattern.permute.xlu1 %v6308_v24  ;;  %3662 = vset.pattern.permute.xlu0 %v6205_v15  ;;  %v925_v24 = vsel %vm226_vm3, %v924_v33, %v923_v41  ;;  %v4494_v15 = vld [vmem:[#allocation8 + $0x169] sm:$0x1]  ;;  %v441_v37 = vsel %vm235_vm6, %v6311_v61, %v439_v62  ;;  %v6312_v9 = vrot.slane %v4309_v34, 2  ;;  %v6313_v14 = vrot.slane %v4340_v60, 3 }
 0x1e3   :  { %491 = vperm.xlu1 %3617, %v4129_v11   ;;  %1835 = vperm.xlu0 %3662, %v4129_v11   ;;  %v343_v45 = vsel %vm235_vm6, %v6310_v16, %v341_v6  ;;  %v4510_v41 = vld [vmem:[#allocation8 + $0x189] sm:$0x1]  ;;  %v6316_v31 = vrot.slane %v4359_v23, 4  ;;  %v1021_v62 = vsel %vm223_vm2, %v1020_v49, %v1019_v44  ;;  %v1169_v16 = vld [vmem:[#allocation8 + $0x12a] sm:$0x1]  ;;  %v6317_v61 = vrot.slane %v4399_v21, 4 }
 0x1e4   :  { %v539_v57 = vsel %vm235_vm6, %v6312_v9, %v537_v27  ;;  %v635_v33 = vsel %vm232_vm5, %v6313_v14, %v633_v38  ;;  %v4512_v5 = vld [vmem:[#allocation8 + $0x1a9] sm:$0x1]  ;;  %v927_v14 = vsel %vm229_vm4, %v926_v28, %v925_v24  ;;  %v1118_v23 = vrot.slane %v1072_v59, 6  ;;  %v1267_v49 = vld [vmem:[#allocation8 + $0x12b] sm:$0x1] }
 0x1e5   :  { %v4508_v19 = vpop.permute.xlu1 %663  ;;  %v4514_v36 = vld [vmem:[#allocation8 + $0x1c9] sm:$0x1]  ;;  %v4516_v6 = vpop.permute.xlu0 %1083  ;;  %v731_v34 = vsel %vm229_vm4, %v6316_v31, %v729_v25  ;;  %v829_v9 = vsel %vm229_vm4, %v6317_v61, %v827_v29  ;;  %v6318_v25 = vmov 35   ;;  %v6206_v44 = vmov 17   ;;  %v1170_v28 = vld [vmem:[#allocation8 + $0x14a] sm:$0x1] }
 0x1e6   :  { %6314 = vst [vmem:[#allocation25_spill] sm:$0xff] %v4508_v19  ;;  %6315 = vst [vmem:[#allocation26_spill] sm:$0xff] %v4516_v6  ;;  %v1070_v27 = vld [vmem:[#allocation8 + $0x109] sm:$0x1]  ;;  %v1120_v31 = vrot.slane %v4494_v15, 5  ;;  %v1023_v24 = vsel %vm226_vm3, %v1022_v4, %v1021_v62  ;;  %v6319_v15 = vrot.slane %v4263_v42, 1 }
 0x1e7   :  { %3618 = vset.pattern.permute.xlu1 %v6318_v25  ;;  %3665 = vset.pattern.permute.xlu0 %v6206_v44  ;;  %v1117_v59 = vsel %vm220_vm1, %v1116_v32, %v1070_v27  ;;  %v1168_v61 = vld [vmem:[#allocation8 + $0x10a] sm:$0x1]  ;;  %v1214_v44 = vrot.slane %v1169_v16, 7  ;;  %v6320_v29 = vrot.slane %v4293_v43, 1  ;;  %v1268_v62 = vld [vmem:[#allocation8 + $0x14b] sm:$0x1] }
 0x1e8   :  { %549 = vperm.xlu1 %3618, %v4129_v11   ;;  %1867 = vperm.xlu0 %3665, %v4125_v10   ;;  %v4541_v25 = vld [vmem:[#allocation8 + $0x16a] sm:$0x1]  ;;  %v4546_v19 = vsel %vm238_vm7, %v6319_v15, %v343_v45  ;;  %v1312_v27 = vrot.slane %v1267_v49, 7  ;;  %v6323_v42 = vrot.slane %v4316_v22, 1  ;;  %v6324_v43 = vrot.slane %v4344_v30, 2 }
 0x1e9   :  { %v4551_v21 = vsel %vm238_vm7, %v6320_v29, %v441_v37  ;;  %v4556_v4 = vld [vmem:[#allocation8 + $0x18a] sm:$0x1]  ;;  %v6325_v16 = vrot.slane %v4368_v13, 3  ;;  %v6326_v15 = vrot.slane %v4410_v0, 3  ;;  %v1266_v49 = vld [vmem:[#allocation8 + $0x10b] sm:$0x1]  ;;  %v1025_v30 = vsel %vm229_vm4, %v1024_v53, %v1023_v24 }
 0x1ea   :  { %v4554_v60 = vpop.permute.xlu1 %749  ;;  %v4558_v32 = vpop.permute.xlu0 %1181  ;;  %v4563_v45 = vsel %vm238_vm7, %v6323_v42, %v539_v57  ;;  %v637_v37 = vsel %vm235_vm6, %v6324_v43, %v635_v33  ;;  %v6327_v22 = vrot.slane %v4440_v58, 3  ;;  %v1119_v33 = vsel %vm223_vm2, %v1118_v23, %v1117_v59  ;;  %v4581_v42 = vld [vmem:[#allocation8 + $0x1ca] sm:$0x1]  ;;  %v4592_v23 = vld [vmem:[#allocation8 + $0x18b] sm:$0x1] }
 0x1eb   :  { %6321 = vst [vmem:[#allocation27_spill] sm:$0xff] %v4554_v60  ;;  %6322 = vst [vmem:[#allocation28_spill] sm:$0xff] %v4558_v32  ;;  %v733_v29 = vsel %vm232_vm5, %v6325_v16, %v731_v34  ;;  %v831_v38 = vsel %vm232_vm5, %v6326_v15, %v829_v9  ;;  %v4574_v60 = vld [vmem:[#allocation8 + $0x1aa] sm:$0x1]  ;;  %v6328_v34 = vmov 4   ;;  %v6207_v0 = vmov 81  }
 0x1ec   :  { %v929_v57 = vsel %vm232_vm5, %v6327_v22, %v927_v14  ;;  %v4583_v13 = vld [vmem:[#allocation8 + $0x1ea] sm:$0x1]  ;;  %3620 = vset.pattern.permute.xlu1 %v6328_v34  ;;  %3667 = vset.pattern.permute.xlu0 %v6207_v0  ;;  %v1269_v9 = vld [vmem:[#allocation8 + $0x16b] sm:$0x1]  ;;  %v1216_v43 = vrot.slane %v1170_v28, 6  ;;  %v1218_v16 = vrot.slane %v4541_v25, 5  ;;  %v1215_v14 = vsel %vm220_vm1, %v1214_v44, %v1168_v61 }
 0x1ed   :  { %589 = vperm.xlu1 %3620, %v4129_v11   ;;  %1933 = vperm.xlu0 %3667, %v4129_v11   ;;  %v1314_v53 = vrot.slane %v1268_v62, 6  ;;  %v1313_v24 = vsel %vm220_vm1, %v1312_v27, %v1266_v49  ;;  %v1366_v59 = vld [vmem:[#allocation8 + $0x14c] sm:$0x1]  ;;  %v1410_v15 = vrot.slane %v1365_v1, 7  ;;  %v1316_v0 = vrot.slane %v1269_v9, 5 }
 0x1ee   :  { %v1364_v62 = vld [vmem:[#allocation8 + $0x10c] sm:$0x1]  ;;  %v6331_v44 = vrot.slane %v4346_v47, 1  ;;  %v6332_v27 = vrot.slane %v4370_v12, 2  ;;  %v6333_v49 = vrot.slane %v4477_v7, 3  ;;  %v1121_v25 = vsel %vm226_vm3, %v1120_v31, %v1119_v33 }
 0x1ef   :  { %v4598_v34 = vpop.permute.xlu1 %761  ;;  %v4600_v58 = vpop.permute.xlu0 %1279  ;;  %v4614_v22 = vld [vmem:[#allocation8 + $0x1ab] sm:$0x1]  ;;  %v1217_v47 = vsel %vm223_vm2, %v1216_v43, %v1215_v14  ;;  %v1318_v12 = vrot.slane %v4592_v23, 4  ;;  %v1367_v7 = vld [vmem:[#allocation8 + $0x16c] sm:$0x1]  ;;  %v1412_v31 = vrot.slane %v1366_v59, 6  ;;  %v1411_v23 = vsel %vm220_vm1, %v1410_v15, %v1364_v62 }
 0x1f0   :  { %6329 = vst [vmem:[#allocation29_spill] sm:$0xff] %v4598_v34  ;;  %6330 = vst [vmem:[#allocation30_spill] sm:$0xff] %v4600_v58  ;;  %v4605_v61 = vsel %vm238_vm7, %v6331_v44, %v637_v37  ;;  %v735_v1 = vsel %vm235_vm6, %v6332_v27, %v733_v29  ;;  %v1027_v28 = vsel %vm232_vm5, %v6333_v49, %v1025_v30  ;;  %v4616_v9 = vld [vmem:[#allocation8 + $0x1cb] sm:$0x1]  ;;  %v6334_v44 = vmov 36  }
 0x1f1   :  { %v4618_v34 = vld [vmem:[#allocation8 + $0x1eb] sm:$0x1]  ;;  %v1315_v37 = vsel %vm223_vm2, %v1314_v53, %v1313_v24  ;;  %3621 = vset.pattern.permute.xlu1 %v6334_v44  ;;  %v6208_v29 = vmov 18   ;;  %v4625_v30 = vld [vmem:[#allocation8 + $0x18c] sm:$0x1]  ;;  %v6335_v33 = vrot.slane %v4422_v26, 2 }
 0x1f2   :  { %3670 = vset.pattern.permute.xlu0 %v6208_v29  ;;  %v6336_v49 = vrot.slane %v4442_v56, 2  ;;  %647 = vperm.xlu1 %3621, %v4129_v11   ;;  %v4635_v53 = vld [vmem:[#allocation8 + $0x1ac] sm:$0x1]  ;;  %v1463_v24 = vld [vmem:[#allocation8 + $0x12d] sm:$0x1]  ;;  %v6337_v59 = vrot.slane %v4484_v40, 2  ;;  %v1317_v29 = vsel %vm226_vm3, %v1316_v0, %v1315_v37 }
 0x1f3   :  { %v833_v27 = vsel %vm235_vm6, %v6335_v33, %v831_v38  ;;  %1965 = vperm.xlu0 %3670, %v4125_v10   ;;  %v4637_v14 = vld [vmem:[#allocation8 + $0x1cc] sm:$0x1]  ;;  %v6338_v38 = vrot.slane %v4510_v41, 4  ;;  %v4649_v33 = vld [vmem:[#allocation8 + $0x14d] sm:$0x1]  ;;  %v1414_v40 = vrot.slane %v1367_v7, 5 }
 0x1f4   :  { %v931_v43 = vsel %vm235_vm6, %v6336_v49, %v929_v57  ;;  %v1029_v26 = vsel %vm235_vm6, %v6337_v59, %v1027_v28  ;;  %v1320_v57 = vrot.slane %v4614_v22, 3  ;;  %v4647_v44 = vld [vmem:[#allocation8 + $0x1ec] sm:$0x1]  ;;  %v1219_v49 = vsel %vm226_vm3, %v1218_v16, %v1217_v47  ;;  %v4654_v62 = vpop.permute.xlu1 %847  ;;  %v4656_v28 = vpop.permute.xlu0 %1377  ;;  %v4658_v41 = vld [vmem:[#allocation8 + $0x16d] sm:$0x1] }
 0x1f5   :  { %v1123_v56 = vsel %vm229_vm4, %v6338_v38, %v1121_v25  ;;  %6339 = vst [vmem:[#allocation31_spill] sm:$0xff] %v4654_v62  ;;  %6340 = vst [vmem:[#allocation32_spill] sm:$0xff] %v4656_v28  ;;  %v4660_v25 = vld [vmem:[#allocation8 + $0x18d] sm:$0x1]  ;;  %v1413_v59 = vsel %vm223_vm2, %v1412_v31, %v1411_v23  ;;  %v1416_v38 = vrot.slane %v4625_v30, 4  ;;  %v1418_v16 = vrot.slane %v4635_v53, 3 }
 0x1f6   :  { %v178_v0 = vld [vmem:[#allocation8 + $0x20] sm:$0x1]  ;;  %v6341_v7 = vmov 5   ;;  %v6209_v15 = vmov 82   ;;  %v1462_v62 = vld [vmem:[#allocation8 + $0x10d] sm:$0x1] }
 0x1f7   :  { %3623 = vset.pattern.permute.xlu1 %v6341_v7  ;;  %3672 = vset.pattern.permute.xlu0 %v6209_v15  ;;  %v1508_v48 = vrot.slane %v1463_v24, 7  ;;  %v1510_v22 = vrot.slane %v4649_v33, 6  ;;  %v6342_v31 = vrot.slane %v4376_v18, 1  ;;  %v6343_v53 = vrot.slane %v4512_v5, 3  ;;  %v4681_v7 = vld [vmem:[#allocation8 + $0x1ad] sm:$0x1] }
 0x1f8   :  { %687 = vperm.xlu1 %3623, %v4129_v11   ;;  %2031 = vperm.xlu0 %3672, %v4129_v11   ;;  %v4683_v15 = vld [vmem:[#allocation8 + $0x1cd] sm:$0x1]  ;;  %v1512_v24 = vrot.slane %v4658_v41, 5  ;;  %v6344_v18 = vrot.slane %v4556_v4, 4  ;;  %v1415_v5 = vsel %vm226_vm3, %v1414_v40, %v1413_v59  ;;  %v6345_v37 = vrot.slane %v4426_v35, 1 }
 0x1f9   :  { %v4674_v30 = vsel %vm238_vm7, %v6342_v31, %v735_v1  ;;  %v1125_v23 = vsel %vm232_vm5, %v6343_v53, %v1123_v56  ;;  %v4691_v31 = vld [vmem:[#allocation8 + $0x12e] sm:$0x1]  ;;  %v179_v56 = vld [vmem:[#allocation8 + $0x40] sm:$0x1]  ;;  %v219_v53 = vrot.slane %v178_v0, 7  ;;  %v6346_v28 = vrot.slane %v4454_v3, 1  ;;  %v4709_v59 = vpop.permute.xlu1 %859  ;;  %v4713_v35 = vpop.permute.xlu0 %1475 }
 0x1fa   :  { %v1221_v1 = vsel %vm229_vm4, %v6344_v18, %v1219_v49  ;;  %v4696_v47 = vsel %vm238_vm7, %v6345_v37, %v833_v27  ;;  %v6347_v4 = vrot.slane %v4486_v63, 1  ;;  %v1319_v40 = vsel %vm229_vm4, %v1318_v12, %v1317_v29  ;;  %6348 = vst [vmem:[#allocation33_spill] sm:$0xff] %v4709_v59  ;;  %v4711_v0 = vld [vmem:[#allocation8 + $0x1ed] sm:$0x1]  ;;  %6349 = vst [vmem:[#allocation34_spill] sm:$0xff] %v4713_v35 }
 0x1fb   :  { %v4701_v41 = vsel %vm238_vm7, %v6346_v28, %v931_v43  ;;  %v177_v27 = vld [vmem:[#allocation8] sm:$0x1]  ;;  %v279_v37 = vld [vmem:[#allocation8 + $0x21] sm:$0x1]  ;;  %v6350_v3 = vrot.slane %v4514_v36, 2  ;;  %v1509_v28 = vsel %vm220_vm1, %v1508_v48, %v1462_v62  ;;  %v6351_v29 = vrot.slane %v4574_v60, 3 }
 0x1fc   :  { %v4706_v49 = vsel %vm238_vm7, %v6347_v4, %v1029_v26  ;;  %v4721_v18 = vld [vmem:[#allocation8 + $0x14e] sm:$0x1]  ;;  %v1417_v33 = vsel %vm229_vm4, %v1416_v38, %v1415_v5  ;;  %v6352_v59 = vmov 37   ;;  %v6210_v36 = vmov 19   ;;  %v180_v62 = vld [vmem:[#allocation8 + $0x60] sm:$0x1] }
 0x1fd   :  { %v1127_v43 = vsel %vm235_vm6, %v6350_v3, %v1125_v23  ;;  %v4723_v12 = vld [vmem:[#allocation8 + $0x16e] sm:$0x1]  ;;  %v1223_v4 = vsel %vm232_vm5, %v6351_v29, %v1221_v1  ;;  %3624 = vset.pattern.permute.xlu1 %v6352_v59  ;;  %3675 = vset.pattern.permute.xlu0 %v6210_v36  ;;  %v4732_v23 = vld [vmem:[#allocation8 + $0x80] sm:$0x1]  ;;  %v222_v3 = vrot.slane %v179_v56, 6  ;;  %v1321_v26 = vsel %vm232_vm5, %v1320_v57, %v1319_v40 }
 0x1fe   :  { %745 = vperm.xlu1 %3624, %v4129_v11   ;;  %2063 = vperm.xlu0 %3675, %v4125_v10   ;;  %v4738_v60 = vld [vmem:[#allocation8 + $0xa0] sm:$0x1]  ;;  %v221_v38 = vsel %vm220_vm1, %v219_v53, %v177_v27  ;;  %v280_v1 = vld [vmem:[#allocation8 + $0x41] sm:$0x1]  ;;  %v318_v5 = vrot.slane %v279_v37, 7  ;;  %v6353_v59 = vrot.slane %v4529_v54, 1  ;;  %v1511_v56 = vsel %vm223_vm2, %v1510_v22, %v1509_v28  ;;  %v4752_v53 = vpop.permute.xlu1 %945  ;;  %v4755_v54 = vpop.permute.xlu0 %1573 }
 0x1ff   :  { %v278_v40 = vld [vmem:[#allocation8 + $0x1] sm:$0x1]  ;;  %v377_v36 = vld [vmem:[#allocation8 + $0x22] sm:$0x1]  ;;  %v6355_v63 = vrot.slane %v4581_v42, 2  ;;  %v1419_v35 = vsel %vm232_vm5, %v1418_v16, %v1417_v33  ;;  %6356 = vst [vmem:[#allocation36_spill] sm:$0xff] %v4752_v53  ;;  %v224_v42 = vsel %vm223_vm2, %v222_v3, %v221_v38 }
 0x200   :  { %v4744_v29 = vsel %vm238_vm7, %v6353_v59, %v1127_v43  ;;  %6357 = vst [vmem:[#allocation37_spill] sm:$0xff] %v4755_v54  ;;  %v4757_v37 = vld [vmem:[#allocation8 + $0xc0] sm:$0x1]  ;;  %v225_v43 = vrot.slane %v180_v62, 5  ;;  %v475_v22 = vld [vmem:[#allocation8 + $0x23] sm:$0x1] }
 0x201   :  { %6354 = vst [vmem:[#allocation35_spill] sm:$0xff] %v4744_v29  ;;  %v1225_v48 = vsel %vm235_vm6, %v6355_v63, %v1223_v4  ;;  %v6358_v28 = vrot.slane %v4616_v9, 2  ;;  %v4762_v57 = vld [vmem:[#allocation8 + $0xe0] sm:$0x1]  ;;  %v228_v16 = vrot.slane %v4732_v23, 4  ;;  %v320_v63 = vrot.slane %v280_v1, 6 }
 0x202   :  { %v281_v33 = vld [vmem:[#allocation8 + $0x61] sm:$0x1]  ;;  %v1513_v4 = vsel %vm226_vm3, %v1512_v24, %v1511_v56  ;;  %v6359_v27 = vmov 6   ;;  %v6211_v53 = vmov 83   ;;  %v231_v62 = vrot.slane %v4738_v60, 3 }
 0x203   :  { %v1323_v59 = vsel %vm235_vm6, %v6358_v28, %v1321_v26  ;;  %3626 = vset.pattern.permute.xlu1 %v6359_v27  ;;  %3677 = vset.pattern.permute.xlu0 %v6211_v53  ;;  %v4770_v9 = vld [vmem:[#allocation8 + $0x81] sm:$0x1]  ;;  %v319_v26 = vsel %vm220_vm1, %v318_v5, %v278_v40  ;;  %v378_v28 = vld [vmem:[#allocation8 + $0x42] sm:$0x1]  ;;  %v416_v54 = vrot.slane %v377_v36, 7  ;;  %v6360_v23 = vrot.slane %v4583_v13, 1  ;;  %v4795_v53 = vpop.permute.xlu1 %957  ;;  %v4797_v60 = vpop.permute.xlu0 %195 }
 0x204   :  { %v573_v3 = vld [vmem:[#allocation8 + $0x24] sm:$0x1]  ;;  %v6362_v24 = vrot.slane %v4637_v14, 2  ;;  %785 = vperm.xlu1 %3626, %v4129_v11   ;;  %2129 = vperm.xlu0 %3677, %v4129_v11   ;;  %v376_v56 = vld [vmem:[#allocation8 + $0x2] sm:$0x1]  ;;  %v514_v40 = vrot.slane %v475_v22, 7  ;;  %v321_v22 = vsel %vm223_vm2, %v320_v63, %v319_v26 }
 0x205   :  { %v4776_v38 = vsel %vm238_vm7, %v6360_v23, %v1225_v48  ;;  %v476_v5 = vld [vmem:[#allocation8 + $0x43] sm:$0x1]  ;;  %v6363_v36 = vrot.slane %v4618_v34, 1  ;;  %v227_v48 = vsel %vm226_vm3, %v225_v43, %v224_v42  ;;  %v4790_v27 = vld [vmem:[#allocation8 + $0xa1] sm:$0x1]  ;;  %v322_v14 = vrot.slane %v281_v33, 5 }
 0x206   :  { %6361 = vst [vmem:[#allocation38_spill] sm:$0xff] %v4776_v38  ;;  %v1421_v1 = vsel %vm235_vm6, %v6362_v24, %v1419_v35  ;;  %v474_v35 = vld [vmem:[#allocation8 + $0x3] sm:$0x1]  ;;  %v6365_v23 = vrot.slane %v4660_v25, 4  ;;  %6366 = vst [vmem:[#allocation40_spill] sm:$0xff] %v4795_v53  ;;  %v418_v58 = vrot.slane %v378_v28, 6 }
 0x207   :  { %v4787_v13 = vsel %vm238_vm7, %v6363_v36, %v1323_v59  ;;  %6367 = vst [vmem:[#allocation41_spill] sm:$0xff] %v4797_v60  ;;  %v379_v34 = vld [vmem:[#allocation8 + $0x62] sm:$0x1]  ;;  %v574_v59 = vld [vmem:[#allocation8 + $0x44] sm:$0x1]  ;;  %v612_v36 = vrot.slane %v573_v3, 7  ;;  %v230_v60 = vsel %vm229_vm4, %v228_v16, %v227_v48  ;;  %v515_v3 = vsel %vm220_vm1, %v514_v40, %v474_v35 }
 0x208   :  { %6364 = vst [vmem:[#allocation39_spill] sm:$0xff] %v4787_v13  ;;  %v1515_v24 = vsel %vm229_vm4, %v6365_v23, %v1513_v4  ;;  %v6368_v43 = vrot.slane %v4647_v44, 1  ;;  %v1560_v33 = vld [vmem:[#allocation8 + $0x10e] sm:$0x1]  ;;  %v417_v4 = vsel %vm220_vm1, %v416_v54, %v376_v56  ;;  %v477_v23 = vld [vmem:[#allocation8 + $0x63] sm:$0x1]  ;;  %v323_v16 = vsel %vm226_vm3, %v322_v14, %v321_v22  ;;  %v4828_v25 = vpop.permute.xlu1 %1043 }
 0x209   :  { %v516_v53 = vrot.slane %v476_v5, 6  ;;  %v572_v13 = vld [vmem:[#allocation8 + $0x4] sm:$0x1]  ;;  %v6370_v63 = vmov 38   ;;  %v6213_v26 = vmov 20   ;;  %v324_v44 = vrot.slane %v4770_v9, 4 }
 0x20a   :  { %v4803_v42 = vsel %vm238_vm7, %v6368_v43, %v1421_v1  ;;  %3627 = vset.pattern.permute.xlu1 %v6370_v63  ;;  %3680 = vset.pattern.permute.xlu0 %v6213_v26  ;;  %v4810_v28 = vld [vmem:[#allocation8 + $0xc1] sm:$0x1]  ;;  %v671_v1 = vld [vmem:[#allocation8 + $0x25] sm:$0x1]  ;;  %v6371_v43 = vrot.slane %v4681_v7, 3  ;;  %v420_v5 = vrot.slane %v379_v34, 5  ;;  %v419_v40 = vsel %vm223_vm2, %v418_v58, %v417_v4 }
 0x20b   :  { %6369 = vst [vmem:[#allocation42_spill] sm:$0xff] %v4803_v42  ;;  %843 = vperm.xlu1 %3627, %v4129_v11   ;;  %2161 = vperm.xlu0 %3680, %v4125_v10   ;;  %v380_v56 = vld [vmem:[#allocation8 + $0x82] sm:$0x1]  ;;  %v575_v48 = vld [vmem:[#allocation8 + $0x64] sm:$0x1]  ;;  %v614_v63 = vrot.slane %v574_v59, 6  ;;  %v4830_v42 = vpop.permute.xlu0 %269  ;;  %v517_v34 = vsel %vm223_vm2, %v516_v53, %v515_v3 }
 0x20c   :  { %v4817_v54 = vsel %vm232_vm5, %v6371_v43, %v1515_v24  ;;  %v4822_v26 = vld [vmem:[#allocation8 + $0xe1] sm:$0x1]  ;;  %v326_v9 = vrot.slane %v4790_v27, 3  ;;  %v478_v7 = vld [vmem:[#allocation8 + $0x83] sm:$0x1]  ;;  %v518_v35 = vrot.slane %v477_v23, 5  ;;  %v613_v24 = vsel %vm220_vm1, %v612_v36, %v572_v13 }
 0x20d   :  { %v233_v43 = vsel %vm232_vm5, %v231_v62, %v230_v60  ;;  %6372 = vst [vmem:[#allocation43_spill] sm:$0xff] %v4828_v25  ;;  %v328_v14 = vrot.slane %v4810_v28, 2  ;;  %v381_v22 = vld [vmem:[#allocation8 + $0xa2] sm:$0x1]  ;;  %v672_v59 = vld [vmem:[#allocation8 + $0x45] sm:$0x1]  ;;  %v325_v13 = vsel %vm229_vm4, %v324_v44, %v323_v16  ;;  %v421_v28 = vsel %vm226_vm3, %v420_v5, %v419_v40 }
 0x20e   :  { %v710_v38 = vrot.slane %v671_v1, 7  ;;  %v6373_v27 = vrot.slane %v4691_v31, 7  ;;  %v422_v36 = vrot.slane %v380_v56, 4  ;;  %v576_v62 = vld [vmem:[#allocation8 + $0x84] sm:$0x1]  ;;  %v616_v60 = vrot.slane %v575_v48, 5 }
 0x20f   :  { %v670_v4 = vld [vmem:[#allocation8 + $0x5] sm:$0x1]  ;;  %v6374_v23 = vmov 7   ;;  %v6216_v25 = vmov 84   ;;  %v330_v53 = vrot.slane %v4822_v26, 1  ;;  %v520_v31 = vrot.slane %v478_v7, 4 }
 0x210   :  { %v4837_v58 = vsel %vm220_vm1, %v6373_v27, %v1560_v33  ;;  %3629 = vset.pattern.permute.xlu1 %v6374_v23  ;;  %3682 = vset.pattern.permute.xlu0 %v6216_v25  ;;  %v479_v3 = vld [vmem:[#allocation8 + $0xa3] sm:$0x1]  ;;  %v615_v33 = vsel %vm223_vm2, %v614_v63, %v613_v24  ;;  %v769_v1 = vld [vmem:[#allocation8 + $0x26] sm:$0x1]  ;;  %v6375_v44 = vrot.slane %v4757_v37, 2  ;;  %v519_v48 = vsel %vm226_vm3, %v518_v35, %v517_v34  ;;  %v4853_v37 = vpop.permute.xlu1 %1055 }
 0x211   :  { %883 = vperm.xlu1 %3629, %v4129_v11   ;;  %2227 = vperm.xlu0 %3682, %v4129_v11   ;;  %v382_v56 = vld [vmem:[#allocation8 + $0xc2] sm:$0x1]  ;;  %v673_v27 = vld [vmem:[#allocation8 + $0x65] sm:$0x1]  ;;  %v712_v26 = vrot.slane %v672_v59, 6  ;;  %v327_v5 = vsel %vm232_vm5, %v326_v9, %v325_v13  ;;  %v424_v40 = vrot.slane %v381_v22, 3  ;;  %v711_v24 = vsel %vm220_vm1, %v710_v38, %v670_v4 }
 0x212   :  { %v236_v16 = vsel %vm235_vm6, %v6375_v44, %v233_v43  ;;  %v480_v7 = vld [vmem:[#allocation8 + $0xc3] sm:$0x1]  ;;  %v577_v23 = vld [vmem:[#allocation8 + $0xa4] sm:$0x1]  ;;  %v618_v63 = vrot.slane %v576_v62, 4  ;;  %6376 = vst [vmem:[#allocation44_spill] sm:$0xff] %v4853_v37  ;;  %v4855_v43 = vpop.permute.xlu0 %365  ;;  %v423_v25 = vsel %vm229_vm4, %v422_v36, %v421_v28  ;;  %v617_v35 = vsel %vm226_vm3, %v616_v60, %v615_v33 }
 0x213   :  { %v4857_v44 = vld [vmem:[#allocation8 + $0xe2] sm:$0x1]  ;;  %v522_v32 = vrot.slane %v479_v3, 3  ;;  %v674_v34 = vld [vmem:[#allocation8 + $0x85] sm:$0x1]  ;;  %v808_v9 = vrot.slane %v769_v1, 7  ;;  %v521_v62 = vsel %vm229_vm4, %v520_v31, %v519_v48  ;;  %v329_v6 = vsel %vm235_vm6, %v328_v14, %v327_v5 }
 0x214   :  { %v770_v59 = vld [vmem:[#allocation8 + $0x46] sm:$0x1]  ;;  %v6377_v22 = vrot.slane %v4762_v57, 1  ;;  %v426_v38 = vrot.slane %v382_v56, 2  ;;  %v714_v4 = vrot.slane %v673_v27, 5  ;;  %v6378_v36 = vmov 39  }
 0x215   :  { %v768_v37 = vld [vmem:[#allocation8 + $0x6] sm:$0x1]  ;;  %v867_v29 = vld [vmem:[#allocation8 + $0x27] sm:$0x1]  ;;  %3630 = vset.pattern.permute.xlu1 %v6378_v36  ;;  %v6218_v28 = vmov 21   ;;  %v620_v33 = vrot.slane %v577_v23, 3  ;;  %v713_v57 = vsel %vm223_vm2, %v712_v26, %v711_v24  ;;  %v425_v31 = vsel %vm232_vm5, %v424_v40, %v423_v25 }
 0x216   :  { %v4864_v13 = vsel %vm238_vm7, %v6377_v22, %v236_v16  ;;  %3685 = vset.pattern.permute.xlu0 %v6218_v28  ;;  %v481_v60 = vld [vmem:[#allocation8 + $0xe3] sm:$0x1]  ;;  %v578_v3 = vld [vmem:[#allocation8 + $0xc4] sm:$0x1]  ;;  %941 = vperm.xlu1 %3630, %v4129_v11   ;;  %v524_v1 = vrot.slane %v480_v7, 2  ;;  %v619_v14 = vsel %vm229_vm4, %v618_v63, %v617_v35  ;;  %v810_v48 = vrot.slane %v770_v59, 6  ;;  %v4880_v28 = vpop.permute.xlu1 %1141  ;;  %v464_v40 = vpop.permute.xlu0 %463 }
 0x217   :  { %2259 = vperm.xlu0 %3685, %v4125_v10   ;;  %v579_v16 = vld [vmem:[#allocation8 + $0xe4] sm:$0x1]  ;;  %v771_v56 = vld [vmem:[#allocation8 + $0x66] sm:$0x1]  ;;  %v523_v27 = vsel %vm232_vm5, %v522_v32, %v521_v62  ;;  %v675_v5 = vld [vmem:[#allocation8 + $0xa5] sm:$0x1]  ;;  %v809_v23 = vsel %vm220_vm1, %v808_v9, %v768_v37  ;;  %v4878_v24 = vsel %vm238_vm7, %v330_v53, %v329_v6  ;;  %v715_v63 = vsel %vm226_vm3, %v714_v4, %v713_v57 }
 0x218   :  { %v716_v22 = vrot.slane %v674_v34, 4  ;;  %v868_v36 = vld [vmem:[#allocation8 + $0x47] sm:$0x1]  ;;  %v906_v26 = vrot.slane %v867_v29, 7  ;;  %6379 = vst [vmem:[#allocation45_spill] sm:$0xff] %v4880_v28  ;;  %v428_v25 = vrot.slane %v4857_v44, 1  ;;  %v427_v32 = vsel %vm235_vm6, %v426_v38, %v425_v31 }
 0x219   :  { %v622_v7 = vrot.slane %v578_v3, 2  ;;  %v866_v35 = vld [vmem:[#allocation8 + $0x7] sm:$0x1]  ;;  %v965_v59 = vld [vmem:[#allocation8 + $0x28] sm:$0x1]  ;;  %v526_v34 = vrot.slane %v481_v60, 1  ;;  %v621_v37 = vsel %vm232_vm5, %v620_v33, %v619_v14  ;;  %v525_v53 = vsel %vm235_vm6, %v524_v1, %v523_v27 }
 0x21a   :  { %v772_v9 = vld [vmem:[#allocation8 + $0x86] sm:$0x1]  ;;  %v812_v29 = vrot.slane %v771_v56, 5  ;;  %v6380_v62 = vmov 8   ;;  %v6220_v6 = vmov 85   ;;  %v718_v3 = vrot.slane %v675_v5, 3 }
 0x21b   :  { %3632 = vset.pattern.permute.xlu1 %v6380_v62  ;;  %3687 = vset.pattern.permute.xlu0 %v6220_v6  ;;  %v676_v44 = vld [vmem:[#allocation8 + $0xc5] sm:$0x1]  ;;  %v811_v4 = vsel %vm223_vm2, %v810_v48, %v809_v23  ;;  %v869_v57 = vld [vmem:[#allocation8 + $0x67] sm:$0x1]  ;;  %v908_v28 = vrot.slane %v868_v36, 6  ;;  %v624_v38 = vrot.slane %v579_v16, 1  ;;  %v717_v60 = vsel %vm229_vm4, %v716_v22, %v715_v63  ;;  %v4898_v23 = vpop.permute.xlu1 %1153  ;;  %v562_v16 = vpop.permute.xlu0 %561 }
 0x21c   :  { %981 = vperm.xlu1 %3632, %v4129_v11   ;;  %2325 = vperm.xlu0 %3687, %v4129_v11   ;;  %v907_v33 = vsel %vm220_vm1, %v906_v26, %v866_v35  ;;  %v966_v31 = vld [vmem:[#allocation8 + $0x48] sm:$0x1]  ;;  %v1004_v14 = vrot.slane %v965_v59, 7  ;;  %v4895_v56 = vsel %vm238_vm7, %v428_v25, %v427_v32  ;;  %v623_v1 = vsel %vm235_vm6, %v622_v7, %v621_v37  ;;  %v773_v27 = vld [vmem:[#allocation8 + $0xa6] sm:$0x1] }
 0x21d   :  { %v814_v48 = vrot.slane %v772_v9, 4  ;;  %v964_v5 = vld [vmem:[#allocation8 + $0x8] sm:$0x1]  ;;  %6381 = vst [vmem:[#allocation46_spill] sm:$0xff] %v4898_v23  ;;  %v4901_v36 = vsel %vm238_vm7, %v526_v34, %v525_v53  ;;  %v720_v62 = vrot.slane %v676_v44, 2  ;;  %v813_v22 = vsel %vm226_vm3, %v812_v29, %v811_v4 }
 0x21e   :  { %v870_v26 = vld [vmem:[#allocation8 + $0x87] sm:$0x1]  ;;  %v910_v63 = vrot.slane %v869_v57, 5  ;;  %v372_v25 = vmul.f32 %v4855_v43, %v4878_v24  ;;  %v677_v35 = vld [vmem:[#allocation8 + $0xe5] sm:$0x1]  ;;  %v719_v7 = vsel %vm232_vm5, %v718_v3, %v717_v60  ;;  %v909_v59 = vsel %vm223_vm2, %v908_v28, %v907_v33 }
 0x21f   :  { %v967_v32 = vld [vmem:[#allocation8 + $0x68] sm:$0x1]  ;;  %v1006_v37 = vrot.slane %v966_v31, 6  ;;  %v6382_v9 = vmov 40   ;;  %v6219_v34 = vmov 22   ;;  %v4911_v53 = vsel %vm238_vm7, %v624_v38, %v623_v1 }
 0x220   :  { %3633 = vset.pattern.permute.xlu1 %v6382_v9  ;;  %3690 = vset.pattern.permute.xlu0 %v6219_v34  ;;  %6383 = vst [vmem:[#allocation47_spill] sm:$0xff] %v4911_v53  ;;  %v816_v29 = vrot.slane %v773_v27, 3  ;;  %v1005_v44 = vsel %vm220_vm1, %v1004_v14, %v964_v5  ;;  %v1063_v4 = vld [vmem:[#allocation8 + $0x29] sm:$0x1]  ;;  %v276_v43 = vmul.f32 %v4830_v42, %v4864_v13  ;;  %v774_v28 = vld [vmem:[#allocation8 + $0xc6] sm:$0x1]  ;;  %v660_v9 = vpop.permute.xlu0 %659 }
 0x221   :  { %v470_v3 = vmul.f32 %v464_v40, %v4895_v56  ;;  %1039 = vperm.xlu1 %3633, %v4129_v11   ;;  %2357 = vperm.xlu0 %3690, %v4125_v10   ;;  %v815_v57 = vsel %vm229_vm4, %v814_v48, %v813_v22  ;;  %v871_v60 = vld [vmem:[#allocation8 + $0xa7] sm:$0x1]  ;;  %v912_v33 = vrot.slane %v870_v26, 4  ;;  %v721_v38 = vsel %vm235_vm6, %v720_v62, %v719_v7  ;;  %v968_v1 = vld [vmem:[#allocation8 + $0x88] sm:$0x1]  ;;  %v4923_v40 = vpop.permute.xlu1 %1239 }
 0x222   :  { %v722_v31 = vrot.slane %v677_v35, 1  ;;  %v911_v14 = vsel %vm226_vm3, %v910_v63, %v909_v59  ;;  %v1008_v27 = vrot.slane %v967_v32, 5  ;;  %v374_v5 = vadd.f32 %v372_v25, %v276_v43  ;;  %6384 = vst [vmem:[#allocation48_spill] sm:$0xff] %v4923_v40  ;;  %v775_v34 = vld [vmem:[#allocation8 + $0xe6] sm:$0x1] }
 0x223   :  { %v568_v42 = vmul.f32 %v562_v16, %v4901_v36  ;;  %v1007_v6 = vsel %vm223_vm2, %v1006_v37, %v1005_v44  ;;  %v1064_v23 = vld [vmem:[#allocation8 + $0x49] sm:$0x1]  ;;  %v1102_v48 = vrot.slane %v1063_v4, 7  ;;  %v6385_v22 = vrot.slane %v4721_v18, 6  ;;  %v872_v25 = vld [vmem:[#allocation8 + $0xc7] sm:$0x1] }
 0x224   :  { %v817_v26 = vsel %vm232_vm5, %v816_v29, %v815_v57  ;;  %v818_v63 = vrot.slane %v774_v28, 2  ;;  %v914_v35 = vrot.slane %v871_v60, 3  ;;  %v1062_v16 = vld [vmem:[#allocation8 + $0x9] sm:$0x1]  ;;  %v472_v7 = vadd.f32 %v470_v3, %v374_v5  ;;  %v969_v18 = vld [vmem:[#allocation8 + $0xa8] sm:$0x1] }
 0x225   :  { %v4930_v62 = vsel %vm223_vm2, %v6385_v22, %v4837_v58  ;;  %v666_v59 = vmul.f32 %v660_v9, %v4911_v53  ;;  %v6386_v32 = vmov 9   ;;  %v6221_v37 = vmov 86   ;;  %v1161_v58 = vld [vmem:[#allocation8 + $0x2a] sm:$0x1]  ;;  %v1065_v3 = vld [vmem:[#allocation8 + $0x69] sm:$0x1]  ;;  %v4948_v22 = vpop.permute.xlu1 %1251 }
 0x226   :  { %3635 = vset.pattern.permute.xlu1 %v6386_v32  ;;  %3692 = vset.pattern.permute.xlu0 %v6221_v37  ;;  %v913_v44 = vsel %vm229_vm4, %v912_v33, %v911_v14  ;;  %v1010_v4 = vrot.slane %v968_v1, 4  ;;  %v4940_v29 = vsel %vm238_vm7, %v722_v31, %v721_v38  ;;  %v1009_v43 = vsel %vm226_vm3, %v1008_v27, %v1007_v6  ;;  %v4943_v57 = vld [vmem:[#allocation8 + $0x18e] sm:$0x1]  ;;  %v873_v9 = vld [vmem:[#allocation8 + $0xe7] sm:$0x1]  ;;  %v758_v32 = vpop.permute.xlu0 %757 }
 0x227   :  { %1079 = vperm.xlu1 %3635, %v4129_v11   ;;  %2423 = vperm.xlu0 %3692, %v4129_v11   ;;  %v1104_v28 = vrot.slane %v1064_v23, 6  ;;  %v570_v60 = vadd.f32 %v568_v42, %v472_v7  ;;  %v820_v5 = vrot.slane %v775_v34, 1  ;;  %v916_v33 = vrot.slane %v872_v25, 2  ;;  %v4946_v1 = vld [vmem:[#allocation8 + $0x1ae] sm:$0x1]  ;;  %6387 = vst [vmem:[#allocation49_spill] sm:$0xff] %v4948_v22 }
 0x228   :  { %v1103_v14 = vsel %vm220_vm1, %v1102_v48, %v1062_v16  ;;  %v819_v38 = vsel %vm235_vm6, %v818_v63, %v817_v26  ;;  %v915_v31 = vsel %vm232_vm5, %v914_v35, %v913_v44  ;;  %v970_v6 = vld [vmem:[#allocation8 + $0xc8] sm:$0x1]  ;;  %v1012_v27 = vrot.slane %v969_v18, 3  ;;  %v1162_v23 = vld [vmem:[#allocation8 + $0x4a] sm:$0x1] }
 0x229   :  { %v1200_v37 = vrot.slane %v1161_v58, 7  ;;  %v668_v40 = vadd.f32 %v666_v59, %v570_v60  ;;  %v764_v34 = vmul.f32 %v758_v32, %v4940_v29  ;;  %v1011_v42 = vsel %vm229_vm4, %v1010_v4, %v1009_v43  ;;  %v1066_v25 = vld [vmem:[#allocation8 + $0x89] sm:$0x1]  ;;  %v1160_v16 = vld [vmem:[#allocation8 + $0xa] sm:$0x1] }
 0x22a   :  { %v1106_v48 = vrot.slane %v1065_v3, 5  ;;  %v1612_v7 = vrot.slane %v4943_v57, 4  ;;  %v6388_v22 = vmov 41   ;;  %v6225_v53 = vmov 23   ;;  %v1259_v35 = vld [vmem:[#allocation8 + $0x2b] sm:$0x1]  ;;  %v856_v32 = vpop.permute.xlu0 %855 }
 0x22b   :  { %3636 = vset.pattern.permute.xlu1 %v6388_v22  ;;  %3695 = vset.pattern.permute.xlu0 %v6225_v53  ;;  %v918_v26 = vrot.slane %v873_v9, 1  ;;  %v1105_v63 = vsel %vm223_vm2, %v1104_v28, %v1103_v14  ;;  %v766_v44 = vadd.f32 %v764_v34, %v668_v40  ;;  %v4961_v59 = vsel %vm238_vm7, %v820_v5, %v819_v38  ;;  %v971_v18 = vld [vmem:[#allocation8 + $0xe8] sm:$0x1]  ;;  %v1163_v58 = vld [vmem:[#allocation8 + $0x6a] sm:$0x1]  ;;  %v4973_v22 = vpop.permute.xlu1 %1337 }
 0x22c   :  { %1137 = vperm.xlu1 %3636, %v4129_v11   ;;  %2455 = vperm.xlu0 %3695, %v4125_v10   ;;  %v1014_v4 = vrot.slane %v970_v6, 2  ;;  %v1202_v43 = vrot.slane %v1162_v23, 6  ;;  %v917_v3 = vsel %vm235_vm6, %v916_v33, %v915_v31  ;;  %v1013_v57 = vsel %vm232_vm5, %v1012_v27, %v1011_v42  ;;  %v1067_v60 = vld [vmem:[#allocation8 + $0xa9] sm:$0x1]  ;;  %6390 = vst [vmem:[#allocation50_spill] sm:$0xff] %v4973_v22 }
 0x22d   :  { %v1108_v9 = vrot.slane %v1066_v25, 4  ;;  %v1201_v28 = vsel %vm220_vm1, %v1200_v37, %v1160_v16  ;;  %v6389_v40 = vrot.slane %v4683_v15, 2  ;;  %v1107_v38 = vsel %vm226_vm3, %v1106_v48, %v1105_v63  ;;  %v1260_v33 = vld [vmem:[#allocation8 + $0x4b] sm:$0x1]  ;;  %v1357_v6 = vld [vmem:[#allocation8 + $0x2c] sm:$0x1] }
 0x22e   :  { %v1298_v31 = vrot.slane %v1259_v35, 7  ;;  %v6391_v27 = vrot.slane %v4723_v12, 5  ;;  %v862_v15 = vmul.f32 %v856_v32, %v4961_v59  ;;  %v1016_v23 = vrot.slane %v971_v18, 1  ;;  %v1258_v42 = vld [vmem:[#allocation8 + $0xb] sm:$0x1] }
 0x22f   :  { %v4970_v14 = vsel %vm235_vm6, %v6389_v40, %v4817_v54  ;;  %v1164_v54 = vld [vmem:[#allocation8 + $0x8a] sm:$0x1]  ;;  %v1204_v34 = vrot.slane %v1163_v58, 5  ;;  %v4981_v25 = vld [vmem:[#allocation8 + $0x1ce] sm:$0x1]  ;;  %v6392_v16 = vmov 10   ;;  %v4986_v48 = vsel %vm238_vm7, %v918_v26, %v917_v3 }
 0x230   :  { %v1611_v37 = vsel %vm226_vm3, %v6391_v27, %v4930_v62  ;;  %3638 = vset.pattern.permute.xlu1 %v6392_v16  ;;  %v6224_v40 = vmov 87   ;;  %6393 = vst [vmem:[#allocation51_spill] sm:$0xff] %v4986_v48  ;;  %v1015_v12 = vsel %vm235_vm6, %v1014_v4, %v1013_v57  ;;  %v1068_v63 = vld [vmem:[#allocation8 + $0xc9] sm:$0x1]  ;;  %v1110_v62 = vrot.slane %v1067_v60, 3 }
 0x231   :  { %3697 = vset.pattern.permute.xlu0 %v6224_v40  ;;  %v1203_v35 = vsel %vm223_vm2, %v1202_v43, %v1201_v28  ;;  %v864_v18 = vadd.f32 %v862_v15, %v766_v44  ;;  %1177 = vperm.xlu1 %3638, %v4129_v11   ;;  %v1109_v58 = vsel %vm229_vm4, %v1108_v9, %v1107_v38  ;;  %v1261_v32 = vld [vmem:[#allocation8 + $0x6b] sm:$0x1]  ;;  %v1300_v27 = vrot.slane %v1260_v33, 6  ;;  %v1358_v16 = vld [vmem:[#allocation8 + $0x4c] sm:$0x1]  ;;  %v4998_v43 = vpop.permute.xlu1 %1349  ;;  %v954_v28 = vpop.permute.xlu0 %953 }
 0x232   :  { %2521 = vperm.xlu0 %3697, %v4129_v11   ;;  %v1396_v40 = vrot.slane %v1357_v6, 7  ;;  %v1613_v26 = vsel %vm229_vm4, %v1612_v7, %v1611_v37  ;;  %v1165_v3 = vld [vmem:[#allocation8 + $0xaa] sm:$0x1]  ;;  %v1206_v53 = vrot.slane %v1164_v54, 4  ;;  %v1299_v4 = vsel %vm220_vm1, %v1298_v31, %v1258_v42  ;;  %v1356_v57 = vld [vmem:[#allocation8 + $0xc] sm:$0x1] }
 0x233   :  { %v4995_v60 = vld [vmem:[#allocation8 + $0x1ee] sm:$0x1]  ;;  %6394 = vst [vmem:[#allocation52_spill] sm:$0xff] %v4998_v43  ;;  %v5001_v9 = vsel %vm238_vm7, %v1016_v23, %v1015_v12  ;;  %v1069_v38 = vld [vmem:[#allocation8 + $0xe9] sm:$0x1]  ;;  %v1112_v33 = vrot.slane %v1068_v63, 2  ;;  %v1205_v6 = vsel %vm226_vm3, %v1204_v34, %v1203_v35  ;;  %v960_v37 = vmul.f32 %v954_v28, %v4986_v48 }
 0x234   :  { %v1455_v7 = vld [vmem:[#allocation8 + $0x2d] sm:$0x1]  ;;  %v1111_v31 = vsel %vm232_vm5, %v1110_v62, %v1109_v58  ;;  %v1262_v15 = vld [vmem:[#allocation8 + $0x8b] sm:$0x1]  ;;  %v1302_v54 = vrot.slane %v1261_v32, 5  ;;  %v1398_v5 = vrot.slane %v1358_v16, 6  ;;  %v1301_v34 = vsel %vm223_vm2, %v1300_v27, %v1299_v4 }
 0x235   :  { %v1359_v42 = vld [vmem:[#allocation8 + $0x6c] sm:$0x1]  ;;  %v6395_v44 = vmov 42   ;;  %v6226_v22 = vmov 24   ;;  %v1166_v23 = vld [vmem:[#allocation8 + $0xca] sm:$0x1]  ;;  %v1397_v35 = vsel %vm220_vm1, %v1396_v40, %v1356_v57  ;;  %v962_v28 = vadd.f32 %v960_v37, %v864_v18  ;;  %v5020_v37 = vpop.permute.xlu1 %1435 }
 0x236   :  { %3639 = vset.pattern.permute.xlu1 %v6395_v44  ;;  %3700 = vset.pattern.permute.xlu0 %v6226_v22  ;;  %v5008_v12 = vld [vmem:[#allocation8 + $0xea] sm:$0x1]  ;;  %v1208_v63 = vrot.slane %v1165_v3, 3  ;;  %v1114_v62 = vrot.slane %v1069_v38, 1  ;;  %v1207_v58 = vsel %vm229_vm4, %v1206_v53, %v1205_v6  ;;  %v1263_v32 = vld [vmem:[#allocation8 + $0xab] sm:$0x1]  ;;  %v1113_v3 = vsel %vm235_vm6, %v1112_v33, %v1111_v31  ;;  %v1052_v38 = vpop.permute.xlu0 %1051 }
 0x237   :  { %1235 = vperm.xlu1 %3639, %v4129_v11   ;;  %2553 = vperm.xlu0 %3700, %v4125_v10   ;;  %v1456_v16 = vld [vmem:[#allocation8 + $0x4d] sm:$0x1]  ;;  %v1494_v44 = vrot.slane %v1455_v7, 7  ;;  %v6396_v22 = vrot.slane %v4946_v1, 3  ;;  %v1304_v27 = vrot.slane %v1262_v15, 4  ;;  %v1400_v40 = vrot.slane %v1359_v42, 5 }
 0x238   :  { %v1360_v4 = vld [vmem:[#allocation8 + $0x8c] sm:$0x1]  ;;  %v1454_v18 = vld [vmem:[#allocation8 + $0xd] sm:$0x1]  ;;  %6397 = vst [vmem:[#allocation53_spill] sm:$0xff] %v5020_v37  ;;  %v1210_v48 = vrot.slane %v1166_v23, 2  ;;  %v1303_v53 = vsel %vm226_vm3, %v1302_v54, %v1301_v34  ;;  %v1399_v6 = vsel %vm223_vm2, %v1398_v5, %v1397_v35  ;;  %v1058_v1 = vmul.f32 %v1052_v38, %v5001_v9 }
 0x239   :  { %v1615_v43 = vsel %vm232_vm5, %v6396_v22, %v1613_v26  ;;  %v1553_v7 = vld [vmem:[#allocation8 + $0x2e] sm:$0x1]  ;;  %v1209_v22 = vsel %vm232_vm5, %v1208_v63, %v1207_v58  ;;  %v1212_v26 = vrot.slane %v5008_v12, 1  ;;  %v1457_v33 = vld [vmem:[#allocation8 + $0x6d] sm:$0x1]  ;;  %v1496_v31 = vrot.slane %v1456_v16, 6 }
 0x23a   :  { %v6398_v15 = vmov 11   ;;  %v6229_v42 = vmov 88   ;;  %v5030_v23 = vsel %vm238_vm7, %v1114_v62, %v1113_v3  ;;  %v1264_v54 = vld [vmem:[#allocation8 + $0xcb] sm:$0x1]  ;;  %v1306_v34 = vrot.slane %v1263_v32, 3 }
 0x23b   :  { %3641 = vset.pattern.permute.xlu1 %v6398_v15  ;;  %3702 = vset.pattern.permute.xlu0 %v6229_v42  ;;  %v1361_v5 = vld [vmem:[#allocation8 + $0xac] sm:$0x1]  ;;  %v1402_v35 = vrot.slane %v1360_v4, 4  ;;  %v1495_v38 = vsel %vm220_vm1, %v1494_v44, %v1454_v18  ;;  %v1060_v57 = vadd.f32 %v1058_v1, %v962_v28  ;;  %v1265_v12 = vld [vmem:[#allocation8 + $0xeb] sm:$0x1]  ;;  %v1305_v63 = vsel %vm229_vm4, %v1304_v27, %v1303_v53  ;;  %v5049_v27 = vpop.permute.xlu1 %1447 }
 0x23c   :  { %1275 = vperm.xlu1 %3641, %v4129_v11   ;;  %2619 = vperm.xlu0 %3702, %v4129_v11   ;;  %v1401_v58 = vsel %vm226_vm3, %v1400_v40, %v1399_v6  ;;  %v1554_v16 = vld [vmem:[#allocation8 + $0x4e] sm:$0x1]  ;;  %v1592_v15 = vrot.slane %v1553_v7, 7  ;;  %v6399_v62 = vrot.slane %v4711_v0, 1  ;;  %v1211_v44 = vsel %vm235_vm6, %v1210_v48, %v1209_v22  ;;  %v1458_v28 = vld [vmem:[#allocation8 + $0x8d] sm:$0x1]  ;;  %v1150_v40 = vpop.permute.xlu0 %1149 }
 0x23d   :  { %v1498_v3 = vrot.slane %v1457_v33, 5  ;;  %v1552_v4 = vld [vmem:[#allocation8 + $0xe] sm:$0x1]  ;;  %v6401_v18 = vrot.slane %v4981_v25, 2  ;;  %6402 = vst [vmem:[#allocation55_spill] sm:$0xff] %v5049_v27  ;;  %v1308_v53 = vrot.slane %v1264_v54, 2  ;;  %v1497_v0 = vsel %vm223_vm2, %v1496_v31, %v1495_v38 }
 0x23e   :  { %v5041_v32 = vsel %vm238_vm7, %v6399_v62, %v4970_v14  ;;  %v1362_v6 = vld [vmem:[#allocation8 + $0xcc] sm:$0x1]  ;;  %v1404_v7 = vrot.slane %v1361_v5, 3  ;;  %v1156_v14 = vmul.f32 %v1150_v40, %v5030_v23  ;;  %v1307_v48 = vsel %vm232_vm5, %v1306_v34, %v1305_v63  ;;  %v1555_v33 = vld [vmem:[#allocation8 + $0x6e] sm:$0x1] }
 0x23f   :  { %6400 = vst [vmem:[#allocation54_spill] sm:$0xff] %v5041_v32  ;;  %v5047_v1 = vsel %vm235_vm6, %v6401_v18, %v1615_v43  ;;  %v1403_v22 = vsel %vm229_vm4, %v1402_v35, %v1401_v58  ;;  %v1594_v62 = vrot.slane %v1554_v16, 6  ;;  %v6403_v25 = vmov 43   ;;  %v1459_v5 = vld [vmem:[#allocation8 + $0xad] sm:$0x1] }
 0x240   :  { %3642 = vset.pattern.permute.xlu1 %v6403_v25  ;;  %v6231_v43 = vmov 25   ;;  %v5058_v18 = vsel %vm238_vm7, %v1212_v26, %v1211_v44  ;;  %v1310_v54 = vrot.slane %v1265_v12, 1  ;;  %v1500_v42 = vrot.slane %v1458_v28, 4  ;;  %v1363_v35 = vld [vmem:[#allocation8 + $0xec] sm:$0x1] }
 0x241   :  { %3705 = vset.pattern.permute.xlu0 %v6231_v43  ;;  %6404 = vst [vmem:[#allocation56_spill] sm:$0xff] %v5058_v18  ;;  %v1593_v31 = vsel %vm220_vm1, %v1592_v15, %v1552_v4  ;;  %v349_v34 = vmul.f32 %v4546_v19, %v4225_v55  ;;  %v1158_v38 = vadd.f32 %v1156_v14, %v1060_v57  ;;  %v1406_v63 = vrot.slane %v1362_v6, 2  ;;  %v1659_v16 = vld [vmem:[#allocation8 + $0x12f] sm:$0x1]  ;;  %v1556_v44 = vld [vmem:[#allocation8 + $0x8e] sm:$0x1]  ;;  %v5072_v57 = vpop.permute.xlu1 %1533  ;;  %v1248_v4 = vpop.permute.xlu0 %1247 }
 0x242   :  { %1333 = vperm.xlu1 %3642, %v4129_v11   ;;  %2651 = vperm.xlu0 %3705, %v4125_v10   ;;  %v1499_v58 = vsel %vm226_vm3, %v1498_v3, %v1497_v0  ;;  %v1309_v26 = vsel %vm235_vm6, %v1308_v53, %v1307_v48  ;;  %v1405_v12 = vsel %vm232_vm5, %v1404_v7, %v1403_v22  ;;  %v1596_v28 = vrot.slane %v1555_v33, 5  ;;  %v1460_v40 = vld [vmem:[#allocation8 + $0xcd] sm:$0x1]  ;;  %v1660_v14 = vld [vmem:[#allocation8 + $0x14f] sm:$0x1] }
 0x243   :  { %v257_v15 = vmul.f32 %v4437_v39, %v4218_v52  ;;  %v447_v55 = vmul.f32 %v4551_v21, %v4239_v2  ;;  %6405 = vst [vmem:[#allocation57_spill] sm:$0xff] %v5072_v57  ;;  %v1502_v6 = vrot.slane %v1459_v5, 3  ;;  %v1595_v3 = vsel %vm223_vm2, %v1594_v62, %v1593_v31  ;;  %v1651_v22 = vld [vmem:[#allocation8 + $0x2f] sm:$0x1]  ;;  %v1557_v62 = vld [vmem:[#allocation8 + $0xae] sm:$0x1] }
 0x244   :  { %v1254_v0 = vmul.f32 %v1248_v4, %v5058_v18  ;;  %v1408_v53 = vrot.slane %v1363_v35, 1  ;;  %v1501_v7 = vsel %vm229_vm4, %v1500_v42, %v1499_v58  ;;  %v1704_v48 = vrot.slane %v1659_v16, 7  ;;  %v1658_v4 = vld [vmem:[#allocation8 + $0x10f] sm:$0x1]  ;;  %v1461_v42 = vld [vmem:[#allocation8 + $0xed] sm:$0x1] }
 0x245   :  { %v351_v33 = vadd.f32 %v349_v34, %v257_v15  ;;  %v6406_v52 = vmov 12   ;;  %v6230_v25 = vmov 89   ;;  %v5080_v2 = vsel %vm238_vm7, %v1310_v54, %v1309_v26  ;;  %v1652_v26 = vld [vmem:[#allocation8 + $0x4f] sm:$0x1]  ;;  %v6421_v57 = vld [vmem:[#allocation38_spill] sm:$0xff] }
 0x246   :  { %3644 = vset.pattern.permute.xlu1 %v6406_v52  ;;  %3707 = vset.pattern.permute.xlu0 %v6230_v25  ;;  %6407 = vst [vmem:[#allocation58_spill] sm:$0xff] %v5080_v2  ;;  %v1407_v5 = vsel %vm235_vm6, %v1406_v63, %v1405_v12  ;;  %v1598_v31 = vrot.slane %v1556_v44, 4  ;;  %v1256_v35 = vadd.f32 %v1254_v0, %v1158_v38  ;;  %v1504_v34 = vrot.slane %v1460_v40, 2  ;;  %v1661_v52 = vld [vmem:[#allocation8 + $0x16f] sm:$0x1]  ;;  %v5087_v63 = vpop.permute.xlu1 %1545  ;;  %v1346_v12 = vpop.permute.xlu0 %1345 }
 0x247   :  { %1373 = vperm.xlu1 %3644, %v4129_v11   ;;  %2717 = vperm.xlu0 %3707, %v4129_v11   ;;  %v1597_v58 = vsel %vm226_vm3, %v1596_v28, %v1595_v3  ;;  %v449_v16 = vadd.f32 %v447_v55, %v351_v33  ;;  %v1503_v15 = vsel %vm232_vm5, %v1502_v6, %v1501_v7  ;;  %v1706_v54 = vrot.slane %v1660_v14, 6  ;;  %v1558_v44 = vld [vmem:[#allocation8 + $0xce] sm:$0x1]  ;;  %v1650_v40 = vld [vmem:[#allocation8 + $0xf] sm:$0x1] }
 0x248   :  { %v1690_v25 = vrot.slane %v1651_v22, 7  ;;  %6408 = vst [vmem:[#allocation59_spill] sm:$0xff] %v5087_v63  ;;  %v5090_v38 = vsel %vm238_vm7, %v1408_v53, %v1407_v5  ;;  %v1600_v0 = vrot.slane %v1557_v62, 3  ;;  %v1705_v43 = vsel %vm220_vm1, %v1704_v48, %v1658_v4  ;;  %v1559_v3 = vld [vmem:[#allocation8 + $0xee] sm:$0x1] }
 0x249   :  { %6409 = vst [vmem:[#allocation60_spill] sm:$0xff] %v5090_v38  ;;  %v545_v28 = vmul.f32 %v4563_v45, %v4269_v50  ;;  %v1352_v55 = vmul.f32 %v1346_v12, %v5080_v2  ;;  %v1506_v6 = vrot.slane %v1461_v42, 1  ;;  %v1599_v7 = vsel %vm229_vm4, %v1598_v31, %v1597_v58  ;;  %v1757_v14 = vld [vmem:[#allocation8 + $0x130] sm:$0x1]  ;;  %v1662_v5 = vld [vmem:[#allocation8 + $0x18f] sm:$0x1] }
 0x24a   :  { %v643_v22 = vmul.f32 %v4605_v61, %v4299_v46  ;;  %v6410_v53 = vmov 44   ;;  %v6232_v33 = vmov 26   ;;  %v1505_v48 = vsel %vm235_vm6, %v1504_v34, %v1503_v15  ;;  %v1653_v50 = vld [vmem:[#allocation8 + $0x6f] sm:$0x1] }
 0x24b   :  { %3645 = vset.pattern.permute.xlu1 %v6410_v53  ;;  %3710 = vset.pattern.permute.xlu0 %v6232_v33  ;;  %v1708_v62 = vrot.slane %v1661_v52, 5  ;;  %v1692_v4 = vrot.slane %v1652_v26, 6  ;;  %v1354_v12 = vadd.f32 %v1352_v55, %v1256_v35  ;;  %v1602_v31 = vrot.slane %v1558_v44, 2  ;;  %v1663_v52 = vld [vmem:[#allocation8 + $0x1af] sm:$0x1]  ;;  %v5113_v33 = vpop.permute.xlu1 %1631  ;;  %v1444_v44 = vpop.permute.xlu0 %1443 }
 0x24c   :  { %1431 = vperm.xlu1 %3645, %v4129_v11   ;;  %2749 = vperm.xlu0 %3710, %v4125_v10   ;;  %v1707_v42 = vsel %vm223_vm2, %v1706_v54, %v1705_v43  ;;  %v1691_v46 = vsel %vm220_vm1, %v1690_v25, %v1650_v40  ;;  %v6411_v58 = vrot.slane %v4995_v60, 1  ;;  %v1601_v34 = vsel %vm232_vm5, %v1600_v0, %v1599_v7  ;;  %v1758_v35 = vld [vmem:[#allocation8 + $0x150] sm:$0x1]  ;;  %v1654_v54 = vld [vmem:[#allocation8 + $0x8f] sm:$0x1] }
 0x24d   :  { %v1604_v15 = vrot.slane %v1559_v3, 1  ;;  %v1802_v26 = vrot.slane %v1757_v14, 7  ;;  %v547_v55 = vadd.f32 %v545_v28, %v449_v16  ;;  %6413 = vst [vmem:[#allocation62_spill] sm:$0xff] %v5113_v33  ;;  %v5116_v43 = vsel %vm238_vm7, %v1506_v6, %v1505_v48  ;;  %v1756_v60 = vld [vmem:[#allocation8 + $0x110] sm:$0x1] }
 0x24e   :  { %v5110_v53 = vsel %vm238_vm7, %v6411_v58, %v5047_v1  ;;  %6414 = vst [vmem:[#allocation63_spill] sm:$0xff] %v5116_v43  ;;  %v1710_v25 = vrot.slane %v1662_v5, 4  ;;  %v1694_v40 = vrot.slane %v1653_v50, 5  ;;  %v741_v1 = vmul.f32 %v4674_v30, %v4333_v8  ;;  %v1655_v48 = vld [vmem:[#allocation8 + $0xaf] sm:$0x1] }
 0x24f   :  { %6412 = vst [vmem:[#allocation61_spill] sm:$0xff] %v5110_v53  ;;  %v1450_v0 = vmul.f32 %v1444_v44, %v5090_v38  ;;  %v1709_v3 = vsel %vm226_vm3, %v1708_v62, %v1707_v42  ;;  %v1693_v7 = vsel %vm223_vm2, %v1692_v4, %v1691_v46  ;;  %v645_v16 = vadd.f32 %v643_v22, %v547_v55  ;;  %v1759_v5 = vld [vmem:[#allocation8 + $0x170] sm:$0x1]  ;;  %v1664_v46 = vld [vmem:[#allocation8 + $0x1cf] sm:$0x1]  ;;  %v1542_v44 = vpop.permute.xlu0 %1541 }
 0x250   :  { %v6415_v28 = vmov 13   ;;  %v6234_v14 = vmov 90   ;;  %v1603_v6 = vsel %vm235_vm6, %v1602_v31, %v1601_v34  ;;  %v1804_v50 = vrot.slane %v1758_v35, 6  ;;  %v1749_v22 = vld [vmem:[#allocation8 + $0x30] sm:$0x1]  ;;  %v5135_v35 = vpop.permute.xlu1 %259 }
 0x251   :  { %3647 = vset.pattern.permute.xlu1 %v6415_v28  ;;  %3712 = vset.pattern.permute.xlu0 %v6234_v14  ;;  %v1452_v58 = vadd.f32 %v1450_v0, %v1354_v12  ;;  %v1712_v8 = vrot.slane %v1663_v52, 3  ;;  %v1696_v62 = vrot.slane %v1654_v54, 4  ;;  %v1803_v4 = vsel %vm220_vm1, %v1802_v26, %v1756_v60  ;;  %v5131_v55 = vld [vmem:[#allocation8 + $0x1ef] sm:$0x1]  ;;  %v1760_v26 = vld [vmem:[#allocation8 + $0x190] sm:$0x1] }
 0x252   :  { %1471 = vperm.xlu1 %3647, %v4129_v11   ;;  %2815 = vperm.xlu0 %3712, %v4129_v11   ;;  %v839_v42 = vmul.f32 %v4696_v47, %v4380_v17  ;;  %v1711_v31 = vsel %vm229_vm4, %v1710_v25, %v1709_v3  ;;  %v1695_v34 = vsel %vm226_vm3, %v1694_v40, %v1693_v7  ;;  %v1698_v54 = vrot.slane %v1655_v48, 3  ;;  %v1656_v28 = vld [vmem:[#allocation8 + $0xcf] sm:$0x1]  ;;  %v1750_v3 = vld [vmem:[#allocation8 + $0x50] sm:$0x1] }
 0x253   :  { %v743_v12 = vadd.f32 %v741_v1, %v645_v16  ;;  %v5138_v52 = vsel %vm238_vm7, %v1604_v15, %v1603_v6  ;;  %v1806_v60 = vrot.slane %v1759_v5, 5  ;;  %v937_v17 = vmul.f32 %v4701_v41, %v4416_v20  ;;  %v1748_v20 = vld [vmem:[#allocation8 + $0x10] sm:$0x1] }
 0x254   :  { %6416 = vst [vmem:[#allocation64_spill] sm:$0xff] %v5138_v52  ;;  %v1548_v0 = vmul.f32 %v1542_v44, %v5116_v43  ;;  %v1805_v25 = vsel %vm223_vm2, %v1804_v50, %v1803_v4  ;;  %v1788_v40 = vrot.slane %v1749_v22, 7  ;;  %v6417_v1 = vmov 45   ;;  %v1761_v4 = vld [vmem:[#allocation8 + $0x1b0] sm:$0x1] }
 0x255   :  { %v6233_v7 = vmov 27   ;;  %v1713_v15 = vsel %vm232_vm5, %v1712_v8, %v1711_v31  ;;  %v1714_v16 = vrot.slane %v1664_v46, 2  ;;  %v1716_v6 = vrot.slane %v5131_v55, 1  ;;  %v1751_v46 = vld [vmem:[#allocation8 + $0x70] sm:$0x1] }
 0x256   :  { %3648 = vset.pattern.permute.xlu1 %v6417_v1  ;;  %3715 = vset.pattern.permute.xlu0 %v6233_v7  ;;  %v1697_v48 = vsel %vm229_vm4, %v1696_v62, %v1695_v34  ;;  %v841_v5 = vadd.f32 %v839_v42, %v743_v12  ;;  %v1035_v44 = vmul.f32 %v4706_v49, %v4468_v51  ;;  %v1808_v22 = vrot.slane %v1760_v26, 4  ;;  %v1855_v1 = vld [vmem:[#allocation8 + $0x131] sm:$0x1]  ;;  %v6418_v62 = vld [vmem:[#allocation26_spill] sm:$0xff]  ;;  %v6419_v34 = vld [vmem:[#allocation35_spill] sm:$0xff]  ;;  %v5156_v12 = vpop.permute.xlu1 %295  ;;  %v1640_v51 = vpop.permute.xlu0 %1639 }
 0x257   :  { %v1550_v50 = vadd.f32 %v1548_v0, %v1452_v58  ;;  %1529 = vperm.xlu1 %3648, %v4129_v11   ;;  %2847 = vperm.xlu0 %3715, %v4125_v10   ;;  %v1700_v7 = vrot.slane %v1656_v28, 2  ;;  %v1807_v8 = vsel %vm226_vm3, %v1806_v60, %v1805_v25  ;;  %v1790_v55 = vrot.slane %v1750_v3, 6  ;;  %v1657_v58 = vld [vmem:[#allocation8 + $0xef] sm:$0x1]  ;;  %v1762_v33 = vld [vmem:[#allocation8 + $0x1d0] sm:$0x1] }
 0x258   :  { %v939_v31 = vadd.f32 %v937_v17, %v841_v5  ;;  %v1133_v42 = vmul.f32 %v6419_v34, %v6418_v62  ;;  %v1699_v0 = vsel %vm232_vm5, %v1698_v54, %v1697_v48  ;;  %v1789_v14 = vsel %vm220_vm1, %v1788_v40, %v1748_v20  ;;  %v1856_v25 = vld [vmem:[#allocation8 + $0x151] sm:$0x1]  ;;  %v1752_v40 = vld [vmem:[#allocation8 + $0x90] sm:$0x1] }
 0x259   :  { %v1646_v26 = vmul.f32 %v1640_v51, %v5138_v52  ;;  %v1715_v28 = vsel %vm235_vm6, %v1714_v16, %v1713_v15  ;;  %v1810_v60 = vrot.slane %v1761_v4, 3  ;;  %v1900_v3 = vrot.slane %v1855_v1, 7  ;;  %v6420_v5 = vld [vmem:[#allocation28_spill] sm:$0xff]  ;;  %v6423_v1 = vld [vmem:[#allocation30_spill] sm:$0xff] }
 0x25a   :  { %v1037_v17 = vadd.f32 %v1035_v44, %v939_v31  ;;  %v1231_v62 = vmul.f32 %v6421_v57, %v6420_v5  ;;  %v6422_v37 = vmov 14   ;;  %v6237_v43 = vmov 91   ;;  %v1854_v20 = vld [vmem:[#allocation8 + $0x111] sm:$0x1]  ;;  %v6424_v31 = vld [vmem:[#allocation39_spill] sm:$0xff] }
 0x25b   :  { %3650 = vset.pattern.permute.xlu1 %v6422_v37  ;;  %3717 = vset.pattern.permute.xlu0 %v6237_v43  ;;  %v1809_v54 = vsel %vm229_vm4, %v1808_v22, %v1807_v8  ;;  %v1792_v48 = vrot.slane %v1751_v46, 5  ;;  %v5167_v51 = vadd.f32 %v1646_v26, %v1550_v50  ;;  %v1701_v15 = vsel %vm235_vm6, %v1700_v7, %v1699_v0  ;;  %v1847_v37 = vld [vmem:[#allocation8 + $0x31] sm:$0x1]  ;;  %v5175_v22 = vld [vmem:[#allocation8 + $0x1f0] sm:$0x1]  ;;  %v5177_v50 = vpop.permute.xlu1 %353  ;;  %v1672_v26 = vpop.permute.xlu0 %1671 }
 0x25c   :  { %1569 = vperm.xlu1 %3650, %v4129_v11   ;;  %2913 = vperm.xlu0 %3717, %v4129_v11   ;;  %v1702_v16 = vrot.slane %v1657_v58, 1  ;;  %v1791_v44 = vsel %vm223_vm2, %v1790_v55, %v1789_v14  ;;  %v1135_v4 = vadd.f32 %v1133_v42, %v1037_v17  ;;  %v1329_v5 = vmul.f32 %v6424_v31, %v6423_v1  ;;  %v1857_v8 = vld [vmem:[#allocation8 + $0x171] sm:$0x1]  ;;  %v1753_v38 = vld [vmem:[#allocation8 + $0xb0] sm:$0x1]  ;;  %v6426_v42 = vld [vmem:[#allocation42_spill] sm:$0xff] }
 0x25d   :  { %v1902_v46 = vrot.slane %v1856_v25, 6  ;;  %v1811_v43 = vsel %vm232_vm5, %v1810_v60, %v1809_v54  ;;  %v1812_v52 = vrot.slane %v1762_v33, 2  ;;  %v1794_v7 = vrot.slane %v1752_v40, 4  ;;  %v6425_v55 = vld [vmem:[#allocation32_spill] sm:$0xff] }
 0x25e   :  { %v1901_v58 = vsel %vm220_vm1, %v1900_v3, %v1854_v20  ;;  %v1233_v14 = vadd.f32 %v1231_v62, %v1135_v4  ;;  %v1427_v0 = vmul.f32 %v6426_v42, %v6425_v55  ;;  %v1793_v17 = vsel %vm226_vm3, %v1792_v48, %v1791_v44  ;;  %v1848_v1 = vld [vmem:[#allocation8 + $0x51] sm:$0x1]  ;;  %v6430_v48 = vld [vmem:[#allocation34_spill] sm:$0xff]  ;;  %v1953_v44 = vld [vmem:[#allocation8 + $0x132] sm:$0x1] }
 0x25f   :  { %v1886_v63 = vrot.slane %v1847_v37, 7  ;;  %v5185_v25 = vsel %vm238_vm7, %v1716_v6, %v1715_v28  ;;  %v6428_v2 = vmov 46   ;;  %v6244_v27 = vmov 28   ;;  %v1858_v3 = vld [vmem:[#allocation8 + $0x191] sm:$0x1]  ;;  %v1738_v55 = vpop.permute.xlu0 %1737 }
 0x260   :  { %6427 = vst [vmem:[#allocation26_spill] sm:$0xff] %v5185_v25  ;;  %3651 = vset.pattern.permute.xlu1 %v6428_v2  ;;  %3720 = vset.pattern.permute.xlu0 %v6244_v27  ;;  %v5190_v33 = vsel %vm238_vm7, %v1702_v16, %v1701_v15  ;;  %v1814_v60 = vrot.slane %v5175_v22, 1  ;;  %v1904_v62 = vrot.slane %v1857_v8, 5  ;;  %v1846_v54 = vld [vmem:[#allocation8 + $0x11] sm:$0x1]  ;;  %v1331_v40 = vadd.f32 %v1329_v5, %v1233_v14  ;;  %v6431_v5 = vld [vmem:[#allocation37_spill] sm:$0xff]  ;;  %v5202_v14 = vpop.permute.xlu1 %393 }
 0x261   :  { %6429 = vst [vmem:[#allocation35_spill] sm:$0xff] %v5190_v33  ;;  %v1525_v20 = vmul.f32 %v5041_v32, %v6430_v48  ;;  %1627 = vperm.xlu1 %3651, %v4129_v11   ;;  %2945 = vperm.xlu0 %3720, %v4125_v10   ;;  %v1754_v2 = vld [vmem:[#allocation8 + $0xd0] sm:$0x1]  ;;  %v1796_v6 = vrot.slane %v1753_v38, 3  ;;  %v1903_v28 = vsel %vm223_vm2, %v1902_v46, %v1901_v58  ;;  %v1849_v37 = vld [vmem:[#allocation8 + $0x71] sm:$0x1] }
 0x262   :  { %v1813_v15 = vsel %vm235_vm6, %v1812_v52, %v1811_v43  ;;  %v1795_v16 = vsel %vm229_vm4, %v1794_v7, %v1793_v17  ;;  %v1888_v4 = vrot.slane %v1848_v1, 6  ;;  %v1429_v22 = vadd.f32 %v1427_v0, %v1331_v40  ;;  %v1755_v48 = vld [vmem:[#allocation8 + $0xf0] sm:$0x1]  ;;  %v1859_v27 = vld [vmem:[#allocation8 + $0x1b1] sm:$0x1] }
 0x263   :  { %v1623_v8 = vmul.f32 %v5110_v53, %v6431_v5  ;;  %v1906_v32 = vrot.slane %v1858_v3, 4  ;;  %v1887_v38 = vsel %vm220_vm1, %v1886_v63, %v1846_v54  ;;  %v1744_v46 = vmul.f32 %v1738_v55, %v5190_v33  ;;  %v1860_v43 = vld [vmem:[#allocation8 + $0x1d1] sm:$0x1]  ;;  %v1954_v7 = vld [vmem:[#allocation8 + $0x152] sm:$0x1] }
 0x264   :  { %v1798_v58 = vrot.slane %v1754_v2, 2  ;;  %v1905_v52 = vsel %vm226_vm3, %v1904_v62, %v1903_v28  ;;  %v1998_v17 = vrot.slane %v1953_v44, 7  ;;  %v1527_v0 = vadd.f32 %v1525_v20, %v1429_v22  ;;  %v1850_v53 = vld [vmem:[#allocation8 + $0x91] sm:$0x1]  ;;  %v1952_v54 = vld [vmem:[#allocation8 + $0x112] sm:$0x1]  ;;  %v5221_v55 = vpop.permute.xlu1 %451 }
 0x265   :  { %v1721_v1 = vmul.f32 %v5185_v25, %v1672_v26  ;;  %v6432_v40 = vmov 78   ;;  %v6249_v5 = vmov 92   ;;  %v1797_v3 = vsel %vm232_vm5, %v1796_v6, %v1795_v16  ;;  %v1945_v28 = vld [vmem:[#allocation8 + $0x32] sm:$0x1]  ;;  %v2238_v31 = vld [vmem:[#allocation8 + $0x15] sm:$0x1] }
 0x266   :  { %3653 = vset.pattern.permute.xlu1 %v6432_v40  ;;  %3722 = vset.pattern.permute.xlu0 %v6249_v5  ;;  %v1890_v63 = vrot.slane %v1849_v37, 5  ;;  %v5212_v2 = vadd.f32 %v1744_v46, %v5167_v51  ;;  %v5217_v62 = vsel %vm238_vm7, %v1814_v60, %v1813_v15  ;;  %v1908_v26 = vrot.slane %v1859_v27, 3  ;;  %v1955_v16 = vld [vmem:[#allocation8 + $0x172] sm:$0x1]  ;;  %v1770_v51 = vpop.permute.xlu0 %1769  ;;  %v1851_v5 = vld [vmem:[#allocation8 + $0xb1] sm:$0x1] }
 0x267   :  { %1643 = vperm.xlu1 %3653, %v4125_v10   ;;  %3011 = vperm.xlu0 %3722, %v4129_v11   ;;  %6433 = vst [vmem:[#allocation28_spill] sm:$0xff] %v5217_v62  ;;  %v1889_v20 = vsel %vm223_vm2, %v1888_v4, %v1887_v38  ;;  %v1625_v44 = vadd.f32 %v1623_v8, %v1527_v0  ;;  %v1800_v22 = vrot.slane %v1755_v48, 1  ;;  %v2000_v37 = vrot.slane %v1954_v7, 6  ;;  %v1861_v4 = vld [vmem:[#allocation8 + $0x1f1] sm:$0x1] }
 0x268   :  { %v1907_v6 = vsel %vm229_vm4, %v1906_v32, %v1905_v52  ;;  %v1799_v46 = vsel %vm235_vm6, %v1798_v58, %v1797_v3  ;;  %v1910_v40 = vrot.slane %v1860_v43, 2  ;;  %v1892_v33 = vrot.slane %v1850_v53, 4  ;;  %v1946_v48 = vld [vmem:[#allocation8 + $0x52] sm:$0x1] }
 0x269   :  { %v1999_v60 = vsel %vm220_vm1, %v1998_v17, %v1952_v54  ;;  %v1723_v27 = vadd.f32 %v1721_v1, %v1625_v44  ;;  %v1819_v15 = vmul.f32 %v5217_v62, %v1770_v51  ;;  %v1891_v8 = vsel %vm226_vm3, %v1890_v63, %v1889_v20  ;;  %v1956_v43 = vld [vmem:[#allocation8 + $0x192] sm:$0x1]  ;;  %v1852_v1 = vld [vmem:[#allocation8 + $0xd1] sm:$0x1]  ;;  %v2051_v54 = vld [vmem:[#allocation8 + $0x133] sm:$0x1] }
 0x26a   :  { %v1984_v32 = vrot.slane %v1945_v28, 7  ;;  %v6434_v38 = vmov 15   ;;  %v6253_v52 = vmov 29   ;;  %v1909_v58 = vsel %vm232_vm5, %v1908_v26, %v1907_v6  ;;  %v1944_v53 = vld [vmem:[#allocation8 + $0x12] sm:$0x1]  ;;  %v5239_v6 = vpop.permute.xlu1 %491 }
 0x26b   :  { %3654 = vset.pattern.permute.xlu1 %v6434_v38  ;;  %3725 = vset.pattern.permute.xlu0 %v6253_v52  ;;  %v2002_v7 = vrot.slane %v1955_v16, 5  ;;  %v5230_v0 = vadd.f32 %v1819_v15, %v1723_v27  ;;  %v5235_v17 = vsel %vm238_vm7, %v1800_v22, %v1799_v46  ;;  %v1894_v3 = vrot.slane %v1851_v5, 3  ;;  %v1947_v28 = vld [vmem:[#allocation8 + $0x72] sm:$0x1]  ;;  %v1836_v16 = vpop.permute.xlu0 %1835  ;;  %v1853_v5 = vld [vmem:[#allocation8 + $0xf1] sm:$0x1] }
 0x26c   :  { %1667 = vperm.xlu1 %3654, %v4129_v11   ;;  %3043 = vperm.xlu0 %3725, %v4125_v10   ;;  %6435 = vst [vmem:[#allocation38_spill] sm:$0xff] %v5235_v17  ;;  %v2001_v63 = vsel %vm223_vm2, %v2000_v37, %v1999_v60  ;;  %v1912_v20 = vrot.slane %v1861_v4, 1  ;;  %v1893_v26 = vsel %vm229_vm4, %v1892_v33, %v1891_v8  ;;  %v1986_v44 = vrot.slane %v1946_v48, 6  ;;  %v1957_v27 = vld [vmem:[#allocation8 + $0x1b2] sm:$0x1] }
 0x26d   :  { %v1911_v51 = vsel %vm235_vm6, %v1910_v40, %v1909_v58  ;;  %v2004_v15 = vrot.slane %v1956_v43, 4  ;;  %v1985_v22 = vsel %vm220_vm1, %v1984_v32, %v1944_v53  ;;  %v1842_v46 = vmul.f32 %v1836_v16, %v5235_v17  ;;  %v2052_v60 = vld [vmem:[#allocation8 + $0x153] sm:$0x1]  ;;  %v1948_v40 = vld [vmem:[#allocation8 + $0x92] sm:$0x1] }
 0x26e   :  { %v1896_v38 = vrot.slane %v1852_v1, 2  ;;  %v2003_v37 = vsel %vm226_vm3, %v2002_v7, %v2001_v63  ;;  %v2096_v4 = vrot.slane %v2051_v54, 7  ;;  %v3977_v33 = vmov 47   ;;  %v2050_v43 = vld [vmem:[#allocation8 + $0x113] sm:$0x1] }
 0x26f   :  { %v6252_v8 = vmov 93   ;;  %v1895_v48 = vsel %vm232_vm5, %v1894_v3, %v1893_v26  ;;  %v1988_v58 = vrot.slane %v1947_v28, 5  ;;  %v1844_v32 = vadd.f32 %v1842_v46, %v5212_v2  ;;  %v1958_v53 = vld [vmem:[#allocation8 + $0x1d2] sm:$0x1]  ;;  %v2043_v54 = vld [vmem:[#allocation8 + $0x33] sm:$0x1]  ;;  %v1868_v2 = vpop.permute.xlu0 %1867 }
 0x270   :  { %3656 = vset.pattern.permute.xlu1 %v3977_v33  ;;  %3727 = vset.pattern.permute.xlu0 %v6252_v8  ;;  %v5251_v7 = vsel %vm238_vm7, %v1912_v20, %v1911_v51  ;;  %v2006_v1 = vrot.slane %v1957_v27, 3  ;;  %v1987_v63 = vsel %vm223_vm2, %v1986_v44, %v1985_v22  ;;  %v1898_v16 = vrot.slane %v1853_v5, 1  ;;  %v2053_v26 = vld [vmem:[#allocation8 + $0x173] sm:$0x1]  ;;  %v5255_v33 = vpop.permute.xlu1 %549  ;;  %v1949_v8 = vld [vmem:[#allocation8 + $0xb2] sm:$0x1] }
 0x271   :  { %1725 = vperm.xlu1 %3656, %v4129_v11   ;;  %3109 = vperm.xlu0 %3727, %v4129_v11   ;;  %6436 = vst [vmem:[#allocation30_spill] sm:$0xff] %v5251_v7  ;;  %v2005_v3 = vsel %vm229_vm4, %v2004_v15, %v2003_v37  ;;  %v2098_v28 = vrot.slane %v2052_v60, 6  ;;  %v1897_v46 = vsel %vm235_vm6, %v1896_v38, %v1895_v48  ;;  %v1990_v52 = vrot.slane %v1948_v40, 4  ;;  %v1959_v27 = vld [vmem:[#allocation8 + $0x1f2] sm:$0x1] }
 0x272   :  { %v2097_v20 = vsel %vm220_vm1, %v2096_v4, %v2050_v43  ;;  %v1917_v51 = vmul.f32 %v5251_v7, %v1868_v2  ;;  %v2008_v17 = vrot.slane %v1958_v53, 2  ;;  %v1989_v44 = vsel %vm226_vm3, %v1988_v58, %v1987_v63  ;;  %v2044_v22 = vld [vmem:[#allocation8 + $0x53] sm:$0x1]  ;;  %v1950_v58 = vld [vmem:[#allocation8 + $0xd2] sm:$0x1] }
 0x273   :  { %v2082_v5 = vrot.slane %v2043_v54, 7  ;;  %v6256_v15 = vmov 30   ;;  %v2007_v37 = vsel %vm232_vm5, %v2006_v1, %v2005_v3  ;;  %v2054_v38 = vld [vmem:[#allocation8 + $0x193] sm:$0x1]  ;;  %v2100_v60 = vrot.slane %v2053_v26, 5  ;;  %v1934_v26 = vpop.permute.xlu0 %1933 }
 0x274   :  { %v2042_v48 = vld [vmem:[#allocation8 + $0x13] sm:$0x1]  ;;  %v1919_v4 = vadd.f32 %v1917_v51, %v5230_v0  ;;  %v5267_v40 = vsel %vm238_vm7, %v1898_v16, %v1897_v46  ;;  %v1992_v43 = vrot.slane %v1949_v8, 3  ;;  %v2099_v53 = vsel %vm223_vm2, %v2098_v28, %v2097_v20  ;;  %v2149_v63 = vld [vmem:[#allocation8 + $0x134] sm:$0x1]  ;;  %v5271_v3 = vpop.permute.xlu1 %589 }
 0x275   :  { %1729 = vperm.xlu1 %3656, %v4125_v10   ;;  %3730 = vset.pattern.permute.xlu0 %v6256_v15  ;;  %6437 = vst [vmem:[#allocation32_spill] sm:$0xff] %v5267_v40  ;;  %v2010_v54 = vrot.slane %v1959_v27, 1  ;;  %v1991_v2 = vsel %vm229_vm4, %v1990_v52, %v1989_v44  ;;  %v2045_v15 = vld [vmem:[#allocation8 + $0x73] sm:$0x1]  ;;  %v2084_v1 = vrot.slane %v2044_v22, 6  ;;  %v2009_v0 = vsel %vm235_vm6, %v2008_v17, %v2007_v37 }
 0x276   :  { %3141 = vperm.xlu0 %3730, %v4125_v10   ;;  %v2055_v51 = vld [vmem:[#allocation8 + $0x1b3] sm:$0x1]  ;;  %v2102_v7 = vrot.slane %v2054_v38, 4  ;;  %v2083_v16 = vsel %vm220_vm1, %v2082_v5, %v2042_v48  ;;  %v1940_v46 = vmul.f32 %v1934_v26, %v5267_v40  ;;  %v6438_v8 = vmov 79   ;;  %v1951_v28 = vld [vmem:[#allocation8 + $0xf2] sm:$0x1] }
 0x277   :  { %v1994_v20 = vrot.slane %v1950_v58, 2  ;;  %v2101_v27 = vsel %vm226_vm3, %v2100_v60, %v2099_v53  ;;  %v2150_v52 = vld [vmem:[#allocation8 + $0x154] sm:$0x1]  ;;  %v2194_v44 = vrot.slane %v2149_v63, 7  ;;  %v6259_v22 = vmov 94  }
 0x278   :  { %v1993_v17 = vsel %vm232_vm5, %v1992_v43, %v1991_v2  ;;  %v2046_v37 = vld [vmem:[#allocation8 + $0x93] sm:$0x1]  ;;  %v2086_v38 = vrot.slane %v2045_v15, 5  ;;  %v2148_v5 = vld [vmem:[#allocation8 + $0x114] sm:$0x1]  ;;  %v5281_v48 = vadd.f32 %v1940_v46, %v1844_v32  ;;  %v5285_v58 = vsel %vm238_vm7, %v2010_v54, %v2009_v0  ;;  %v5289_v2 = vpop.permute.xlu1 %647  ;;  %v1966_v15 = vpop.permute.xlu0 %1965 }
 0x279   :  { %3658 = vset.pattern.permute.xlu1 %v6438_v8  ;;  %6439 = vst [vmem:[#allocation34_spill] sm:$0xff] %v5285_v58  ;;  %v2056_v60 = vld [vmem:[#allocation8 + $0x1d3] sm:$0x1]  ;;  %v2104_v53 = vrot.slane %v2055_v51, 3  ;;  %v2085_v63 = vsel %vm223_vm2, %v2084_v1, %v2083_v16  ;;  %v2141_v26 = vld [vmem:[#allocation8 + $0x34] sm:$0x1]  ;;  %v1995_v32 = vsel %vm235_vm6, %v1994_v20, %v1993_v17  ;;  %v2195_v54 = vsel %vm220_vm1, %v2194_v44, %v2148_v5 }
 0x27a   :  { %1741 = vperm.xlu1 %3658, %v4125_v10   ;;  %3732 = vset.pattern.permute.xlu0 %v6259_v22  ;;  %v1996_v8 = vrot.slane %v1951_v28, 1  ;;  %v2103_v22 = vsel %vm229_vm4, %v2102_v7, %v2101_v27  ;;  %v2151_v40 = vld [vmem:[#allocation8 + $0x174] sm:$0x1]  ;;  %v2196_v43 = vrot.slane %v2150_v52, 6  ;;  %v2047_v46 = vld [vmem:[#allocation8 + $0xb3] sm:$0x1]  ;;  %v2015_v0 = vmul.f32 %v5285_v58, %v1966_v15 }
 0x27b   :  { %3207 = vperm.xlu0 %3732, %v4129_v11   ;;  %v2088_v62 = vrot.slane %v2046_v37, 4  ;;  %v6440_v51 = vmov 16   ;;  %v2057_v1 = vld [vmem:[#allocation8 + $0x1f3] sm:$0x1]  ;;  %v2106_v16 = vrot.slane %v2056_v60, 2  ;;  %v2087_v28 = vsel %vm226_vm3, %v2086_v38, %v2085_v63 }
 0x27c   :  { %v2142_v7 = vld [vmem:[#allocation8 + $0x54] sm:$0x1]  ;;  %v2180_v27 = vrot.slane %v2141_v26, 7  ;;  %v6266_v52 = vmov 31   ;;  %v2105_v20 = vsel %vm232_vm5, %v2104_v53, %v2103_v22  ;;  %v2198_v37 = vrot.slane %v2151_v40, 5  ;;  %v5305_v22 = vpop.permute.xlu1 %687  ;;  %v2032_v40 = vpop.permute.xlu0 %2031 }
 0x27d   :  { %v2152_v17 = vld [vmem:[#allocation8 + $0x194] sm:$0x1]  ;;  %v2017_v5 = vadd.f32 %v2015_v0, %v1919_v4  ;;  %v5301_v15 = vsel %vm238_vm7, %v1996_v8, %v1995_v32  ;;  %v2048_v60 = vld [vmem:[#allocation8 + $0xd3] sm:$0x1]  ;;  %v2090_v38 = vrot.slane %v2047_v46, 3  ;;  %v2197_v63 = vsel %vm223_vm2, %v2196_v43, %v2195_v54 }
 0x27e   :  { %3659 = vset.pattern.permute.xlu1 %v6440_v51  ;;  %v2140_v44 = vld [vmem:[#allocation8 + $0x14] sm:$0x1]  ;;  %6441 = vst [vmem:[#allocation37_spill] sm:$0xff] %v5301_v15  ;;  %v2247_v26 = vld [vmem:[#allocation8 + $0x135] sm:$0x1]  ;;  %v2108_v51 = vrot.slane %v2057_v1, 1  ;;  %v2089_v58 = vsel %vm229_vm4, %v2088_v62, %v2087_v28  ;;  %v2107_v4 = vsel %vm235_vm6, %v2106_v16, %v2105_v20  ;;  %v2038_v32 = vmul.f32 %v2032_v40, %v5301_v15 }
 0x27f   :  { %1765 = vperm.xlu1 %3659, %v4129_v11   ;;  %3735 = vset.pattern.permute.xlu0 %v6266_v52  ;;  %v2143_v52 = vld [vmem:[#allocation8 + $0x74] sm:$0x1]  ;;  %v2182_v25 = vrot.slane %v2142_v7, 6  ;;  %v2200_v0 = vrot.slane %v2152_v17, 4  ;;  %v2181_v8 = vsel %vm220_vm1, %v2180_v27, %v2140_v44  ;;  %v3982_v46 = vmov 48  }
 0x280   :  { %3239 = vperm.xlu0 %3735, %v4125_v10   ;;  %v2153_v53 = vld [vmem:[#allocation8 + $0x1b4] sm:$0x1]  ;;  %v2049_v43 = vld [vmem:[#allocation8 + $0xf3] sm:$0x1]  ;;  %v2092_v54 = vrot.slane %v2048_v60, 2  ;;  %v2199_v1 = vsel %vm226_vm3, %v2198_v37, %v2197_v63  ;;  %v2292_v28 = vrot.slane %v2247_v26, 7  ;;  %v2091_v16 = vsel %vm232_vm5, %v2090_v38, %v2089_v58  ;;  %v5321_v38 = vpop.permute.xlu1 %745 }
 0x281   :  { %v2248_v62 = vld [vmem:[#allocation8 + $0x155] sm:$0x1]  ;;  %v6269_v7 = vmov 95   ;;  %v2144_v20 = vld [vmem:[#allocation8 + $0x94] sm:$0x1]  ;;  %v2184_v17 = vrot.slane %v2143_v52, 5  ;;  %v2040_v44 = vadd.f32 %v2038_v32, %v5281_v48  ;;  %v5317_v60 = vsel %vm238_vm7, %v2108_v51, %v2107_v4  ;;  %v2064_v52 = vpop.permute.xlu0 %2063 }
 0x282   :  { %v2246_v27 = vld [vmem:[#allocation8 + $0x115] sm:$0x1]  ;;  %6442 = vst [vmem:[#allocation65_spill] sm:$0xff] %v5317_v60  ;;  %v2154_v37 = vld [vmem:[#allocation8 + $0x1d4] sm:$0x1]  ;;  %v2202_v63 = vrot.slane %v2153_v53, 3  ;;  %v2183_v26 = vsel %vm223_vm2, %v2182_v25, %v2181_v8  ;;  %v2093_v48 = vsel %vm235_vm6, %v2092_v54, %v2091_v16  ;;  %v2113_v4 = vmul.f32 %v5317_v60, %v2064_v52 }
 0x283   :  { %3661 = vset.pattern.permute.xlu1 %v3982_v46  ;;  %v2239_v40 = vld [vmem:[#allocation8 + $0x35] sm:$0x1]  ;;  %v2094_v46 = vrot.slane %v2049_v43, 1  ;;  %v2294_v58 = vrot.slane %v2248_v62, 6  ;;  %v2145_v32 = vld [vmem:[#allocation8 + $0xb4] sm:$0x1]  ;;  %v2293_v51 = vsel %vm220_vm1, %v2292_v28, %v2246_v27  ;;  %v2185_v8 = vsel %vm226_vm3, %v2184_v17, %v2183_v26 }
 0x284   :  { %1823 = vperm.xlu1 %3661, %v4129_v11   ;;  %3737 = vset.pattern.permute.xlu0 %v6269_v7  ;;  %v2201_v7 = vsel %vm229_vm4, %v2200_v0, %v2199_v1  ;;  %v2249_v15 = vld [vmem:[#allocation8 + $0x175] sm:$0x1]  ;;  %v2186_v42 = vrot.slane %v2144_v20, 4  ;;  %v2155_v25 = vld [vmem:[#allocation8 + $0x1f4] sm:$0x1]  ;;  %v2204_v53 = vrot.slane %v2154_v37, 2  ;;  %v2115_v54 = vadd.f32 %v2113_v4, %v2017_v5 }
 0x285   :  { %3305 = vperm.xlu0 %3737, %v4129_v11   ;;  %v2240_v0 = vld [vmem:[#allocation8 + $0x55] sm:$0x1]  ;;  %v2278_v43 = vrot.slane %v2239_v40, 7  ;;  %v2203_v1 = vsel %vm232_vm5, %v2202_v63, %v2201_v7  ;;  %v2296_v18 = vrot.slane %v2249_v15, 5  ;;  %v5330_v16 = vsel %vm238_vm7, %v2094_v46, %v2093_v48  ;;  %v2146_v28 = vld [vmem:[#allocation8 + $0xd4] sm:$0x1]  ;;  %v5335_v40 = vpop.permute.xlu1 %785  ;;  %v2130_v7 = vpop.permute.xlu0 %2129 }
 0x286   :  { %v2250_v62 = vld [vmem:[#allocation8 + $0x195] sm:$0x1]  ;;  %6443 = vst [vmem:[#allocation66_spill] sm:$0xff] %v5330_v16  ;;  %v2188_v20 = vrot.slane %v2145_v32, 3  ;;  %v2295_v27 = vsel %vm223_vm2, %v2294_v58, %v2293_v51  ;;  %v2206_v52 = vrot.slane %v2155_v25, 1  ;;  %v2187_v37 = vsel %vm229_vm4, %v2186_v42, %v2185_v8 }
 0x287   :  { %v2241_v60 = vld [vmem:[#allocation8 + $0x75] sm:$0x1]  ;;  %v2280_v17 = vrot.slane %v2240_v0, 6  ;;  %v6444_v26 = vmov 80   ;;  %v2205_v15 = vsel %vm235_vm6, %v2204_v53, %v2203_v1  ;;  %v2298_v63 = vrot.slane %v2250_v62, 4 }
 0x288   :  { %1827 = vperm.xlu1 %3661, %v4125_v10   ;;  %v2251_v5 = vld [vmem:[#allocation8 + $0x1b5] sm:$0x1]  ;;  %v2279_v46 = vsel %vm220_vm1, %v2278_v43, %v2238_v31  ;;  %v2136_v48 = vmul.f32 %v2130_v7, %v5330_v16  ;;  %v2147_v58 = vld [vmem:[#allocation8 + $0xf4] sm:$0x1]  ;;  %v2190_v32 = vrot.slane %v2146_v28, 2  ;;  %v2297_v42 = vsel %vm226_vm3, %v2296_v18, %v2295_v27 }
 0x289   :  { %v2189_v51 = vsel %vm232_vm5, %v2188_v20, %v2187_v37  ;;  %v2242_v4 = vld [vmem:[#allocation8 + $0x95] sm:$0x1]  ;;  %v2282_v25 = vrot.slane %v2241_v60, 5  ;;  %v5344_v0 = vsel %vm238_vm7, %v2206_v52, %v2205_v15  ;;  %v2300_v1 = vrot.slane %v2251_v5, 3  ;;  %v2337_v43 = vld [vmem:[#allocation8 + $0x36] sm:$0x1] }
 0x28a   :  { %v2138_v8 = vadd.f32 %v2136_v48, %v2040_v44  ;;  %6445 = vst [vmem:[#allocation67_spill] sm:$0xff] %v5344_v0  ;;  %v2252_v53 = vld [vmem:[#allocation8 + $0x1d5] sm:$0x1]  ;;  %v2281_v31 = vsel %vm223_vm2, %v2280_v17, %v2279_v46  ;;  %v2192_v62 = vrot.slane %v2147_v58, 1  ;;  %v6446_v7 = vmov 17   ;;  %v5349_v28 = vpop.permute.xlu1 %843  ;;  %v2162_v18 = vpop.permute.xlu0 %2161 }
 0x28b   :  { %v2191_v20 = vsel %vm235_vm6, %v2190_v32, %v2189_v51  ;;  %v2243_v60 = vld [vmem:[#allocation8 + $0xb5] sm:$0x1]  ;;  %v2284_v44 = vrot.slane %v2242_v4, 4  ;;  %v2211_v27 = vmul.f32 %v5344_v0, %v2162_v18  ;;  %v2302_v37 = vrot.slane %v2252_v53, 2  ;;  %v2338_v15 = vld [vmem:[#allocation8 + $0x56] sm:$0x1] }
 0x28c   :  { %3663 = vset.pattern.permute.xlu1 %v6444_v26  ;;  %v2299_v26 = vsel %vm229_vm4, %v2298_v63, %v2297_v42  ;;  %v2253_v52 = vld [vmem:[#allocation8 + $0x1f5] sm:$0x1]  ;;  %v2283_v17 = vsel %vm226_vm3, %v2282_v25, %v2281_v31  ;;  %v2376_v5 = vrot.slane %v2337_v43, 7  ;;  %v2336_v46 = vld [vmem:[#allocation8 + $0x16] sm:$0x1]  ;;  %v5357_v58 = vsel %vm238_vm7, %v2192_v62, %v2191_v20 }
 0x28d   :  { %1839 = vperm.xlu1 %3663, %v4125_v10   ;;  %v2301_v63 = vsel %vm232_vm5, %v2300_v1, %v2299_v26  ;;  %v2213_v48 = vadd.f32 %v2211_v27, %v2115_v54  ;;  %6447 = vst [vmem:[#allocation68_spill] sm:$0xff] %v5357_v58  ;;  %v2244_v32 = vld [vmem:[#allocation8 + $0xd5] sm:$0x1]  ;;  %v2286_v42 = vrot.slane %v2243_v60, 3  ;;  %v2304_v51 = vrot.slane %v2253_v52, 1 }
 0x28e   :  { %v2285_v4 = vsel %vm229_vm4, %v2284_v44, %v2283_v17  ;;  %v2378_v18 = vrot.slane %v2338_v15, 6  ;;  %v3984_v16 = vmov 49   ;;  %v2303_v31 = vsel %vm235_vm6, %v2302_v37, %v2301_v63  ;;  %v2245_v43 = vld [vmem:[#allocation8 + $0xf5] sm:$0x1]  ;;  %v2340_v20 = vld [vmem:[#allocation8 + $0x96] sm:$0x1] }
 0x28f   :  { %v2377_v1 = vsel %vm220_vm1, %v2376_v5, %v2336_v46  ;;  %v2288_v62 = vrot.slane %v2244_v32, 2  ;;  %v2287_v26 = vsel %vm232_vm5, %v2286_v42, %v2285_v4  ;;  %v2290_v52 = vrot.slane %v2245_v43, 1  ;;  %v2341_v5 = vld [vmem:[#allocation8 + $0xb6] sm:$0x1] }
 0x290   :  { %v5360_v53 = vpop.permute.xlu1 %883  ;;  %v2228_v25 = vpop.permute.xlu0 %2227  ;;  %v2379_v27 = vsel %vm223_vm2, %v2378_v18, %v2377_v1  ;;  %v2382_v63 = vrot.slane %v2340_v20, 4  ;;  %v2384_v4 = vrot.slane %v2341_v5, 3 }
 0x291   :  { %3664 = vset.pattern.permute.xlu1 %v6446_v7  ;;  %v2339_v7 = vld [vmem:[#allocation8 + $0x76] sm:$0x1]  ;;  %v2234_v54 = vmul.f32 %v2228_v25, %v5357_v58  ;;  %v2289_v15 = vsel %vm235_vm6, %v2288_v62, %v2287_v26  ;;  %v6452_v26 = vmov 18  }
 0x292   :  { %1863 = vperm.xlu1 %3664, %v4129_v11   ;;  %v2380_v60 = vrot.slane %v2339_v7, 5  ;;  %v5380_v42 = vsel %vm238_vm7, %v2290_v52, %v2289_v15  ;;  %v6451_v7 = vmov 81   ;;  %v3985_v15 = vmov 50  }
 0x293   :  { %v2236_v44 = vadd.f32 %v2234_v54, %v2138_v8  ;;  %6450 = vst [vmem:[#allocation71_spill] sm:$0xff] %v5380_v42  ;;  %v2343_v54 = vld [vmem:[#allocation8 + $0xf6] sm:$0x1] }
 0x294   :  { %v2381_v32 = vsel %vm226_vm3, %v2380_v60, %v2379_v27  ;;  %v2388_v20 = vrot.slane %v2343_v54, 1 }
 0x295   :  { %v5372_v37 = vpop.permute.xlu1 %941  ;;  %v2383_v18 = vsel %vm229_vm4, %v2382_v63, %v2381_v32 }
 0x296   :  { %3666 = vset.pattern.permute.xlu1 %v3984_v16  ;;  %v5368_v16 = vsel %vm238_vm7, %v2304_v51, %v2303_v31  ;;  %v2260_v17 = vpop.permute.xlu0 %2259  ;;  %v2342_v51 = vld [vmem:[#allocation8 + $0xd6] sm:$0x1] }
 0x297   :  { %1921 = vperm.xlu1 %3666, %v4129_v11   ;;  %6448 = vst [vmem:[#allocation69_spill] sm:$0xff] %v5368_v16  ;;  %v2309_v46 = vmul.f32 %v5368_v16, %v2260_v17  ;;  %v2386_v43 = vrot.slane %v2342_v51, 2  ;;  %v6456_v51 = vmov 82  }
 0x299   :  { %v5377_v8 = vadd.f32 %v2309_v46, %v2213_v48  ;;  %v2385_v48 = vsel %vm232_vm5, %v2384_v4, %v2383_v18 }
 0x29a   :  { %v2387_v52 = vsel %vm235_vm6, %v2386_v43, %v2385_v48  ;;  %v6458_v43 = vmov 83  }
 0x29b   :  { %1925 = vperm.xlu1 %3666, %v4125_v10   ;;  %6449 = vst [vmem:[#allocation70_spill] sm:$0xff] %v5377_v8  ;;  %v5385_v25 = vpop.permute.xlu1 %981  ;;  %v2326_v31 = vpop.permute.xlu0 %2325  ;;  %v5397_v17 = vsel %vm238_vm7, %v2388_v20, %v2387_v52  ;;  %v3987_v20 = vmov 52  }
 0x29c   :  { %v2332_v1 = vmul.f32 %v2326_v31, %v5380_v42  ;;  %6454 = vst [vmem:[#allocation73_spill] sm:$0xff] %v5397_v17  ;;  %v3986_v31 = vmov 51  }
 0x29e   :  { %v2334_v62 = vadd.f32 %v2332_v1, %v2236_v44 }
 0x29f   :  { %3668 = vset.pattern.permute.xlu1 %v6451_v7  ;;  %v6457_v7 = vmov 19  }
 0x2a0   :  { %1937 = vperm.xlu1 %3668, %v4125_v10   ;;  %v5391_v60 = vpop.permute.xlu1 %1039  ;;  %v5393_v27 = vpop.permute.xlu0 %2357 }
 0x2a1   :  { %6453 = vst [vmem:[#allocation72_spill] sm:$0xff] %v5393_v27 }
 0x2a4   :  { %3669 = vset.pattern.permute.xlu1 %v6452_v26 }
 0x2a5   :  { %1961 = vperm.xlu1 %3669, %v4129_v11  }
 0x2a6   :  { %v5400_v5 = vpop.permute.xlu1 %1079  ;;  %v2424_v44 = vpop.permute.xlu0 %2423 }
 0x2a7   :  { %v2430_v63 = vmul.f32 %v2424_v44, %v5397_v17  ;;  %v6462_v44 = vmov 84  }
 0x2a9   :  { %3671 = vset.pattern.permute.xlu1 %v3985_v15  ;;  %v5403_v46 = vadd.f32 %v2430_v63, %v2334_v62  ;;  %v6459_v62 = vmov 20  }
 0x2aa   :  { %2019 = vperm.xlu1 %3671, %v4129_v11  }
 0x2ab   :  { %6455 = vst [vmem:[#allocation74_spill] sm:$0xff] %v5403_v46  ;;  %v5406_v32 = vpop.permute.xlu1 %1137 }
 0x2ae   :  { %2023 = vperm.xlu1 %3671, %v4125_v10  }
 0x2b0   :  { %v5410_v4 = vpop.permute.xlu1 %1177 }
 0x2b2   :  { %3673 = vset.pattern.permute.xlu1 %v6456_v51  ;;  %v6464_v51 = vmov 21  }
 0x2b3   :  { %2035 = vperm.xlu1 %3673, %v4125_v10  }
 0x2b6   :  { %v5414_v18 = vpop.permute.xlu1 %1235 }
 0x2b7   :  { %3674 = vset.pattern.permute.xlu1 %v6457_v7 }
 0x2b8   :  { %2059 = vperm.xlu1 %3674, %v4129_v11  }
 0x2bb   :  { %v5417_v1 = vpop.permute.xlu1 %1275 }
 0x2bc   :  { %3676 = vset.pattern.permute.xlu1 %v3986_v31  ;;  %v3988_v31 = vmov 53  }
 0x2bd   :  { %2117 = vperm.xlu1 %3676, %v4129_v11  }
 0x2c1   :  { %2121 = vperm.xlu1 %3676, %v4125_v10   ;;  %v5420_v54 = vpop.permute.xlu1 %1333 }
 0x2c5   :  { %3678 = vset.pattern.permute.xlu1 %v6458_v43 }
 0x2c6   :  { %2133 = vperm.xlu1 %3678, %v4125_v10   ;;  %v5424_v48 = vpop.permute.xlu1 %1373 }
 0x2ca   :  { %3679 = vset.pattern.permute.xlu1 %v6459_v62  ;;  %v6466_v62 = vmov 85  }
 0x2cb   :  { %2157 = vperm.xlu1 %3679, %v4129_v11   ;;  %v5428_v26 = vpop.permute.xlu1 %1431 }
 0x2cc   :  { %6460 = vst [vmem:[#allocation75_spill] sm:$0xff] %v5428_v26  ;;  %v6503_v26 = vld [vmem:[#allocation41_spill] sm:$0xff] }
 0x2cf   :  { %3681 = vset.pattern.permute.xlu1 %v3987_v20 }
 0x2d0   :  { %2215 = vperm.xlu1 %3681, %v4129_v11  }
 0x2d1   :  { %v5431_v52 = vpop.permute.xlu1 %1471 }
 0x2d4   :  { %2219 = vperm.xlu1 %3681, %v4125_v10  }
 0x2d6   :  { %v5434_v15 = vpop.permute.xlu1 %1529 }
 0x2d7   :  { %6461 = vst [vmem:[#allocation76_spill] sm:$0xff] %v5434_v15 }
 0x2d8   :  { %3683 = vset.pattern.permute.xlu1 %v6462_v44  ;;  %v6468_v44 = vmov 22  }
 0x2d9   :  { %2231 = vperm.xlu1 %3683, %v4125_v10  }
 0x2db   :  { %v5438_v63 = vpop.permute.xlu1 %1569 }
 0x2dc   :  { %6463 = vst [vmem:[#allocation77_spill] sm:$0xff] %v5438_v63 }
 0x2dd   :  { %3684 = vset.pattern.permute.xlu1 %v6464_v51 }
 0x2de   :  { %2255 = vperm.xlu1 %3684, %v4129_v11  }
 0x2e0   :  { %v5442_v7 = vpop.permute.xlu1 %1627 }
 0x2e1   :  { %6465 = vst [vmem:[#allocation78_spill] sm:$0xff] %v5442_v7 }
 0x2e2   :  { %3686 = vset.pattern.permute.xlu1 %v3988_v31  ;;  %v3989_v31 = vmov 54  }
 0x2e3   :  { %2313 = vperm.xlu1 %3686, %v4129_v11  }
 0x2e6   :  { %v5445_v43 = vpop.permute.xlu1 %1643 }
 0x2e7   :  { %2317 = vperm.xlu1 %3686, %v4125_v10  }
 0x2eb   :  { %3688 = vset.pattern.permute.xlu1 %v6466_v62  ;;  %v5449_v20 = vpop.permute.xlu1 %1667  ;;  %v6471_v62 = vmov 86  }
 0x2ec   :  { %6467 = vst [vmem:[#allocation79_spill] sm:$0xff] %v5449_v20  ;;  %2329 = vperm.xlu1 %3688, %v4125_v10  }
 0x2f0   :  { %3689 = vset.pattern.permute.xlu1 %v6468_v44  ;;  %v5453_v51 = vpop.permute.xlu1 %1725  ;;  %v6473_v44 = vmov 23  }
 0x2f1   :  { %6469 = vst [vmem:[#allocation80_spill] sm:$0xff] %v5453_v51  ;;  %2353 = vperm.xlu1 %3689, %v4129_v11   ;;  %v3995_v51 = vmov 58  }
 0x2f4   :  { %v5456_v46 = vpop.permute.xlu1 %1729 }
 0x2f5   :  { %6470 = vst [vmem:[#allocation81_spill] sm:$0xff] %v5456_v46  ;;  %3691 = vset.pattern.permute.xlu1 %v3989_v31  ;;  %v3990_v31 = vmov 55  }
 0x2f6   :  { %2411 = vperm.xlu1 %3691, %v4129_v11  }
 0x2f9   :  { %v5459_v8 = vpop.permute.xlu1 %1741 }
 0x2fa   :  { %2415 = vperm.xlu1 %3691, %v4125_v10  }
 0x2fe   :  { %3693 = vset.pattern.permute.xlu1 %v6471_v62  ;;  %v5463_v27 = vpop.permute.xlu1 %1765  ;;  %v6477_v62 = vmov 87  }
 0x2ff   :  { %6472 = vst [vmem:[#allocation82_spill] sm:$0xff] %v5463_v27  ;;  %2427 = vperm.xlu1 %3693, %v4125_v10  }
 0x303   :  { %3694 = vset.pattern.permute.xlu1 %v6473_v44  ;;  %v5467_v17 = vpop.permute.xlu1 %1823  ;;  %v6479_v44 = vmov 24  }
 0x304   :  { %6474 = vst [vmem:[#allocation83_spill] sm:$0xff] %v5467_v17  ;;  %2451 = vperm.xlu1 %3694, %v4129_v11  }
 0x307   :  { %v5470_v42 = vpop.permute.xlu1 %1827 }
 0x308   :  { %6475 = vst [vmem:[#allocation84_spill] sm:$0xff] %v5470_v42  ;;  %3696 = vset.pattern.permute.xlu1 %v3990_v31  ;;  %v3991_v31 = vmov 56  }
 0x309   :  { %2509 = vperm.xlu1 %3696, %v4129_v11  }
 0x30c   :  { %v5473_v16 = vpop.permute.xlu1 %1839 }
 0x30d   :  { %6476 = vst [vmem:[#allocation85_spill] sm:$0xff] %v5473_v16  ;;  %2513 = vperm.xlu1 %3696, %v4125_v10  }
 0x311   :  { %3698 = vset.pattern.permute.xlu1 %v6477_v62  ;;  %v5477_v58 = vpop.permute.xlu1 %1863  ;;  %v6483_v62 = vmov 88  }
 0x312   :  { %6478 = vst [vmem:[#allocation86_spill] sm:$0xff] %v5477_v58  ;;  %2525 = vperm.xlu1 %3698, %v4125_v10  }
 0x316   :  { %3699 = vset.pattern.permute.xlu1 %v6479_v44  ;;  %v5481_v46 = vpop.permute.xlu1 %1921  ;;  %v6485_v44 = vmov 25  }
 0x317   :  { %6480 = vst [vmem:[#allocation87_spill] sm:$0xff] %v5481_v46  ;;  %2549 = vperm.xlu1 %3699, %v4129_v11  }
 0x31a   :  { %v5484_v42 = vpop.permute.xlu1 %1925 }
 0x31b   :  { %6481 = vst [vmem:[#allocation88_spill] sm:$0xff] %v5484_v42  ;;  %3701 = vset.pattern.permute.xlu1 %v3991_v31  ;;  %v3992_v31 = vmov 57  }
 0x31c   :  { %2607 = vperm.xlu1 %3701, %v4129_v11  }
 0x31f   :  { %v5487_v0 = vpop.permute.xlu1 %1937 }
 0x320   :  { %6482 = vst [vmem:[#allocation89_spill] sm:$0xff] %v5487_v0  ;;  %2611 = vperm.xlu1 %3701, %v4125_v10   ;;  %v6498_v0 = vld [vmem:[#allocation16_spill] sm:$0xff] }
 0x321   :  { %v267_v20 = vmul.f32 %v6498_v0, %v4437_v39 }
 0x324   :  { %3703 = vset.pattern.permute.xlu1 %v6483_v62  ;;  %v5491_v17 = vpop.permute.xlu1 %1961  ;;  %v3319_v62 = vld [vmem:[#allocation7 + $0x8] sm:$0xff] }
 0x325   :  { %6484 = vst [vmem:[#allocation90_spill] sm:$0xff] %v5491_v17  ;;  %2623 = vperm.xlu1 %3703, %v4125_v10   ;;  %3326 = vrot.lane.b32.xlu0 %v3319_v62, %s3993_s4  ;;  %v6489_v17 = vmov 89  }
 0x329   :  { %3704 = vset.pattern.permute.xlu1 %v6485_v44  ;;  %v5495_v46 = vpop.permute.xlu1 %2019  ;;  %3337 = vrot.lane.b32.xlu0 %v3319_v62, %s3994_s28  ;;  %v6496_v62 = vld [vmem:[#allocation17_spill] sm:$0xff] }
 0x32a   :  { %6486 = vst [vmem:[#allocation91_spill] sm:$0xff] %v5495_v46  ;;  %2647 = vperm.xlu1 %3704, %v4129_v11   ;;  %v277_v7 = vmul.f32 %v6496_v62, %v4437_v39  ;;  %v256_v39 = vmul.f32 %v4864_v13, %v6503_v26  ;;  %v6506_v26 = vld [vmem:[#allocation29_spill] sm:$0xff] }
 0x32d   :  { %v5498_v42 = vpop.permute.xlu1 %2023 }
 0x32e   :  { %6487 = vst [vmem:[#allocation92_spill] sm:$0xff] %v5498_v42  ;;  %3706 = vset.pattern.permute.xlu1 %v3992_v31  ;;  %v6491_v31 = vmov 26  }
 0x32f   :  { %2705 = vperm.xlu1 %3706, %v4129_v11  }
 0x332   :  { %v5501_v58 = vpop.permute.xlu1 %2035 }
 0x333   :  { %6488 = vst [vmem:[#allocation93_spill] sm:$0xff] %v5501_v58  ;;  %2709 = vperm.xlu1 %3706, %v4125_v10   ;;  %v6494_v58 = vld [vmem:[#allocation19_spill] sm:$0xff] }
 0x337   :  { %3708 = vset.pattern.permute.xlu1 %v6489_v17  ;;  %v5506_v44 = vpop.permute.xlu1 %2059  ;;  %v373_v17 = vmul.f32 %v6494_v58, %v4546_v19  ;;  %v348_v58 = vmul.f32 %v4878_v24, %v5156_v12  ;;  %v6504_v12 = vld [vmem:[#allocation25_spill] sm:$0xff] }
 0x338   :  { %6490 = vst [vmem:[#allocation94_spill] sm:$0xff] %v5506_v44  ;;  %2721 = vperm.xlu1 %3708, %v4125_v10   ;;  %v6495_v44 = vld [vmem:[#allocation18_spill] sm:$0xff] }
 0x339   :  { %v361_v27 = vmul.f32 %v6495_v44, %v4546_v19  ;;  %v375_v16 = vadd.f32 %v373_v17, %v277_v7  ;;  %v6501_v19 = vld [vmem:[#allocation23_spill] sm:$0xff]  ;;  %v360_v7 = vmul.f32 %v5177_v50, %v4878_v24 }
 0x33a   :  { %v569_v44 = vmul.f32 %v6501_v19, %v4563_v45  ;;  %v6505_v19 = vld [vmem:[#allocation24_spill] sm:$0xff] }
 0x33b   :  { %v363_v62 = vadd.f32 %v361_v27, %v267_v20  ;;  %v655_v27 = vmul.f32 %v6505_v19, %v4605_v61  ;;  %v350_v20 = vadd.f32 %v348_v58, %v256_v39 }
 0x33c   :  { %3709 = vset.pattern.permute.xlu1 %v6491_v31  ;;  %v5511_v42 = vpop.permute.xlu1 %2117  ;;  %v6497_v31 = vld [vmem:[#allocation21_spill] sm:$0xff] }
 0x33d   :  { %6492 = vst [vmem:[#allocation95_spill] sm:$0xff] %v5511_v42  ;;  %2745 = vperm.xlu1 %3709, %v4129_v11   ;;  %v471_v42 = vmul.f32 %v6497_v31, %v4551_v21  ;;  %v6502_v31 = vld [vmem:[#allocation22_spill] sm:$0xff] }
 0x33e   :  { %v557_v63 = vmul.f32 %v6502_v31, %v4563_v45  ;;  %v544_v45 = vmul.f32 %v4901_v36, %v5239_v6  ;;  %v6509_v6 = vld [vmem:[#allocation47_spill] sm:$0xff] }
 0x33f   :  { %v473_v0 = vadd.f32 %v471_v42, %v375_v16  ;;  %v458_v16 = vmul.f32 %v5221_v55, %v4895_v56  ;;  %v6507_v42 = vmov 90  }
 0x340   :  { %v5514_v46 = vpop.permute.xlu1 %2121 }
 0x341   :  { %6493 = vst [vmem:[#allocation96_spill] sm:$0xff] %v5514_v46  ;;  %3711 = vset.pattern.permute.xlu1 %v3995_v51  ;;  %v6499_v46 = vld [vmem:[#allocation20_spill] sm:$0xff]  ;;  %v571_v31 = vadd.f32 %v569_v44, %v473_v0  ;;  %v642_v44 = vmul.f32 %v6509_v6, %v5271_v3 }
 0x342   :  { %2803 = vperm.xlu1 %3711, %v4129_v11   ;;  %v459_v51 = vmul.f32 %v6499_v46, %v4551_v21  ;;  %v446_v21 = vmul.f32 %v4895_v56, %v5202_v14  ;;  %v667_v46 = vmul.f32 %v6504_v12, %v4605_v61  ;;  %v266_v14 = vmul.f32 %v5135_v35, %v4864_v13  ;;  %v6508_v61 = vld [vmem:[#allocation27_spill] sm:$0xff]  ;;  %v6510_v13 = vld [vmem:[#allocation33_spill] sm:$0xff]  ;;  %v6512_v3 = vld [vmem:[#allocation40_spill] sm:$0xff] }
 0x343   :  { %v863_v35 = vmul.f32 %v6510_v13, %v4696_v47  ;;  %v556_v56 = vmul.f32 %v5255_v33, %v4901_v36  ;;  %v838_v36 = vmul.f32 %v4961_v59, %v5335_v40  ;;  %v2345_v33 = vld [vmem:[#allocation8 + $0x136] sm:$0x1]  ;;  %v6516_v40 = vld [vmem:[#allocation51_spill] sm:$0xff]  ;;  %v1034_v13 = vmul.f32 %v5001_v9, %v5385_v25 }
 0x344   :  { %v461_v17 = vadd.f32 %v459_v51, %v363_v62  ;;  %v753_v51 = vmul.f32 %v6508_v61, %v4674_v30  ;;  %v448_v58 = vadd.f32 %v446_v21, %v350_v20  ;;  %v669_v62 = vadd.f32 %v667_v46, %v571_v31  ;;  %v6511_v21 = vld [vmem:[#allocation31_spill] sm:$0xff]  ;;  %v6515_v31 = vld [vmem:[#allocation44_spill] sm:$0xff] }
 0x345   :  { %v5531_v15 = vpop.permute.xlu1 %2133  ;;  %v362_v39 = vadd.f32 %v360_v7, %v266_v14  ;;  %v851_v12 = vmul.f32 %v6511_v21, %v4696_v47  ;;  %v654_v7 = vmul.f32 %v5289_v2, %v6509_v6  ;;  %v6514_v47 = vld [vmem:[#allocation36_spill] sm:$0xff]  ;;  %v752_v2 = vmul.f32 %v5321_v38, %v4940_v29 }
 0x346   :  { %6500 = vst [vmem:[#allocation19_spill] sm:$0xff] %v5531_v15  ;;  %2807 = vperm.xlu1 %3711, %v4125_v10   ;;  %v765_v15 = vmul.f32 %v6506_v26, %v4674_v30  ;;  %v559_v50 = vadd.f32 %v557_v63, %v461_v17  ;;  %v546_v0 = vadd.f32 %v544_v45, %v448_v58  ;;  %v2390_v6 = vrot.slane %v2345_v33, 7  ;;  %v2347_v33 = vld [vmem:[#allocation8 + $0x176] sm:$0x1] }
 0x347   :  { %v740_v63 = vmul.f32 %v4940_v29, %v5305_v22  ;;  %v961_v17 = vmul.f32 %v6512_v3, %v4701_v41  ;;  %v460_v46 = vadd.f32 %v458_v16, %v362_v39  ;;  %v949_v45 = vmul.f32 %v6514_v47, %v4701_v41  ;;  %v2346_v39 = vld [vmem:[#allocation8 + $0x156] sm:$0x1]  ;;  %v6520_v3 = vld [vmem:[#allocation39_spill] sm:$0xff] }
 0x348   :  { %v657_v55 = vadd.f32 %v655_v27, %v559_v50  ;;  %v767_v30 = vadd.f32 %v765_v15, %v669_v62  ;;  %v644_v20 = vadd.f32 %v642_v44, %v546_v0  ;;  %v6513_v27 = vmov 27   ;;  %v6519_v0 = vld [vmem:[#allocation49_spill] sm:$0xff] }
 0x349   :  { %v1059_v26 = vmul.f32 %v6515_v31, %v4706_v49  ;;  %v558_v14 = vadd.f32 %v556_v56, %v460_v46  ;;  %v850_v62 = vmul.f32 %v5349_v28, %v4961_v59  ;;  %v948_v59 = vmul.f32 %v5372_v37, %v6516_v40  ;;  %v6522_v37 = vld [vmem:[#allocation56_spill] sm:$0xff]  ;;  %v6524_v31 = vld [vmem:[#allocation42_spill] sm:$0xff] }
 0x34a   :  { %3713 = vset.pattern.permute.xlu1 %v6507_v42  ;;  %v5557_v24 = vpop.permute.xlu1 %2157  ;;  %v755_v19 = vadd.f32 %v753_v51, %v657_v55  ;;  %v865_v15 = vadd.f32 %v863_v35, %v767_v30  ;;  %v742_v16 = vadd.f32 %v740_v63, %v644_v20  ;;  %v936_v42 = vmul.f32 %v6516_v40, %v5360_v53  ;;  %v6517_v51 = vld [vmem:[#allocation46_spill] sm:$0xff]  ;;  %v2344_v35 = vld [vmem:[#allocation8 + $0x116] sm:$0x1]  ;;  %v6518_v53 = vld [vmem:[#allocation43_spill] sm:$0xff] }
 0x34b   :  { %2819 = vperm.xlu1 %3713, %v4125_v10   ;;  %v1157_v58 = vmul.f32 %v6517_v51, %v6419_v34  ;;  %v656_v41 = vadd.f32 %v654_v7, %v558_v14  ;;  %v1047_v56 = vmul.f32 %v6518_v53, %v4706_v49  ;;  %v1255_v63 = vmul.f32 %v6519_v0, %v6421_v57  ;;  %v5620_v40 = vld [vmem:[#allocation8 + $0x196] sm:$0x1] }
 0x34c   :  { %v853_v50 = vadd.f32 %v851_v12, %v755_v19  ;;  %v963_v61 = vadd.f32 %v961_v17, %v865_v15  ;;  %v840_v44 = vadd.f32 %v838_v36, %v742_v16  ;;  %v3996_v30 = vmov 59   ;;  %v6521_v17 = vld [vmem:[#allocation52_spill] sm:$0xff] }
 0x34d   :  { %v754_v21 = vadd.f32 %v752_v2, %v656_v41  ;;  %v1132_v28 = vmul.f32 %v5030_v23, %v5400_v5  ;;  %v1353_v49 = vmul.f32 %v6521_v17, %v6520_v3  ;;  %v2391_v46 = vsel %vm220_vm1, %v2390_v6, %v2344_v35  ;;  %v6523_v5 = vld [vmem:[#allocation45_spill] sm:$0xff] }
 0x34e   :  { %v951_v38 = vadd.f32 %v949_v45, %v853_v50  ;;  %v1061_v55 = vadd.f32 %v1059_v26, %v963_v61  ;;  %v938_v12 = vadd.f32 %v936_v42, %v840_v44  ;;  %v2392_v19 = vrot.slane %v2346_v39, 6  ;;  %v6525_v26 = vld [vmem:[#allocation55_spill] sm:$0xff] }
 0x34f   :  { %3714 = vset.pattern.permute.xlu1 %v6513_v27  ;;  %v5579_v22 = vpop.permute.xlu1 %2215  ;;  %v852_v20 = vadd.f32 %v850_v62, %v754_v21  ;;  %v1046_v36 = vmul.f32 %v5391_v60, %v5001_v9  ;;  %v1230_v27 = vmul.f32 %v6522_v37, %v5410_v4  ;;  %v1145_v47 = vmul.f32 %v6523_v5, %v6419_v34  ;;  %v6526_v60 = vld [vmem:[#allocation58_spill] sm:$0xff]  ;;  %v6528_v61 = vld [vmem:[#allocation59_spill] sm:$0xff] }
 0x350   :  { %2843 = vperm.xlu1 %3714, %v4129_v11   ;;  %v1159_v25 = vadd.f32 %v1157_v58, %v1061_v55  ;;  %v1036_v7 = vadd.f32 %v1034_v13, %v938_v12  ;;  %v1049_v15 = vadd.f32 %v1047_v56, %v951_v38  ;;  %v1451_v14 = vmul.f32 %v6525_v26, %v6524_v31  ;;  %v6527_v34 = vld [vmem:[#allocation54_spill] sm:$0xff]  ;;  %v6529_v13 = vld [vmem:[#allocation60_spill] sm:$0xff]  ;;  %v6531_v38 = vld [vmem:[#allocation61_spill] sm:$0xff] }
 0x351   :  { %v950_v2 = vadd.f32 %v948_v59, %v852_v20  ;;  %v1144_v9 = vmul.f32 %v5406_v32, %v5030_v23  ;;  %v1328_v4 = vmul.f32 %v6526_v60, %v5417_v1  ;;  %v1549_v51 = vmul.f32 %v6528_v61, %v6527_v34  ;;  %v6530_v32 = vld [vmem:[#allocation48_spill] sm:$0xff] }
 0x352   :  { %v1257_v45 = vadd.f32 %v1255_v63, %v1159_v25  ;;  %v1134_v42 = vadd.f32 %v1132_v28, %v1036_v7  ;;  %v2393_v58 = vsel %vm223_vm2, %v2392_v19, %v2391_v46  ;;  %v2394_v6 = vrot.slane %v2347_v33, 5  ;;  %v6532_v63 = vld [vmem:[#allocation63_spill] sm:$0xff]  ;;  %v6535_v28 = vld [vmem:[#allocation26_spill] sm:$0xff]  ;;  %v6538_v46 = vld [vmem:[#allocation64_spill] sm:$0xff] }
 0x353   :  { %v5596_v29 = vpop.permute.xlu1 %2219  ;;  %v1048_v41 = vadd.f32 %v1046_v36, %v950_v2  ;;  %v1242_v62 = vmul.f32 %v5414_v18, %v6522_v37  ;;  %v1426_v23 = vmul.f32 %v6529_v13, %v5424_v48  ;;  %v1243_v1 = vmul.f32 %v6530_v32, %v6421_v57  ;;  %v6534_v57 = vld [vmem:[#allocation50_spill] sm:$0xff]  ;;  %v6539_v33 = vld [vmem:[#allocation28_spill] sm:$0xff]  ;;  %v6544_v2 = vld [vmem:[#allocation53_spill] sm:$0xff] }
 0x354   :  { %3716 = vset.pattern.permute.xlu1 %v3996_v30  ;;  %v1355_v50 = vadd.f32 %v1353_v49, %v1257_v45  ;;  %v1232_v44 = vadd.f32 %v1230_v27, %v1134_v42  ;;  %v2396_v39 = vrot.slane %v5620_v40, 4  ;;  %v1647_v53 = vmul.f32 %v5445_v43, %v6531_v38  ;;  %v6543_v45 = vld [vmem:[#allocation35_spill] sm:$0xff] }
 0x355   :  { %2901 = vperm.xlu1 %3716, %v4129_v11   ;;  %v1146_v56 = vadd.f32 %v1144_v9, %v1048_v41  ;;  %v1340_v0 = vmul.f32 %v5420_v54, %v6526_v60  ;;  %v1524_v18 = vmul.f32 %v6532_v63, %v5431_v52  ;;  %v6533_v30 = vmov 91   ;;  %v6536_v54 = vld [vmem:[#allocation75_spill] sm:$0xff]  ;;  %v6537_v52 = vld [vmem:[#allocation77_spill] sm:$0xff]  ;;  %v6545_v60 = vld [vmem:[#allocation30_spill] sm:$0xff] }
 0x356   :  { %v1453_v35 = vadd.f32 %v1451_v14, %v1355_v50  ;;  %v1330_v55 = vadd.f32 %v1328_v4, %v1232_v44  ;;  %v1147_v21 = vadd.f32 %v1145_v47, %v1049_v15  ;;  %v1341_v12 = vmul.f32 %v6534_v57, %v6520_v3  ;;  %v6540_v3 = vld [vmem:[#allocation85_spill] sm:$0xff]  ;;  %v6542_v47 = vld [vmem:[#allocation79_spill] sm:$0xff]  ;;  %v6548_v41 = vld [vmem:[#allocation78_spill] sm:$0xff] }
 0x357   :  { %v1745_v43 = vmul.f32 %v5459_v8, %v6535_v28  ;;  %v1244_v25 = vadd.f32 %v1242_v62, %v1146_v56  ;;  %v1438_v49 = vmul.f32 %v6536_v54, %v6529_v13  ;;  %v1622_v19 = vmul.f32 %v6538_v46, %v6537_v52  ;;  %v6541_v8 = vld [vmem:[#allocation76_spill] sm:$0xff]  ;;  %v6546_v4 = vld [vmem:[#allocation89_spill] sm:$0xff]  ;;  %v6549_v62 = vld [vmem:[#allocation82_spill] sm:$0xff] }
 0x358   :  { %v5618_v16 = vpop.permute.xlu1 %2231  ;;  %v1551_v59 = vadd.f32 %v1549_v51, %v1453_v35  ;;  %v1428_v17 = vadd.f32 %v1426_v23, %v1330_v55  ;;  %v1245_v20 = vadd.f32 %v1243_v1, %v1147_v21  ;;  %v2395_v7 = vsel %vm226_vm3, %v2394_v6, %v2393_v58  ;;  %v6550_v13 = vld [vmem:[#allocation38_spill] sm:$0xff]  ;;  %v6556_v21 = vld [vmem:[#allocation32_spill] sm:$0xff]  ;;  %v6559_v54 = vld [vmem:[#allocation19_spill] sm:$0xff] }
 0x359   :  { %2905 = vperm.xlu1 %3716, %v4125_v10   ;;  %v1843_v37 = vmul.f32 %v6540_v3, %v6539_v33  ;;  %v1342_v27 = vadd.f32 %v1340_v0, %v1244_v25  ;;  %v1536_v5 = vmul.f32 %v6541_v8, %v6532_v63  ;;  %v1720_v26 = vmul.f32 %v6543_v45, %v6542_v47  ;;  %v6552_v35 = vld [vmem:[#allocation34_spill] sm:$0xff]  ;;  %v6554_v63 = vld [vmem:[#allocation80_spill] sm:$0xff] }
 0x35a   :  { %v1649_v36 = vadd.f32 %v1647_v53, %v1551_v59  ;;  %v1526_v15 = vadd.f32 %v1524_v18, %v1428_v17  ;;  %v1343_v14 = vadd.f32 %v1341_v12, %v1245_v20  ;;  %v1439_v42 = vmul.f32 %v6544_v2, %v6524_v31  ;;  %v6551_v31 = vld [vmem:[#allocation57_spill] sm:$0xff]  ;;  %v6557_v59 = vld [vmem:[#allocation62_spill] sm:$0xff]  ;;  %v2349_v52 = vld [vmem:[#allocation8 + $0x1b6] sm:$0x1] }
 0x35b   :  { %v1941_v50 = vmul.f32 %v6546_v4, %v6545_v60  ;;  %v6547_v61 = vmov 28   ;;  %v1440_v58 = vadd.f32 %v1438_v49, %v1342_v27  ;;  %v1634_v44 = vmul.f32 %v6548_v41, %v6538_v46  ;;  %v6553_v53 = vld [vmem:[#allocation93_spill] sm:$0xff]  ;;  %v6560_v20 = vld [vmem:[#allocation83_spill] sm:$0xff]  ;;  %v6561_v3 = vld [vmem:[#allocation90_spill] sm:$0xff] }
 0x35c   :  { %v1747_v9 = vadd.f32 %v1745_v43, %v1649_v36  ;;  %v1624_v6 = vadd.f32 %v1622_v19, %v1526_v15  ;;  %v1818_v23 = vmul.f32 %v6550_v13, %v6549_v62  ;;  %v1537_v32 = vmul.f32 %v6551_v31, %v6527_v34  ;;  %v6558_v17 = vld [vmem:[#allocation65_spill] sm:$0xff] }
 0x35d   :  { %3718 = vset.pattern.permute.xlu1 %v6533_v30  ;;  %v5644_v48 = vpop.permute.xlu1 %2255  ;;  %v2039_v56 = vmul.f32 %v6553_v53, %v6552_v35  ;;  %v1538_v55 = vadd.f32 %v1536_v5, %v1440_v58  ;;  %v1732_v18 = vmul.f32 %v6554_v63, %v6543_v45  ;;  %v6555_v30 = vld [vmem:[#allocation86_spill] sm:$0xff]  ;;  %v1441_v12 = vadd.f32 %v1439_v42, %v1343_v14  ;;  %v2435_v58 = vld [vmem:[#allocation8 + $0x37] sm:$0x1] }
 0x35e   :  { %2917 = vperm.xlu1 %3718, %v4125_v10   ;;  %v1845_v1 = vadd.f32 %v1843_v37, %v1747_v9  ;;  %v1722_v0 = vadd.f32 %v1720_v26, %v1624_v6  ;;  %v1916_v57 = vmul.f32 %v6556_v21, %v6555_v30  ;;  %v1635_v43 = vmul.f32 %v6557_v59, %v6531_v38  ;;  %v6562_v37 = vld [vmem:[#allocation37_spill] sm:$0xff]  ;;  %v6563_v38 = vld [vmem:[#allocation67_spill] sm:$0xff]  ;;  %v6565_v42 = vld [vmem:[#allocation94_spill] sm:$0xff] }
 0x35f   :  { %v2137_v34 = vmul.f32 %v6559_v54, %v6558_v17  ;;  %v1636_v46 = vadd.f32 %v1634_v44, %v1538_v55  ;;  %v1830_v36 = vmul.f32 %v6560_v20, %v6550_v13  ;;  %v2014_v27 = vmul.f32 %v6562_v37, %v6561_v3  ;;  %v6564_v26 = vld [vmem:[#allocation81_spill] sm:$0xff]  ;;  %v6566_v9 = vld [vmem:[#allocation66_spill] sm:$0xff]  ;;  %v6567_v6 = vld [vmem:[#allocation87_spill] sm:$0xff] }
 0x360   :  { %v1943_v25 = vadd.f32 %v1941_v50, %v1845_v1  ;;  %v1820_v19 = vadd.f32 %v1818_v23, %v1722_v0  ;;  %v3997_v15 = vmov 60   ;;  %v1539_v8 = vadd.f32 %v1537_v32, %v1441_v12  ;;  %v6568_v23 = vld [vmem:[#allocation68_spill] sm:$0xff]  ;;  %v6571_v55 = vld [vmem:[#allocation69_spill] sm:$0xff] }
 0x361   :  { %v2235_v47 = vmul.f32 %v5618_v16, %v6563_v38  ;;  %v1734_v45 = vadd.f32 %v1732_v18, %v1636_v46  ;;  %v1733_v14 = vmul.f32 %v6564_v26, %v6535_v28  ;;  %v2112_v4 = vmul.f32 %v6566_v9, %v6565_v42  ;;  %v2350_v32 = vld [vmem:[#allocation8 + $0x1d6] sm:$0x1]  ;;  %v2436_v1 = vld [vmem:[#allocation8 + $0x57] sm:$0x1] }
 0x362   :  { %3719 = vset.pattern.permute.xlu1 %v6547_v61  ;;  %v5667_v51 = vpop.permute.xlu1 %2313  ;;  %v2041_v5 = vadd.f32 %v2039_v56, %v1943_v25  ;;  %v1918_v2 = vadd.f32 %v1916_v57, %v1820_v19  ;;  %v2397_v50 = vsel %vm229_vm4, %v2396_v39, %v2395_v7  ;;  %v2398_v61 = vrot.slane %v2349_v52, 3  ;;  %v6569_v53 = vld [vmem:[#allocation84_spill] sm:$0xff]  ;;  %v6570_v39 = vld [vmem:[#allocation91_spill] sm:$0xff] }
 0x363   :  { %2941 = vperm.xlu1 %3719, %v4129_v11   ;;  %v1928_v41 = vmul.f32 %v6567_v6, %v6556_v21  ;;  %v1637_v44 = vadd.f32 %v1635_v43, %v1539_v8  ;;  %v1832_v62 = vadd.f32 %v1830_v36, %v1734_v45  ;;  %v2210_v28 = vmul.f32 %v6568_v23, %v5557_v24  ;;  %v6572_v21 = vld [vmem:[#allocation71_spill] sm:$0xff]  ;;  %v2434_v57 = vld [vmem:[#allocation8 + $0x17] sm:$0x1]  ;;  %v2351_v26 = vld [vmem:[#allocation8 + $0x1f6] sm:$0x1] }
 0x364   :  { %v2139_v16 = vadd.f32 %v2137_v34, %v2041_v5  ;;  %v2016_v13 = vadd.f32 %v2014_v27, %v1918_v2  ;;  %v1831_v40 = vmul.f32 %v6569_v53, %v6539_v33  ;;  %v2026_v7 = vmul.f32 %v6570_v39, %v6562_v37  ;;  %v6573_v59 = vld [vmem:[#allocation88_spill] sm:$0xff]  ;;  %v6574_v33 = vld [vmem:[#allocation95_spill] sm:$0xff] }
 0x365   :  { %v2474_v63 = vrot.slane %v2435_v58, 7  ;;  %v1735_v18 = vadd.f32 %v1733_v14, %v1637_v44  ;;  %v2308_v24 = vmul.f32 %v6572_v21, %v5644_v48  ;;  %v1930_v12 = vadd.f32 %v1928_v41, %v1832_v62  ;;  %v2437_v19 = vld [vmem:[#allocation8 + $0x77] sm:$0x1] }
 0x366   :  { %v5686_v49 = vpop.permute.xlu1 %2317  ;;  %v2237_v56 = vadd.f32 %v2235_v47, %v2139_v16  ;;  %v2114_v30 = vadd.f32 %v2112_v4, %v2016_v13  ;;  %v1929_v43 = vmul.f32 %v6573_v59, %v6545_v60  ;;  %v2124_v25 = vmul.f32 %v6574_v33, %v6566_v9  ;;  %v6575_v3 = vld [vmem:[#allocation92_spill] sm:$0xff]  ;;  %v6577_v47 = vld [vmem:[#allocation73_spill] sm:$0xff] }
 0x367   :  { %3721 = vset.pattern.permute.xlu1 %v3997_v15  ;;  %v2400_v34 = vrot.slane %v2350_v32, 2  ;;  %v2476_v52 = vrot.slane %v2436_v1, 6  ;;  %v1833_v20 = vadd.f32 %v1831_v40, %v1735_v18  ;;  %v2028_v36 = vadd.f32 %v2026_v7, %v1930_v12  ;;  %v2443_v14 = vld [vmem:[#allocation8 + $0x137] sm:$0x1] }
 0x368   :  { %2999 = vperm.xlu1 %3721, %v4129_v11   ;;  %v2212_v46 = vadd.f32 %v2210_v28, %v2114_v30  ;;  %v2027_v37 = vmul.f32 %v6575_v3, %v6552_v35  ;;  %v2222_v48 = vmul.f32 %v5579_v22, %v6568_v23  ;;  %v6576_v27 = vmov 92   ;;  %v2438_v2 = vld [vmem:[#allocation8 + $0x97] sm:$0x1] }
 0x369   :  { %v2399_v15 = vsel %vm232_vm5, %v2398_v61, %v2397_v50  ;;  %v2475_v8 = vsel %vm220_vm1, %v2474_v63, %v2434_v57  ;;  %v1931_v42 = vadd.f32 %v1929_v43, %v1833_v20  ;;  %v2126_v35 = vadd.f32 %v2124_v25, %v2028_v36  ;;  %v6578_v9 = vld [vmem:[#allocation96_spill] sm:$0xff] }
 0x36a   :  { %v2310_v5 = vadd.f32 %v2308_v24, %v2212_v46  ;;  %v2125_v22 = vmul.f32 %v6578_v9, %v6558_v17  ;;  %v2320_v4 = vmul.f32 %v5667_v51, %v6572_v21  ;;  %v2478_v58 = vrot.slane %v2437_v19, 5  ;;  %v2439_v51 = vld [vmem:[#allocation8 + $0xb7] sm:$0x1]  ;;  %v2533_v19 = vld [vmem:[#allocation8 + $0x38] sm:$0x1] }
 0x36b   :  { %v2330_v31 = vpop.permute.xlu1 %2329  ;;  %v2477_v61 = vsel %vm223_vm2, %v2476_v52, %v2475_v8  ;;  %v2029_v6 = vadd.f32 %v2027_v37, %v1931_v42  ;;  %v2224_v41 = vadd.f32 %v2222_v48, %v2126_v35  ;;  %v2223_v16 = vmul.f32 %v5596_v29, %v6563_v38  ;;  %v2442_v29 = vld [vmem:[#allocation8 + $0x117] sm:$0x1]  ;;  %v2535_v42 = vld [vmem:[#allocation8 + $0x78] sm:$0x1] }
 0x36c   :  { %v2333_v0 = vmul.f32 %v2330_v31, %v6571_v55  ;;  %3003 = vperm.xlu1 %3721, %v4125_v10   ;;  %v2401_v44 = vsel %vm235_vm6, %v2400_v34, %v2399_v15  ;;  %v2402_v62 = vrot.slane %v2351_v26, 1  ;;  %v2488_v13 = vrot.slane %v2443_v14, 7  ;;  %v2444_v31 = vld [vmem:[#allocation8 + $0x157] sm:$0x1]  ;;  %v2534_v15 = vld [vmem:[#allocation8 + $0x58] sm:$0x1] }
 0x36d   :  { %v2480_v23 = vrot.slane %v2438_v2, 4  ;;  %v6579_v28 = vmov 29   ;;  %v2127_v32 = vadd.f32 %v2125_v22, %v2029_v6  ;;  %v2322_v1 = vadd.f32 %v2320_v4, %v2224_v41  ;;  %v2440_v18 = vld [vmem:[#allocation8 + $0xd7] sm:$0x1]  ;;  %v2541_v41 = vld [vmem:[#allocation8 + $0x138] sm:$0x1] }
 0x36e   :  { %v5718_v54 = vadd.f32 %v2333_v0, %v2237_v56  ;;  %v2321_v53 = vmul.f32 %v5686_v49, %v6571_v55  ;;  %v2479_v38 = vsel %vm226_vm3, %v2478_v58, %v2477_v61  ;;  %v5748_v56 = vsel %vm238_vm7, %v2402_v62, %v2401_v44  ;;  %v2445_v0 = vld [vmem:[#allocation8 + $0x177] sm:$0x1] }
 0x36f   :  { %v2225_v39 = vadd.f32 %v2223_v16, %v2127_v32  ;;  %v2490_v63 = vrot.slane %v2444_v31, 6  ;;  %v2482_v30 = vrot.slane %v2439_v51, 3  ;;  %v2489_v49 = vsel %vm220_vm1, %v2488_v13, %v2442_v29  ;;  %v2446_v59 = vld [vmem:[#allocation8 + $0x197] sm:$0x1]  ;;  %v2536_v16 = vld [vmem:[#allocation8 + $0x98] sm:$0x1] }
 0x370   :  { %3723 = vset.pattern.permute.xlu1 %v6576_v27  ;;  %v2354_v60 = vpop.permute.xlu1 %2353  ;;  %v2481_v55 = vsel %vm229_vm4, %v2480_v23, %v2479_v38  ;;  %v3998_v12 = vmov 61   ;;  %v2492_v43 = vrot.slane %v2445_v0, 5  ;;  %v2441_v33 = vld [vmem:[#allocation8 + $0xf7] sm:$0x1]  ;;  %v2484_v25 = vrot.slane %v2440_v18, 2 }
 0x371   :  { %v2406_v45 = vmul.f32 %v6577_v47, %v2354_v60  ;;  %3015 = vperm.xlu1 %3723, %v4125_v10   ;;  %v2323_v24 = vadd.f32 %v2321_v53, %v2225_v39  ;;  %v2491_v52 = vsel %vm223_vm2, %v2490_v63, %v2489_v49  ;;  %v2483_v46 = vsel %vm232_vm5, %v2482_v30, %v2481_v55  ;;  %v2447_v36 = vld [vmem:[#allocation8 + $0x1b7] sm:$0x1]  ;;  %v2542_v51 = vld [vmem:[#allocation8 + $0x158] sm:$0x1] }
 0x372   :  { %v2494_v3 = vrot.slane %v2446_v59, 4  ;;  %v2486_v37 = vrot.slane %v2441_v33, 1  ;;  %v2493_v27 = vsel %vm226_vm3, %v2492_v43, %v2491_v52  ;;  %v2485_v60 = vsel %vm235_vm6, %v2484_v25, %v2483_v46  ;;  %v2540_v29 = vld [vmem:[#allocation8 + $0x118] sm:$0x1]  ;;  %v2631_v46 = vld [vmem:[#allocation8 + $0x39] sm:$0x1] }
 0x373   :  { %v5733_v50 = vadd.f32 %v2406_v45, %v2310_v5  ;;  %v2572_v8 = vrot.slane %v2533_v19, 7  ;;  %v2532_v5 = vld [vmem:[#allocation8 + $0x18] sm:$0x1]  ;;  %v2448_v45 = vld [vmem:[#allocation8 + $0x1d7] sm:$0x1]  ;;  %v2496_v26 = vrot.slane %v2447_v36, 3 }
 0x374   :  { %v2495_v14 = vsel %vm229_vm4, %v2494_v3, %v2493_v27  ;;  %v5767_v2 = vsel %vm238_vm7, %v2486_v37, %v2485_v60  ;;  %v2574_v35 = vrot.slane %v2534_v15, 6  ;;  %v6580_v9 = vmov 93   ;;  %v2543_v0 = vld [vmem:[#allocation8 + $0x178] sm:$0x1]  ;;  %v2632_v60 = vld [vmem:[#allocation8 + $0x59] sm:$0x1] }
 0x375   :  { %3724 = vset.pattern.permute.xlu1 %v6579_v28  ;;  %v2412_v17 = vpop.permute.xlu1 %2411  ;;  %v2573_v4 = vsel %vm220_vm1, %v2572_v8, %v2532_v5  ;;  %v2498_v61 = vrot.slane %v2448_v45, 2  ;;  %v2497_v6 = vsel %vm232_vm5, %v2496_v26, %v2495_v14  ;;  %v2576_v44 = vrot.slane %v2535_v42, 5  ;;  %v2538_v18 = vld [vmem:[#allocation8 + $0xd8] sm:$0x1]  ;;  %v2630_v15 = vld [vmem:[#allocation8 + $0x19] sm:$0x1] }
 0x376   :  { %v2418_v40 = vmul.f32 %v2412_v17, %v6577_v47  ;;  %3039 = vperm.xlu1 %3724, %v4129_v11   ;;  %v2575_v13 = vsel %vm223_vm2, %v2574_v35, %v2573_v4  ;;  %v6581_v28 = vmov 30   ;;  %v2586_v32 = vrot.slane %v2541_v41, 7  ;;  %v2539_v59 = vld [vmem:[#allocation8 + $0xf8] sm:$0x1]  ;;  %v2633_v42 = vld [vmem:[#allocation8 + $0x79] sm:$0x1] }
 0x377   :  { %v2499_v31 = vsel %vm235_vm6, %v2498_v61, %v2497_v6  ;;  %v2578_v53 = vrot.slane %v2536_v16, 4  ;;  %v2588_v63 = vrot.slane %v2542_v51, 6  ;;  %v2582_v43 = vrot.slane %v2538_v18, 2  ;;  %v2546_v5 = vld [vmem:[#allocation8 + $0x1d8] sm:$0x1] }
 0x378   :  { %v5745_v7 = vadd.f32 %v2418_v40, %v2322_v1  ;;  %v2537_v1 = vld [vmem:[#allocation8 + $0xb8] sm:$0x1]  ;;  %v2587_v49 = vsel %vm220_vm1, %v2586_v32, %v2540_v29  ;;  %v2584_v3 = vrot.slane %v2539_v59, 1  ;;  %v2672_v35 = vrot.slane %v2632_v60, 6  ;;  %v2639_v6 = vld [vmem:[#allocation8 + $0x139] sm:$0x1] }
 0x379   :  { %v2416_v21 = vpop.permute.xlu1 %2415  ;;  %v2580_v30 = vrot.slane %v2537_v1, 3  ;;  %v2589_v25 = vsel %vm223_vm2, %v2588_v63, %v2587_v49  ;;  %v2634_v41 = vld [vmem:[#allocation8 + $0x99] sm:$0x1]  ;;  %v2674_v16 = vrot.slane %v2633_v42, 5  ;;  %v2684_v32 = vrot.slane %v2639_v6, 7 }
 0x37a   :  { %v2419_v57 = vmul.f32 %v2416_v21, %v5748_v56  ;;  %3726 = vset.pattern.permute.xlu1 %v3998_v12  ;;  %v2590_v12 = vrot.slane %v2543_v0, 5  ;;  %v2640_v51 = vld [vmem:[#allocation8 + $0x159] sm:$0x1]  ;;  %v2730_v60 = vld [vmem:[#allocation8 + $0x5a] sm:$0x1] }
 0x37b   :  { %3097 = vperm.xlu1 %3726, %v4129_v11   ;;  %v2635_v1 = vld [vmem:[#allocation8 + $0xb9] sm:$0x1]  ;;  %v2686_v18 = vrot.slane %v2640_v51, 6  ;;  %v2738_v51 = vld [vmem:[#allocation8 + $0x15a] sm:$0x1] }
 0x37c   :  { %v5754_v34 = vadd.f32 %v2419_v57, %v2323_v24  ;;  %v3999_v57 = vmov 62   ;;  %v2638_v29 = vld [vmem:[#allocation8 + $0x119] sm:$0x1] }
 0x37d   :  { %v2641_v63 = vld [vmem:[#allocation8 + $0x179] sm:$0x1] }
 0x37e   :  { %v2428_v20 = vpop.permute.xlu1 %2427  ;;  %v2637_v59 = vld [vmem:[#allocation8 + $0xf9] sm:$0x1] }
 0x37f   :  { %v2431_v48 = vmul.f32 %v2428_v20, %v5748_v56  ;;  %3101 = vperm.xlu1 %3726, %v4125_v10   ;;  %v2545_v20 = vld [vmem:[#allocation8 + $0x1b8] sm:$0x1] }
 0x380   :  { %v2594_v45 = vrot.slane %v2545_v20, 3 }
 0x381   :  { %v5763_v47 = vadd.f32 %v2431_v48, %v5718_v54  ;;  %v2449_v54 = vld [vmem:[#allocation8 + $0x1f7] sm:$0x1]  ;;  %v2591_v48 = vsel %vm226_vm3, %v2590_v12, %v2589_v25  ;;  %v2688_v12 = vrot.slane %v2641_v63, 5 }
 0x382   :  { %v2500_v23 = vrot.slane %v2449_v54, 1  ;;  %v2596_v54 = vrot.slane %v2546_v5, 2  ;;  %v2644_v5 = vld [vmem:[#allocation8 + $0x1d9] sm:$0x1] }
 0x383   :  { %3728 = vset.pattern.permute.xlu1 %v6580_v9  ;;  %v2452_v22 = vpop.permute.xlu1 %2451  ;;  %v6582_v9 = vmov 94  }
 0x384   :  { %v2504_v58 = vmul.f32 %v5767_v2, %v2452_v22  ;;  %3113 = vperm.xlu1 %3728, %v4125_v10   ;;  %v5787_v39 = vsel %vm238_vm7, %v2500_v23, %v2499_v31 }
 0x386   :  { %v5775_v62 = vadd.f32 %v2504_v58, %v5733_v50  ;;  %v2577_v50 = vsel %vm226_vm3, %v2576_v44, %v2575_v13 }
 0x387   :  { %v2579_v55 = vsel %vm229_vm4, %v2578_v53, %v2577_v50  ;;  %v2676_v53 = vrot.slane %v2634_v41, 4  ;;  %v2737_v41 = vld [vmem:[#allocation8 + $0x13a] sm:$0x1] }
 0x388   :  { %3729 = vset.pattern.permute.xlu1 %v6581_v28  ;;  %v2510_v17 = vpop.permute.xlu1 %2509  ;;  %v2581_v52 = vsel %vm232_vm5, %v2580_v30, %v2579_v55  ;;  %v6583_v28 = vmov 31   ;;  %v2636_v30 = vld [vmem:[#allocation8 + $0xd9] sm:$0x1]  ;;  %v2685_v55 = vsel %vm220_vm1, %v2684_v32, %v2638_v29  ;;  %v2782_v32 = vrot.slane %v2737_v41, 7  ;;  %v2736_v29 = vld [vmem:[#allocation8 + $0x11a] sm:$0x1] }
 0x389   :  { %v2516_v40 = vmul.f32 %v2510_v17, %v5767_v2  ;;  %3137 = vperm.xlu1 %3729, %v4129_v11   ;;  %v2583_v27 = vsel %vm235_vm6, %v2582_v43, %v2581_v52  ;;  %v2680_v43 = vrot.slane %v2636_v30, 2  ;;  %v2687_v52 = vsel %vm223_vm2, %v2686_v18, %v2685_v55  ;;  %v2739_v18 = vld [vmem:[#allocation8 + $0x17a] sm:$0x1] }
 0x38a   :  { %v5807_v14 = vsel %vm238_vm7, %v2584_v3, %v2583_v27  ;;  %v2784_v30 = vrot.slane %v2738_v51, 6 }
 0x38b   :  { %v5784_v38 = vadd.f32 %v2516_v40, %v5745_v7  ;;  %v2544_v7 = vld [vmem:[#allocation8 + $0x198] sm:$0x1] }
 0x38c   :  { %v2514_v21 = vpop.permute.xlu1 %2513  ;;  %v2592_v36 = vrot.slane %v2544_v7, 4  ;;  %v4000_v7 = vmov 63  }
 0x38d   :  { %v2517_v24 = vmul.f32 %v2514_v21, %v5787_v39  ;;  %3731 = vset.pattern.permute.xlu1 %v3999_v57  ;;  %v2678_v21 = vrot.slane %v2635_v1, 3  ;;  %v2733_v1 = vld [vmem:[#allocation8 + $0xba] sm:$0x1] }
 0x38e   :  { %3195 = vperm.xlu1 %3731, %v4129_v11   ;;  %v2593_v26 = vsel %vm229_vm4, %v2592_v36, %v2591_v48  ;;  %v2643_v36 = vld [vmem:[#allocation8 + $0x1b9] sm:$0x1] }
 0x38f   :  { %v5794_v33 = vadd.f32 %v2517_v24, %v5754_v34  ;;  %v2670_v34 = vrot.slane %v2631_v46, 7  ;;  %v2595_v61 = vsel %vm232_vm5, %v2594_v45, %v2593_v26  ;;  %v2692_v45 = vrot.slane %v2643_v36, 3 }
 0x390   :  { %v2597_v31 = vsel %vm235_vm6, %v2596_v54, %v2595_v61  ;;  %v2645_v54 = vld [vmem:[#allocation8 + $0x1f9] sm:$0x1]  ;;  %v5851_v61 = vld [vmem:[#allocation7] sm:$0xff] }
 0x391   :  { %v2526_v19 = vpop.permute.xlu1 %2525  ;;  %v2671_v4 = vsel %vm220_vm1, %v2670_v34, %v2630_v15  ;;  %v2728_v34 = vld [vmem:[#allocation8 + $0x1a] sm:$0x1]  ;;  %vm3320_vm8 = vcmp.gt.f32.partialorder %v5851_v61, 0.5 }
 0x392   :  { %v2529_v37 = vmul.f32 %v2526_v19, %v5787_v39  ;;  %3199 = vperm.xlu1 %3731, %v4125_v10   ;;  %v2673_v13 = vsel %vm223_vm2, %v2672_v35, %v2671_v4  ;;  %v2729_v19 = vld [vmem:[#allocation8 + $0x3a] sm:$0x1] }
 0x393   :  { %v2731_v35 = vld [vmem:[#allocation8 + $0x7a] sm:$0x1] }
 0x394   :  { %v5803_v8 = vadd.f32 %v2529_v37, %v5763_v47  ;;  %v2547_v47 = vld [vmem:[#allocation8 + $0x1f8] sm:$0x1]  ;;  %v2682_v37 = vrot.slane %v2637_v59, 1  ;;  %v2735_v59 = vld [vmem:[#allocation8 + $0xfa] sm:$0x1] }
 0x395   :  { %v2598_v23 = vrot.slane %v2547_v47, 1 }
 0x396   :  { %3733 = vset.pattern.permute.xlu1 %v6582_v9  ;;  %v2550_v22 = vpop.permute.xlu1 %2549  ;;  %v2770_v9 = vrot.slane %v2730_v60, 6 }
 0x397   :  { %v2602_v58 = vmul.f32 %v5807_v14, %v2550_v22  ;;  %3211 = vperm.xlu1 %3733, %v4125_v10   ;;  %v5827_v0 = vsel %vm238_vm7, %v2598_v23, %v2597_v31  ;;  %v6584_v22 = vmov 95  }
 0x399   :  { %v5815_v44 = vadd.f32 %v2602_v58, %v5775_v62  ;;  %v2675_v62 = vsel %vm226_vm3, %v2674_v16, %v2673_v13  ;;  %v2732_v16 = vld [vmem:[#allocation8 + $0x9a] sm:$0x1]  ;;  %v2772_v13 = vrot.slane %v2731_v35, 5 }
 0x39a   :  { %v2677_v24 = vsel %vm229_vm4, %v2676_v53, %v2675_v62  ;;  %v2774_v53 = vrot.slane %v2732_v16, 4  ;;  %v2830_v16 = vld [vmem:[#allocation8 + $0x9b] sm:$0x1] }
 0x39b   :  { %3734 = vset.pattern.permute.xlu1 %v6583_v28  ;;  %v2608_v17 = vpop.permute.xlu1 %2607  ;;  %v2679_v46 = vsel %vm232_vm5, %v2678_v21, %v2677_v24  ;;  %v2734_v21 = vld [vmem:[#allocation8 + $0xda] sm:$0x1]  ;;  %v2783_v24 = vsel %vm220_vm1, %v2782_v32, %v2736_v29 }
 0x39c   :  { %v2614_v40 = vmul.f32 %v2608_v17, %v5807_v14  ;;  %3235 = vperm.xlu1 %3734, %v4129_v11   ;;  %v2681_v27 = vsel %vm235_vm6, %v2680_v43, %v2679_v46  ;;  %v2696_v17 = vrot.slane %v2645_v54, 1  ;;  %v2778_v43 = vrot.slane %v2734_v21, 2 }
 0x39d   :  { %v5845_v42 = vsel %vm238_vm7, %v2682_v37, %v2681_v27  ;;  %v2785_v46 = vsel %vm223_vm2, %v2784_v30, %v2783_v24  ;;  %v2832_v30 = vld [vmem:[#allocation8 + $0xdb] sm:$0x1] }
 0x39e   :  { %v5824_v50 = vadd.f32 %v2614_v40, %v5784_v38  ;;  %v2642_v38 = vld [vmem:[#allocation8 + $0x199] sm:$0x1] }
 0x39f   :  { %v2612_v49 = vpop.permute.xlu1 %2611  ;;  %v2690_v3 = vrot.slane %v2642_v38, 4  ;;  %v5870_v38 = vpop.permute.xlu0 %2455 }
 0x3a0   :  { %v2615_v57 = vmul.f32 %v2612_v49, %v5827_v0  ;;  %3736 = vset.pattern.permute.xlu1 %v4000_v7  ;;  %v2776_v49 = vrot.slane %v2733_v1, 3  ;;  %v2831_v1 = vld [vmem:[#allocation8 + $0xbb] sm:$0x1] }
 0x3a1   :  { %3293 = vperm.xlu1 %3736, %v4129_v11   ;;  %v2689_v11 = vsel %vm226_vm3, %v2688_v12, %v2687_v52  ;;  %v2786_v12 = vrot.slane %v2739_v18, 5 }
 0x3a2   :  { %v5834_v25 = vadd.f32 %v2615_v57, %v5794_v33  ;;  %v2768_v33 = vrot.slane %v2729_v19, 7  ;;  %v2691_v26 = vsel %vm229_vm4, %v2690_v3, %v2689_v11  ;;  %v2741_v3 = vld [vmem:[#allocation8 + $0x1ba] sm:$0x1] }
 0x3a3   :  { %v2693_v6 = vsel %vm232_vm5, %v2692_v45, %v2691_v26  ;;  %v2787_v27 = vsel %vm226_vm3, %v2786_v12, %v2785_v46  ;;  %v2742_v26 = vld [vmem:[#allocation8 + $0x1da] sm:$0x1]  ;;  %v2790_v35 = vrot.slane %v2741_v3, 3 }
 0x3a4   :  { %v2624_v20 = vpop.permute.xlu1 %2623  ;;  %v2769_v58 = vsel %vm220_vm1, %v2768_v33, %v2728_v34  ;;  %v2828_v33 = vld [vmem:[#allocation8 + $0x5b] sm:$0x1]  ;;  %v2792_v41 = vrot.slane %v2742_v26, 2 }
 0x3a5   :  { %v2627_v48 = vmul.f32 %v2624_v20, %v5827_v0  ;;  %3297 = vperm.xlu1 %3736, %v4125_v10   ;;  %v2771_v28 = vsel %vm223_vm2, %v2770_v9, %v2769_v58  ;;  %v2827_v20 = vld [vmem:[#allocation8 + $0x3b] sm:$0x1]  ;;  %v2868_v58 = vrot.slane %v2828_v33, 6 }
 0x3a6   :  { %v2773_v62 = vsel %vm226_vm3, %v2772_v13, %v2771_v28  ;;  %v2866_v34 = vrot.slane %v2827_v20, 7 }
 0x3a7   :  { %v2629_v15 = vadd.f32 %v2627_v48, %v5803_v8  ;;  %v2694_v8 = vrot.slane %v2644_v5, 2  ;;  %v2775_v57 = vsel %vm229_vm4, %v2774_v53, %v2773_v62  ;;  %v2780_v48 = vrot.slane %v2735_v59, 1  ;;  %v2826_v5 = vld [vmem:[#allocation8 + $0x1b] sm:$0x1] }
 0x3a8   :  { %v2777_v19 = vsel %vm232_vm5, %v2776_v49, %v2775_v57  ;;  %v2867_v54 = vsel %vm220_vm1, %v2866_v34, %v2826_v5  ;;  %v2872_v53 = vrot.slane %v2830_v16, 4  ;;  %v2833_v57 = vld [vmem:[#allocation8 + $0xfb] sm:$0x1]  ;;  %v2934_v16 = vld [vmem:[#allocation8 + $0x15c] sm:$0x1] }
 0x3a9   :  { %3738 = vset.pattern.permute.xlu1 %v6584_v22  ;;  %v2648_v4 = vpop.permute.xlu1 %2647  ;;  %v2779_v60 = vsel %vm235_vm6, %v2778_v43, %v2777_v19 }
 0x3aa   :  { %v2700_v47 = vmul.f32 %v5845_v42, %v2648_v4  ;;  %3309 = vperm.xlu1 %3738, %v4125_v10   ;;  %v2695_v10 = vsel %vm235_vm6, %v2694_v8, %v2693_v6  ;;  %v5882_v22 = vsel %vm238_vm7, %v2780_v48, %v2779_v60  ;;  %v2829_v4 = vld [vmem:[#allocation8 + $0x7b] sm:$0x1]  ;;  %v2743_v6 = vld [vmem:[#allocation8 + $0x1fa] sm:$0x1] }
 0x3ab   :  { %v5863_v63 = vsel %vm238_vm7, %v2696_v17, %v2695_v10  ;;  %6585 = vst [vmem:[#allocation18_spill] sm:$0xff] %v5882_v22  ;;  %v2870_v13 = vrot.slane %v2829_v4, 5  ;;  %v2869_v17 = vsel %vm223_vm2, %v2868_v58, %v2867_v54  ;;  %v2794_v10 = vrot.slane %v2743_v6, 1  ;;  %v2835_v4 = vld [vmem:[#allocation8 + $0x13b] sm:$0x1] }
 0x3ac   :  { %v2702_v23 = vadd.f32 %v2700_v47, %v5815_v44  ;;  %v2933_v54 = vld [vmem:[#allocation8 + $0x13c] sm:$0x1]  ;;  %v2880_v6 = vrot.slane %v2835_v4, 7 }
 0x3ad   :  { %v2871_v29 = vsel %vm226_vm3, %v2870_v13, %v2869_v17  ;;  %v2978_v13 = vrot.slane %v2933_v54, 7 }
 0x3ae   :  { %v2706_v31 = vpop.permute.xlu1 %2705  ;;  %3324 = vrot.lane.b32.xlu1 %v5851_v61, %s3993_s4  ;;  %v2873_v49 = vsel %vm229_vm4, %v2872_v53, %v2871_v29  ;;  %v2926_v53 = vld [vmem:[#allocation8 + $0x5c] sm:$0x1] }
 0x3af   :  { %v2712_v40 = vmul.f32 %v2706_v31, %v5845_v42  ;;  %v2935_v29 = vld [vmem:[#allocation8 + $0x17c] sm:$0x1] }
 0x3b1   :  { %v2714_v44 = vadd.f32 %v2712_v40, %v5824_v50  ;;  %v2740_v50 = vld [vmem:[#allocation8 + $0x19a] sm:$0x1] }
 0x3b2   :  { %v2710_v55 = vpop.permute.xlu1 %2709  ;;  %3335 = vrot.lane.b32.xlu1 %v5851_v61, %s3994_s28  ;;  %v2788_v37 = vrot.slane %v2740_v50, 4 }
 0x3b3   :  { %v2713_v7 = vmul.f32 %v2710_v55, %v5863_v63 }
 0x3b4   :  { %v2789_v9 = vsel %vm229_vm4, %v2788_v37, %v2787_v27 }
 0x3b5   :  { %v2715_v52 = vadd.f32 %v2713_v7, %v5834_v25  ;;  %v5878_v25 = vpop.permute.xlu0 %2521  ;;  %v2876_v7 = vrot.slane %v2832_v30, 2  ;;  %v2924_v30 = vld [vmem:[#allocation8 + $0x1c] sm:$0x1] }
 0x3b7   :  { %v2722_v36 = vpop.permute.xlu1 %2721 }
 0x3b8   :  { %v2725_v11 = vmul.f32 %v2722_v36, %v5863_v63 }
 0x3b9   :  { %v5888_v31 = vpop.permute.xlu0 %2553 }
 0x3ba   :  { %v2727_v45 = vadd.f32 %v2725_v11, %v2629_v15  ;;  %v2791_v15 = vsel %vm232_vm5, %v2790_v35, %v2789_v9 }
 0x3bb   :  { %v2793_v32 = vsel %vm235_vm6, %v2792_v41, %v2791_v15  ;;  %v2834_v41 = vld [vmem:[#allocation8 + $0x11b] sm:$0x1]  ;;  %v2925_v15 = vld [vmem:[#allocation8 + $0x3c] sm:$0x1] }
 0x3bc   :  { %v2746_v47 = vpop.permute.xlu1 %2745  ;;  %v5894_v18 = vsel %vm238_vm7, %v2794_v10, %v2793_v32  ;;  %v2932_v10 = vld [vmem:[#allocation8 + $0x11c] sm:$0x1]  ;;  %v2881_v32 = vsel %vm220_vm1, %v2880_v6, %v2834_v41 }
 0x3bd   :  { %v2798_v8 = vmul.f32 %v5882_v22, %v2746_v47  ;;  %v5898_v24 = vpop.permute.xlu0 %2619  ;;  %v2937_v41 = vld [vmem:[#allocation8 + $0x1bc] sm:$0x1] }
 0x3bf   :  { %v2800_v28 = vadd.f32 %v2798_v8, %v2702_v23  ;;  %v2874_v23 = vrot.slane %v2831_v1, 3  ;;  %v2836_v8 = vld [vmem:[#allocation8 + $0x15b] sm:$0x1] }
 0x3c0   :  { %v2882_v17 = vrot.slane %v2836_v8, 6  ;;  %v2840_v8 = vld [vmem:[#allocation8 + $0x1db] sm:$0x1] }
 0x3c1   :  { %v2804_v51 = vpop.permute.xlu1 %2803  ;;  %v2875_v12 = vsel %vm232_vm5, %v2874_v23, %v2873_v49  ;;  %v5905_v19 = vpop.permute.xlu0 %2651  ;;  %v2838_v23 = vld [vmem:[#allocation8 + $0x19b] sm:$0x1]  ;;  %v2979_v49 = vsel %vm220_vm1, %v2978_v13, %v2932_v10 }
 0x3c2   :  { %v2810_v40 = vmul.f32 %v2804_v51, %v5882_v22  ;;  %v2877_v46 = vsel %vm235_vm6, %v2876_v7, %v2875_v12  ;;  %v2966_v7 = vrot.slane %v2926_v53, 6  ;;  %v2839_v12 = vld [vmem:[#allocation8 + $0x1bb] sm:$0x1]  ;;  %v2929_v53 = vld [vmem:[#allocation8 + $0xbc] sm:$0x1] }
 0x3c3   :  { %v2888_v6 = vrot.slane %v2839_v12, 3  ;;  %v2841_v13 = vld [vmem:[#allocation8 + $0x1fb] sm:$0x1]  ;;  %v3218_v22 = vld [vmem:[#allocation8 + $0x1f] sm:$0x1] }
 0x3c4   :  { %v2812_v62 = vadd.f32 %v2810_v40, %v2714_v44  ;;  %v2878_v44 = vrot.slane %v2833_v57, 1  ;;  %v2964_v40 = vrot.slane %v2925_v15, 7  ;;  %v2927_v57 = vld [vmem:[#allocation8 + $0x7c] sm:$0x1] }
 0x3c5   :  { %v2808_v21 = vpop.permute.xlu1 %2807  ;;  %v5915_v48 = vpop.permute.xlu0 %2717  ;;  %v2968_v4 = vrot.slane %v2927_v57, 5  ;;  %v2892_v57 = vrot.slane %v2841_v13, 1 }
 0x3c6   :  { %v2811_v55 = vmul.f32 %v2808_v21, %v5894_v18  ;;  %v5910_v36 = vsel %vm238_vm7, %v2878_v44, %v2877_v46  ;;  %6589 = vst [vmem:[#allocation20_spill] sm:$0xff] %v5915_v48  ;;  %v2982_v44 = vrot.slane %v2935_v29, 5  ;;  %v3230_v48 = vld [vmem:[#allocation8 + $0x19f] sm:$0x1] }
 0x3c7   :  { %6588 = vst [vmem:[#allocation16_spill] sm:$0xff] %v5910_v36 }
 0x3c8   :  { %v5900_v50 = vadd.f32 %v2811_v55, %v2715_v52  ;;  %v2883_v55 = vsel %vm223_vm2, %v2882_v17, %v2881_v32  ;;  %v5953_v17 = vld [vmem:[#allocation8 + $0x1fc] sm:$0x1] }
 0x3c9   :  { %v5922_v34 = vpop.permute.xlu0 %2749 }
 0x3ca   :  { %6586 = vst [vmem:[#allocation17_spill] sm:$0xff] %v5900_v50  ;;  %v2820_v59 = vpop.permute.xlu1 %2819  ;;  %v3028_v50 = vld [vmem:[#allocation8 + $0xdd] sm:$0x1] }
 0x3cb   :  { %v2823_v43 = vmul.f32 %v2820_v59, %v5894_v18  ;;  %v2936_v59 = vld [vmem:[#allocation8 + $0x19c] sm:$0x1] }
 0x3cc   :  { %v2984_v15 = vrot.slane %v2936_v59, 4  ;;  %v2990_v59 = vrot.slane %v5953_v17, 1 }
 0x3cd   :  { %v5907_v20 = vadd.f32 %v2823_v43, %v2727_v45  ;;  %v5926_v45 = vpop.permute.xlu0 %2815  ;;  %v2965_v43 = vsel %vm220_vm1, %v2964_v40, %v2924_v30  ;;  %v2930_v40 = vld [vmem:[#allocation8 + $0xdc] sm:$0x1]  ;;  %v2890_v30 = vrot.slane %v2840_v8, 2  ;;  %v3121_v8 = vld [vmem:[#allocation8 + $0x3e] sm:$0x1] }
 0x3ce   :  { %6592 = vst [vmem:[#allocation41_spill] sm:$0xff] %v5926_v45 }
 0x3cf   :  { %6587 = vst [vmem:[#allocation21_spill] sm:$0xff] %v5907_v20  ;;  %v2844_v3 = vpop.permute.xlu1 %2843 }
 0x3d0   :  { %v2896_v37 = vmul.f32 %v5910_v36, %v2844_v3  ;;  %v2886_v3 = vrot.slane %v2838_v23, 4  ;;  %v2986_v23 = vrot.slane %v2937_v41, 3  ;;  %v3030_v41 = vld [vmem:[#allocation8 + $0x11d] sm:$0x1] }
 0x3d1   :  { %v5930_v35 = vpop.permute.xlu0 %2847 }
 0x3d2   :  { %v5913_v52 = vadd.f32 %v2896_v37, %v2800_v28  ;;  %v2837_v28 = vld [vmem:[#allocation8 + $0x17b] sm:$0x1] }
 0x3d3   :  { %v2884_v21 = vrot.slane %v2837_v28, 5  ;;  %v2938_v28 = vld [vmem:[#allocation8 + $0x1dc] sm:$0x1] }
 0x3d4   :  { %v2902_v11 = vpop.permute.xlu1 %2901  ;;  %v2988_v12 = vrot.slane %v2938_v28, 2 }
 0x3d5   :  { %v2908_v27 = vmul.f32 %v2902_v11, %v5910_v36  ;;  %v5934_v58 = vpop.permute.xlu0 %2913  ;;  %v2885_v11 = vsel %vm226_vm3, %v2884_v21, %v2883_v55  ;;  %v3023_v55 = vld [vmem:[#allocation8 + $0x3d] sm:$0x1] }
 0x3d6   :  { %6594 = vst [vmem:[#allocation24_spill] sm:$0xff] %v5934_v58  ;;  %v2887_v32 = vsel %vm229_vm4, %v2886_v3, %v2885_v11  ;;  %v2972_v3 = vrot.slane %v2929_v53, 3  ;;  %v3032_v11 = vld [vmem:[#allocation8 + $0x15d] sm:$0x1]  ;;  %v3062_v28 = vrot.slane %v3023_v55, 7 }
 0x3d7   :  { %v5918_v60 = vadd.f32 %v2908_v27, %v2812_v62  ;;  %v2980_v62 = vrot.slane %v2934_v16, 6  ;;  %v2928_v27 = vld [vmem:[#allocation8 + $0x9c] sm:$0x1]  ;;  %v2967_v16 = vsel %vm223_vm2, %v2966_v7, %v2965_v43  ;;  %v2889_v43 = vsel %vm232_vm5, %v2888_v6, %v2887_v32  ;;  %v3022_v6 = vld [vmem:[#allocation8 + $0x1d] sm:$0x1] }
 0x3d8   :  { %v5920_v33 = vpop.permute.xlu1 %2905  ;;  %v2970_v29 = vrot.slane %v2928_v27, 4  ;;  %v2969_v21 = vsel %vm226_vm3, %v2968_v4, %v2967_v16  ;;  %v5968_v16 = vld [vmem:[#allocation8 + $0x17d] sm:$0x1]  ;;  %v3129_v32 = vld [vmem:[#allocation8 + $0x13e] sm:$0x1]  ;;  %v2891_v53 = vsel %vm235_vm6, %v2890_v30, %v2889_v43  ;;  %v3078_v55 = vrot.slane %v3032_v11, 6 }
 0x3d9   :  { %6590 = vst [vmem:[#allocation23_spill] sm:$0xff] %v5918_v60  ;;  %v5941_v1 = vpop.permute.xlu0 %2945  ;;  %v2981_v37 = vsel %vm223_vm2, %v2980_v62, %v2979_v49  ;;  %v3031_v49 = vld [vmem:[#allocation8 + $0x13d] sm:$0x1]  ;;  %v3063_v58 = vsel %vm220_vm1, %v3062_v28, %v3022_v6  ;;  %v3128_v30 = vld [vmem:[#allocation8 + $0x11e] sm:$0x1]  ;;  %v5984_v36 = vsel %vm238_vm7, %v2892_v57, %v2891_v53 }
 0x3da   :  { %v2983_v10 = vsel %vm226_vm3, %v2982_v44, %v2981_v37  ;;  %v5962_v44 = vld [vmem:[#allocation8 + $0xfc] sm:$0x1]  ;;  %v2974_v37 = vrot.slane %v2930_v40, 2  ;;  %v2971_v4 = vsel %vm229_vm4, %v2970_v29, %v2969_v21  ;;  %v3076_v13 = vrot.slane %v3031_v49, 7  ;;  %v5973_v60 = vld [vmem:[#allocation8 + $0x19d] sm:$0x1] }
 0x3db   :  { %v2985_v7 = vsel %vm229_vm4, %v2984_v15, %v2983_v10  ;;  %v3024_v15 = vld [vmem:[#allocation8 + $0x5d] sm:$0x1]  ;;  %v2976_v40 = vrot.slane %v5962_v44, 1  ;;  %v3122_v21 = vld [vmem:[#allocation8 + $0x5e] sm:$0x1]  ;;  %v2973_v49 = vsel %vm232_vm5, %v2972_v3, %v2971_v4  ;;  %v3174_v44 = vrot.slane %v3129_v32, 7 }
 0x3dc   :  { %v2987_v17 = vsel %vm232_vm5, %v2986_v23, %v2985_v7  ;;  %v3025_v29 = vld [vmem:[#allocation8 + $0x7d] sm:$0x1]  ;;  %v3064_v20 = vrot.slane %v3024_v15, 6  ;;  %v3080_v7 = vrot.slane %v5968_v16, 5  ;;  %v3130_v43 = vld [vmem:[#allocation8 + $0x15e] sm:$0x1]  ;;  %v3077_v3 = vsel %vm220_vm1, %v3076_v13, %v3030_v41 }
 0x3dd   :  { %v5924_v5 = vpop.permute.xlu1 %2917  ;;  %v5950_v54 = vpop.permute.xlu0 %3011  ;;  %v2989_v23 = vsel %vm235_vm6, %v2988_v12, %v2987_v17  ;;  %v3082_v11 = vrot.slane %v5973_v60, 4  ;;  %v3123_v4 = vld [vmem:[#allocation8 + $0x7e] sm:$0x1]  ;;  %v3162_v12 = vrot.slane %v3122_v21, 6  ;;  %v3227_v15 = vld [vmem:[#allocation8 + $0x13f] sm:$0x1]  ;;  %v2975_v28 = vsel %vm235_vm6, %v2974_v37, %v2973_v49 }
 0x3de   :  { %6591 = vst [vmem:[#allocation22_spill] sm:$0xff] %v5924_v5  ;;  %6596 = vst [vmem:[#allocation27_spill] sm:$0xff] %v5950_v54  ;;  %v5977_v54 = vld [vmem:[#allocation8 + $0x1bd] sm:$0x1]  ;;  %v3066_v6 = vrot.slane %v3025_v29, 5  ;;  %v5997_v45 = vsel %vm238_vm7, %v2990_v59, %v2989_v23  ;;  %v3065_v13 = vsel %vm223_vm2, %v3064_v20, %v3063_v58  ;;  %v3175_v37 = vsel %vm220_vm1, %v3174_v44, %v3128_v30 }
 0x3df   :  { %v5986_v5 = vld [vmem:[#allocation8 + $0x1dd] sm:$0x1]  ;;  %v3220_v32 = vld [vmem:[#allocation8 + $0x5f] sm:$0x1]  ;;  %v3084_v60 = vrot.slane %v5977_v54, 3  ;;  %v3164_v49 = vrot.slane %v3123_v4, 5 }
 0x3e0   :  { %v3026_v17 = vld [vmem:[#allocation8 + $0x9d] sm:$0x1]  ;;  %v3131_v21 = vld [vmem:[#allocation8 + $0x17e] sm:$0x1]  ;;  %v3226_v23 = vld [vmem:[#allocation8 + $0x11f] sm:$0x1] }
 0x3e1   :  { %v5965_v27 = vpop.permute.xlu0 %3043  ;;  %v3027_v41 = vld [vmem:[#allocation8 + $0xbd] sm:$0x1]  ;;  %v3124_v29 = vld [vmem:[#allocation8 + $0x9e] sm:$0x1]  ;;  %v3068_v59 = vrot.slane %v3026_v17, 4  ;;  %v3260_v20 = vrot.slane %v3220_v32, 6 }
 0x3e2   :  { %v5928_v26 = vpop.permute.xlu1 %2941  ;;  %v6007_v58 = vld [vmem:[#allocation8 + $0x1fd] sm:$0x1]  ;;  %v3132_v30 = vld [vmem:[#allocation8 + $0x19e] sm:$0x1]  ;;  %v3178_v44 = vrot.slane %v3131_v21, 5  ;;  %v3166_v17 = vrot.slane %v3124_v29, 4 }
 0x3e3   :  { %v3222_v21 = vld [vmem:[#allocation8 + $0x9f] sm:$0x1] }
 0x3e5   :  { %v6613_v61 = vld [vmem:[#allocation22_spill] sm:$0xff] }
 0x3e7   :  { %v5932_v9 = vpop.permute.xlu1 %2999 }
 0x3e8   :  { %6593 = vst [vmem:[#allocation25_spill] sm:$0xff] %v5932_v9  ;;  %v3120_v9 = vld [vmem:[#allocation8 + $0x1e] sm:$0x1] }
 0x3eb   :  { %v5936_v47 = vpop.permute.xlu1 %3003 }
 0x3f0   :  { %v5938_v51 = vpop.permute.xlu1 %3015 }
 0x3f1   :  { %6595 = vst [vmem:[#allocation29_spill] sm:$0xff] %v5938_v51  ;;  %v3219_v51 = vld [vmem:[#allocation8 + $0x3f] sm:$0x1] }
 0x3f2   :  { %v3258_v53 = vrot.slane %v3219_v51, 7  ;;  %v6004_v51 = vsel %vm238_vm7, %v2976_v40, %v2975_v28  ;;  %v3125_v28 = vld [vmem:[#allocation8 + $0xbe] sm:$0x1] }
 0x3f5   :  { %v5946_v46 = vpop.permute.xlu1 %3039 }
 0x3fa   :  { %v5957_v62 = vpop.permute.xlu1 %3097 }
 0x3fb   :  { %6597 = vst [vmem:[#allocation47_spill] sm:$0xff] %v5957_v62  ;;  %v3160_v62 = vrot.slane %v3121_v8, 7  ;;  %v5990_v8 = vpop.permute.xlu0 %3109 }
 0x3fc   :  { %6599 = vst [vmem:[#allocation31_spill] sm:$0xff] %v5990_v8  ;;  %v3176_v8 = vrot.slane %v3130_v43, 6  ;;  %v3070_v43 = vrot.slane %v3027_v41, 3  ;;  %v3168_v41 = vrot.slane %v3125_v28, 3  ;;  %v3127_v28 = vld [vmem:[#allocation8 + $0xfe] sm:$0x1] }
 0x3fd   :  { %v3161_v57 = vsel %vm220_vm1, %v3160_v62, %v3120_v9  ;;  %v3228_v9 = vld [vmem:[#allocation8 + $0x15f] sm:$0x1]  ;;  %v3272_v62 = vrot.slane %v3227_v15, 7 }
 0x3fe   :  { %v5970_v10 = vpop.permute.xlu1 %3101  ;;  %v3163_v54 = vsel %vm223_vm2, %v3162_v12, %v3161_v57  ;;  %v3177_v15 = vsel %vm223_vm2, %v3176_v8, %v3175_v37  ;;  %v3229_v57 = vld [vmem:[#allocation8 + $0x17f] sm:$0x1]  ;;  %v3274_v32 = vrot.slane %v3228_v9, 6  ;;  %v3180_v8 = vrot.slane %v3132_v30, 4  ;;  %v3029_v30 = vld [vmem:[#allocation8 + $0xfd] sm:$0x1] }
 0x3ff   :  { %6598 = vst [vmem:[#allocation33_spill] sm:$0xff] %v5970_v10  ;;  %v3221_v10 = vld [vmem:[#allocation8 + $0x7f] sm:$0x1]  ;;  %v6016_v12 = vpop.permute.xlu0 %3141  ;;  %v3179_v9 = vsel %vm226_vm3, %v3178_v44, %v3177_v15  ;;  %v3134_v44 = vld [vmem:[#allocation8 + $0x1de] sm:$0x1] }
 0x400   :  { %6601 = vst [vmem:[#allocation36_spill] sm:$0xff] %v6016_v12  ;;  %v3126_v12 = vld [vmem:[#allocation8 + $0xde] sm:$0x1]  ;;  %v3181_v15 = vsel %vm229_vm4, %v3180_v8, %v3179_v9  ;;  %v3172_v9 = vrot.slane %v3127_v28, 1 }
 0x403   :  { %v5992_v16 = vpop.permute.xlu1 %3113 }
 0x404   :  { %6600 = vst [vmem:[#allocation40_spill] sm:$0xff] %v5992_v16  ;;  %v3079_v16 = vsel %vm223_vm2, %v3078_v55, %v3077_v3  ;;  %v3067_v55 = vsel %vm226_vm3, %v3066_v6, %v3065_v13  ;;  %v3259_v3 = vsel %vm220_vm1, %v3258_v53, %v3218_v22  ;;  %v3165_v6 = vsel %vm226_vm3, %v3164_v49, %v3163_v54 }
 0x405   :  { %v3081_v40 = vsel %vm226_vm3, %v3080_v7, %v3079_v16  ;;  %v3273_v13 = vsel %vm220_vm1, %v3272_v62, %v3226_v23  ;;  %v3262_v22 = vrot.slane %v3221_v10, 5  ;;  %v3069_v7 = vsel %vm229_vm4, %v3068_v59, %v3067_v55  ;;  %v3133_v16 = vld [vmem:[#allocation8 + $0x1be] sm:$0x1]  ;;  %v3223_v23 = vld [vmem:[#allocation8 + $0xbf] sm:$0x1]  ;;  %v6602_v55 = vld [vmem:[#allocation72_spill] sm:$0xff] }
 0x406   :  { %v3261_v37 = vsel %vm223_vm2, %v3260_v20, %v3259_v3  ;;  %v3083_v29 = vsel %vm229_vm4, %v3082_v11, %v3081_v40  ;;  %v3276_v49 = vrot.slane %v3229_v57, 5  ;;  %v3072_v54 = vrot.slane %v3028_v50, 2  ;;  %v6035_v57 = vpop.permute.xlu0 %3207 }
 0x407   :  { %v3167_v62 = vsel %vm229_vm4, %v3166_v17, %v3165_v6  ;;  %v3275_v10 = vsel %vm223_vm2, %v3274_v32, %v3273_v13  ;;  %v3264_v53 = vrot.slane %v3222_v21, 4  ;;  %v2407_v20 = vmul.f32 %v5748_v56, %v6602_v55  ;;  %v3231_v13 = vld [vmem:[#allocation8 + $0x1bf] sm:$0x1] }
 0x408   :  { %v6012_v4 = vpop.permute.xlu1 %3137  ;;  %v3071_v11 = vsel %vm232_vm5, %v3070_v43, %v3069_v7  ;;  %v3182_v3 = vrot.slane %v3133_v16, 3  ;;  %v3263_v40 = vsel %vm226_vm3, %v3262_v22, %v3261_v37  ;;  %v3085_v50 = vsel %vm232_vm5, %v3084_v60, %v3083_v29  ;;  %v3224_v21 = vld [vmem:[#allocation8 + $0xdf] sm:$0x1]  ;;  %v6603_v37 = vld [vmem:[#allocation70_spill] sm:$0xff] }
 0x409   :  { %v3170_v17 = vrot.slane %v3126_v12, 2  ;;  %v3278_v32 = vrot.slane %v3230_v48, 4  ;;  %v2505_v6 = vmul.f32 %v5787_v39, %v5870_v38  ;;  %v3169_v56 = vsel %vm232_vm5, %v3168_v41, %v3167_v62  ;;  %v3135_v38 = vld [vmem:[#allocation8 + $0x1fe] sm:$0x1]  ;;  %v3225_v55 = vld [vmem:[#allocation8 + $0xff] sm:$0x1] }
 0x40a   :  { %v3277_v43 = vsel %vm226_vm3, %v3276_v49, %v3275_v10  ;;  %v3266_v7 = vrot.slane %v3223_v23, 3  ;;  %v3073_v22 = vsel %vm235_vm6, %v3072_v54, %v3071_v11  ;;  %v3074_v60 = vrot.slane %v3029_v30, 1  ;;  %v3232_v49 = vld [vmem:[#allocation8 + $0x1df] sm:$0x1] }
 0x40b   :  { %v3184_v16 = vrot.slane %v3134_v44, 2  ;;  %v3265_v8 = vsel %vm229_vm4, %v3264_v53, %v3263_v40  ;;  %v2409_v48 = vadd.f32 %v2407_v20, %v6603_v37  ;;  %v2603_v39 = vmul.f32 %v5827_v0, %v5888_v31  ;;  %v3240_v40 = vpop.permute.xlu0 %3239 }
 0x40c   :  { %v3183_v29 = vsel %vm232_vm5, %v3182_v3, %v3181_v15  ;;  %v3171_v41 = vsel %vm235_vm6, %v3170_v17, %v3169_v56  ;;  %v3279_v54 = vsel %vm229_vm4, %v3278_v32, %v3277_v43  ;;  %v3280_v62 = vrot.slane %v3231_v13, 3 }
 0x40d   :  { %v6027_v59 = vpop.permute.xlu1 %3195  ;;  %v3268_v10 = vrot.slane %v3224_v21, 2  ;;  %v2507_v23 = vadd.f32 %v2505_v6, %v2409_v48  ;;  %v2701_v53 = vmul.f32 %v5863_v63, %v5905_v19  ;;  %v3267_v20 = vsel %vm232_vm5, %v3266_v7, %v3265_v8  ;;  %v3233_v19 = vld [vmem:[#allocation8 + $0x1ff] sm:$0x1] }
 0x40e   :  { %v2994_v0 = vmul.f32 %v6004_v51, %v5928_v26  ;;  %v6604_v31 = vrot.slane %v5986_v5, 2  ;;  %v6060_v11 = vsel %vm238_vm7, %v3074_v60, %v3073_v22  ;;  %v3185_v44 = vsel %vm235_vm6, %v3184_v16, %v3183_v29  ;;  %v6606_v29 = vld [vmem:[#allocation74_spill] sm:$0xff] }
 0x40f   :  { %v3186_v3 = vrot.slane %v3135_v38, 1  ;;  %v2605_v15 = vadd.f32 %v2603_v39, %v2507_v23  ;;  %v2799_v63 = vmul.f32 %v5894_v18, %v5922_v34  ;;  %v3282_v28 = vrot.slane %v3232_v49, 2  ;;  %v6609_v23 = vld [vmem:[#allocation17_spill] sm:$0xff] }
 0x410   :  { %v3087_v30 = vsel %vm235_vm6, %v6604_v31, %v3085_v50  ;;  %v3092_v26 = vmul.f32 %v6060_v11, %v5946_v46  ;;  %v6070_v5 = vsel %vm238_vm7, %v3172_v9, %v3171_v41  ;;  %v3281_v50 = vsel %vm232_vm5, %v3280_v62, %v3279_v54  ;;  %v6607_v41 = vld [vmem:[#allocation20_spill] sm:$0xff] }
 0x411   :  { %v6043_v12 = vpop.permute.xlu1 %3199  ;;  %v3269_v32 = vsel %vm235_vm6, %v3268_v10, %v3267_v20  ;;  %v3270_v6 = vrot.slane %v3225_v55, 1  ;;  %v2703_v56 = vadd.f32 %v2701_v53, %v2605_v15  ;;  %v2897_v13 = vmul.f32 %v5984_v36, %v5930_v35  ;;  %v6608_v54 = vld [vmem:[#allocation36_spill] sm:$0xff]  ;;  %v6610_v55 = vld [vmem:[#allocation33_spill] sm:$0xff] }
 0x412   :  { %v2996_v18 = vadd.f32 %v2994_v0, %v5913_v52  ;;  %v3190_v34 = vmul.f32 %v6070_v5, %v6012_v4  ;;  %v2528_v46 = vmul.f32 %v5878_v25, %v5767_v2  ;;  %v6605_v43 = vrot.slane %v6007_v58, 1  ;;  %v6093_v2 = vpop.permute.xlu0 %3305 }
 0x413   :  { %v3187_v7 = vsel %vm238_vm7, %v3186_v3, %v3185_v44  ;;  %v3284_v22 = vrot.slane %v3233_v19, 1  ;;  %v2801_v60 = vadd.f32 %v2799_v63, %v2703_v56  ;;  %v2995_v16 = vmul.f32 %v5997_v45, %v5941_v1  ;;  %v6612_v44 = vld [vmem:[#allocation41_spill] sm:$0xff] }
 0x414   :  { %v3089_v21 = vsel %vm238_vm7, %v6605_v43, %v3087_v30  ;;  %v3283_v35 = vsel %vm235_vm6, %v3282_v28, %v3281_v50  ;;  %v3094_v52 = vadd.f32 %v3092_v26, %v2996_v18  ;;  %v2626_v4 = vmul.f32 %v5898_v24, %v5807_v14  ;;  %v6611_v30 = vld [vmem:[#allocation18_spill] sm:$0xff]  ;;  %v6616_v18 = vld [vmem:[#allocation29_spill] sm:$0xff] }
 0x415   :  { %v6091_v8 = vsel %vm238_vm7, %v3270_v6, %v3269_v32  ;;  %v2909_v25 = vmul.f32 %v5920_v33, %v5984_v36  ;;  %v3316_v37 = vlaneseq  ;;  %v2899_v48 = vadd.f32 %v2897_v13, %v2801_v60  ;;  %v6614_v32 = vld [vmem:[#allocation16_spill] sm:$0xff] }
 0x416   :  { %v6067_v17 = vpop.permute.xlu1 %3211  ;;  %v3093_v39 = vmul.f32 %v3089_v21, %v5965_v27  ;;  %v3192_v1 = vadd.f32 %v3190_v34, %v3094_v52  ;;  %v2530_v9 = vadd.f32 %v2528_v46, %v6606_v29  ;;  %v3285_v14 = vsel %vm238_vm7, %v3284_v22, %v3283_v35  ;;  %v3327_v31 = vpop.permute.xlu0 %3326  ;;  %v6615_v6 = vld [vmem:[#allocation24_spill] sm:$0xff]  ;;  %v6617_v46 = vld [vmem:[#allocation25_spill] sm:$0xff]  ;;  %v6621_v29 = vld [vmem:[#allocation27_spill] sm:$0xff] }
 0x417   :  { %v3007_v24 = vmul.f32 %v5936_v47, %v5997_v45  ;;  %v2724_v33 = vmul.f32 %v6607_v41, %v5845_v42  ;;  %v2997_v49 = vadd.f32 %v2995_v16, %v2899_v48  ;;  %v3191_v62 = vmul.f32 %v3187_v7, %v6608_v54  ;;  %v6619_v16 = vld [vmem:[#allocation40_spill] sm:$0xff] }
 0x418   :  { %v2628_v27 = vadd.f32 %v2626_v4, %v2530_v9  ;;  %v2911_v53 = vadd.f32 %v2909_v25, %v6609_v23  ;;  %v3105_v20 = vmul.f32 %v6610_v55, %v3089_v21  ;;  %v6109_v0 = vand.u32 127, %v3316_v37  ;;  %v6620_v4 = vld [vmem:[#allocation47_spill] sm:$0xff] }
 0x419   :  { %v2822_v47 = vmul.f32 %v6612_v44, %v6611_v30  ;;  %v3095_v3 = vadd.f32 %v3093_v39, %v2997_v49  ;;  %v2921_v15 = vmul.f32 %v6613_v61, %v5984_v36  ;;  %v3289_v19 = vmul.f32 %v3285_v14, %v3240_v40  ;;  %v6618_v40 = vld [vmem:[#allocation21_spill] sm:$0xff]  ;;  %v6622_v9 = vld [vmem:[#allocation23_spill] sm:$0xff] }
 0x41a   :  { %v3009_v28 = vadd.f32 %v3007_v24, %v2911_v53  ;;  %v3203_v26 = vmul.f32 %v6043_v12, %v3187_v7  ;;  %v2726_v50 = vadd.f32 %v2724_v33, %v2628_v27  ;;  %v2920_v56 = vmul.f32 %v6615_v6, %v6614_v32 }
 0x41b   :  { %v3236_v58 = vpop.permute.xlu1 %3235  ;;  %v3193_v13 = vadd.f32 %v3191_v62, %v3095_v3  ;;  %v3019_v34 = vmul.f32 %v6616_v18, %v5997_v45  ;;  %v3006_v43 = vmul.f32 %v6617_v46, %v6004_v51  ;;  %vm3330_vm9 = vcmp.lt.s32.totalorder %v6109_v0, 127  ;;  %v3338_v45 = vpop.permute.xlu0 %3337 }
 0x41c   :  { %v3288_v38 = vmul.f32 %v6091_v8, %v3236_v58  ;;  %v3107_v22 = vadd.f32 %v3105_v20, %v3009_v28  ;;  %vm3329_vm10 = vcmp.gt.f32.partialorder %v3327_v31, 0.5  ;;  %v2824_v36 = vadd.f32 %v2822_v47, %v2726_v50 }
 0x41d   :  { %v2923_v60 = vadd.f32 %v2921_v15, %v6618_v40  ;;  %v3117_v12 = vmul.f32 %v6619_v16, %v3089_v21  ;;  %v3291_v52 = vadd.f32 %v3289_v19, %v3193_v13  ;;  %v3104_v25 = vmul.f32 %v6620_v4, %v6060_v11  ;;  %vm3332_vm12 = vmand %vm3329_vm10, %vm3330_vm9 }
 0x41e   :  { %v3290_v10 = vadd.f32 %v3288_v38, %v3192_v1  ;;  %v3205_v58 = vadd.f32 %v3203_v26, %v3107_v22  ;;  %v3215_v39 = vmul.f32 %v6067_v17, %v3187_v7  ;;  %v3755_v1 = vld [vmem:[#allocation7 + $0x8] sm:$0xff]  ;;  %v2922_v38 = vadd.f32 %v2920_v56, %v2824_v36  ;;  %v6623_v17 = vld [vmem:[#allocation31_spill] sm:$0xff] }
 0x41f   :  { %v3021_v48 = vadd.f32 %v3019_v34, %v2923_v60  ;;  %vm3321_vm11 = vcmp.gt.f32.partialorder %v3755_v1, 0.5  ;;  %v3018_v21 = vmul.f32 %v6621_v29, %v6004_v51  ;;  %v3008_v24 = vadd.f32 %v3006_v43, %v6622_v9 }
 0x420   :  { %v3294_v42 = vpop.permute.xlu1 %3293  ;;  %v6115_v63 = vsel %vm3320_vm8, %v3290_v10, -1e+12  ;;  %v3202_v49 = vmul.f32 %v6027_v59, %v6070_v5  ;;  %vm3341_vm13 = vcmp.lt.s32.totalorder %v6109_v0, 126  ;;  %vm3340_vm14 = vcmp.gt.f32.partialorder %v3338_v45, 0.5 }
 0x421   :  { %v3119_v33 = vadd.f32 %v3117_v12, %v3021_v48  ;;  %v3116_v7 = vmul.f32 %v6623_v17, %v6060_v11  ;;  %v3106_v54 = vadd.f32 %v3104_v25, %v3008_v24  ;;  %v3323_v62 = vsel %vm3321_vm11, %v3291_v52, -1e+12  ;;  %vm3343_vm15 = vmand %vm3340_vm14, %vm3341_vm13  ;;  %v3381_v48 = vld [vmem:[#allocation5 + $0x8] sm:$0xff] }
 0x422   :  { %v3300_v51 = vmul.f32 %v3294_v42, %v6091_v8  ;;  %v3020_v20 = vadd.f32 %v3018_v21, %v2922_v38  ;;  %v3214_v59 = vmul.f32 %v6035_v57, %v6070_v5  ;;  %v3312_v47 = vmul.f32 %v6093_v2, %v6091_v8 }
 0x423   :  { %v3217_v23 = vadd.f32 %v3215_v39, %v3119_v33  ;;  %v3204_v31 = vadd.f32 %v3202_v49, %v3106_v54  ;;  %v3380_v33 = vld [vmem:[#allocation5] sm:$0xff]  ;;  %vm3392_vm4 = vcmp.ge.s32.totalorder %v6109_v0, 1  ;;  %vm3403_vm5 = vcmp.ge.s32.totalorder %v6109_v0, 2 }
 0x424   :  { %v3298_v35 = vpop.permute.xlu1 %3297  ;;  %v3118_v44 = vadd.f32 %v3116_v7, %v3020_v20 }
 0x425   :  { %v3301_v37 = vmul.f32 %v3298_v35, %v3285_v14  ;;  %v3302_v3 = vadd.f32 %v3300_v51, %v3204_v31 }
 0x427   :  { %v3303_v41 = vadd.f32 %v3301_v37, %v3205_v58 }
 0x429   :  { %v3334_v10 = vsel %vm3332_vm12, %v3303_v41, -1e+12  ;;  %v3310_v27 = vpop.permute.xlu1 %3309 }
 0x42a   :  { %v3347_v53 = vmax.f32 %v3323_v62, %v3334_v10  ;;  %v3313_v55 = vmul.f32 %v3310_v27, %v3285_v14  ;;  %v3216_v14 = vadd.f32 %v3214_v59, %v3118_v44 }
 0x42c   :  { %v3315_v30 = vadd.f32 %v3313_v55, %v3217_v23  ;;  %v3314_v50 = vadd.f32 %v3312_v47, %v3216_v14 }
 0x42d   :  { %v3325_v11 = vpop.permute.xlu1 %3324 }
 0x42e   :  { %v3345_v61 = vsel %vm3343_vm15, %v3315_v30, -1e+12  ;;  %vm3328_vm0 = vcmp.gt.f32.partialorder %v3325_v11, 0.5 }
 0x42f   :  { %v3349_v15 = vmax.f32 %v3347_v53, %v3345_v61  ;;  %vm3331_vm1 = vmand %vm3328_vm0, %vm3330_vm9 }
 0x430   :  { %v3333_v42 = vsel %vm3331_vm1, %v3302_v3, -1e+12 }
 0x431   :  { %v3351_v19 = vsub.f32 %v3323_v62, %v3349_v15  ;;  %v3357_v28 = vsub.f32 %v3334_v10, %v3349_v15  ;;  %v3363_v26 = vsub.f32 %v3345_v61, %v3349_v15  ;;  %v3346_v57 = vmax.f32 %v6115_v63, %v3333_v42  ;;  %v3336_v5 = vpop.permute.xlu1 %3335 }
 0x432   :  { %vm3339_vm2 = vcmp.gt.f32.partialorder %v3336_v5, 0.5 }
 0x433   :  { %v3354_v32 = vmul.f32 1.442695, %v3351_v19  ;;  %v3360_v6 = vmul.f32 1.442695, %v3357_v28  ;;  %vm3342_vm3 = vmand %vm3339_vm2, %vm3341_vm13  ;;  %v3366_v8 = vmul.f32 1.442695, %v3363_v26 }
 0x434   :  { %v3344_v2 = vsel %vm3342_vm3, %v3314_v50, -1e+12 }
 0x435   :  { %3739 = vpow2.f32 %v3354_v32  ;;  %v3348_v56 = vmax.f32 %v3346_v57, %v3344_v2 }
 0x436   :  { %3741 = vpow2.f32 %v3360_v6 }
 0x437   :  { %v3350_v13 = vsub.f32 %v6115_v63, %v3348_v56  ;;  %v3356_v18 = vsub.f32 %v3333_v42, %v3348_v56  ;;  %v3362_v34 = vsub.f32 %v3344_v2, %v3348_v56  ;;  %3743 = vpow2.f32 %v3366_v8 }
 0x439   :  { %v3352_v46 = vmul.f32 1.442695, %v3350_v13  ;;  %v3358_v43 = vmul.f32 1.442695, %v3356_v18  ;;  %v3364_v22 = vmul.f32 1.442695, %v3362_v34 }
 0x43b   :  { %3745 = vpow2.f32 %v3352_v46 }
 0x43c   :  { %3747 = vpow2.f32 %v3358_v43 }
 0x43d   :  { %3749 = vpow2.f32 %v3364_v22 }
 0x43f   :  { %v3740_v36 = vpop.eup %3739 }
 0x440   :  { %v3742_v40 = vpop.eup %3741 }
 0x441   :  { %v3369_v60 = vadd.f32 %v3742_v40, %v3740_v36  ;;  %v3744_v16 = vpop.eup %3743 }
 0x443   :  { %v3371_v12 = vadd.f32 %v3744_v16, %v3369_v60 }
 0x445   :  { %v3746_v35 = vpop.eup %3745  ;;  %3751 = vrcp.f32 %v3371_v12 }
 0x446   :  { %v3748_v52 = vpop.eup %3747 }
 0x447   :  { %v3368_v4 = vadd.f32 %v3748_v52, %v3746_v35  ;;  %v3750_v25 = vpop.eup %3749 }
 0x449   :  { %v3370_v63 = vadd.f32 %v3750_v25, %v3368_v4 }
 0x44b   :  { %3753 = vrcp.f32 %v3370_v63 }
 0x44f   :  { %v3752_v58 = vpop.eup %3751 }
 0x450   :  { %v3375_v37 = vmul.f32 %v3752_v58, %v3371_v12 }
 0x452   :  { %v3377_v45 = vsub.f32 2.0, %v3375_v37 }
 0x454   :  { %v3379_v39 = vmul.f32 %v3752_v58, %v3377_v45 }
 0x455   :  { %v3754_v1 = vpop.eup %3753 }
 0x456   :  { %v3383_v38 = vmul.f32 %v3381_v48, %v3379_v39  ;;  %v3374_v29 = vmul.f32 %v3754_v1, %v3370_v63 }
 0x458   :  { %v3387_v21 = vmul.f32 %v3742_v40, %v3383_v38  ;;  %v3398_v9 = vmul.f32 %v3744_v16, %v3383_v38  ;;  %v3376_v24 = vsub.f32 2.0, %v3374_v29  ;;  %v3385_v41 = vmul.f32 %v3740_v36, %v3383_v38 }
 0x45a   :  { %3390 = vrot.lane.b32.xlu0 %v3387_v21, %s4001_s29  ;;  %v3378_v49 = vmul.f32 %v3754_v1, %v3376_v24 }
 0x45c   :  { %v3382_v17 = vmul.f32 %v3380_v33, %v3378_v49 }
 0x45e   :  { %3401 = vrot.lane.b32.xlu0 %v3398_v9, %s4002_s3  ;;  %v3386_v7 = vmul.f32 %v3748_v52, %v3382_v17  ;;  %v3397_v54 = vmul.f32 %v3750_v25, %v3382_v17  ;;  %v3384_v62 = vmul.f32 %v3746_v35, %v3382_v17 }
 0x460   :  { %3388 = vrot.lane.b32.xlu1 %v3386_v7, %s4001_s29 }
 0x464   :  { %3399 = vrot.lane.b32.xlu1 %v3397_v54, %s4002_s3 }
 0x4cc   :  { %v3391_v10 = vpop.permute.xlu0 %3390 }
 0x4cd   :  { %v3394_v27 = vsel %vm3392_vm4, %v3391_v10, 0.0 }
 0x4ce   :  { %v3396_v23 = vadd.f32 %v3394_v27, %v3385_v41 }
 0x4d0   :  { %v3402_v51 = vpop.permute.xlu0 %3401 }
 0x4d1   :  { %v3405_v53 = vsel %vm3403_vm5, %v3402_v51, 0.0 }
 0x4d2   :  { %v3407_v55 = vadd.f32 %v3405_v53, %v3396_v23  ;;  %v3389_v20 = vpop.permute.xlu1 %3388 }
 0x4d3   :  { %v3393_v59 = vsel %vm3392_vm4, %v3389_v20, 0.0 }
 0x4d4   :  { %3409 = vst [vmem:[#allocation11 + $0x8] sm:$0xff] %v3407_v55  ;;  %v3395_v31 = vadd.f32 %v3393_v59, %v3384_v62 }
 0x4d6   :  { %v3400_v30 = vpop.permute.xlu1 %3399 }
 0x4d7   :  { %v3404_v44 = vsel %vm3403_vm5, %v3400_v30, 0.0 }
 0x4d8   :  { %v3406_v11 = vadd.f32 %v3404_v44, %v3395_v31 }
 0x4da   :  { %3408 = vst [vmem:[#allocation11] sm:$0xff] %v3406_v11 }
 0x4db   :  { %3877 = shalt.err (!%p3874_p2)
}
 0x4dc   :  { %s3878_s11 = scalar_lea.hbm %s6175_s5, 256 }
 0x4dd   :  { %p3879_p3 = scmp.ne.s32.totalorder %s6175_s5, %s3878_s11  ;;  %p3882_p4 = scmp.lt.u32.totalorder %s3878_s11, %s6175_s5 }
 0x4df   :  { %p3884_p5 = pnand %p3882_p4, %p3879_p3 }
 0x4e1   :  { %3887 = shalt.err (!%p3884_p5)
}
 0x4e2   :  { %3421 = dma.vmem_to_hbm [thread:$0]  %s3416_s7, 256, %s6175_s5, [#allocation4], %s3898_s30, %s3898_s30, %s3899_s6  }
 0x4e3   :  { %3894 = dma.done.wait [#allocation4], 256  }
 0x4e4   :  { %3895 = vsyncadd [#allocation4], 4294967040 }
 0x4e5   :  { %3425 = vsyncpa [#allocation3], 1 }
 0x4e6   :  { %3426 = vsyncpa [#allocation6], 1 }
 0x4e7   :  { %3427 = vsyncpa [#allocation9], 1 }
 0x4e8   :  { %3428 = vsyncpa [#allocation4], 1 }

</bundles_post_ra>
